<compile_context>
chip_gen: v5e
topology: v5e:2x2
jax: 0.10.0
libtpu: 0.0.40
codegen_flags: <defaults>
</compile_context>

<pallas_src>
import functools

import jax
import jax.numpy as jnp
from jax.experimental import pallas as pl
from jax.experimental.pallas import tpu as pltpu

EPS = 1e-5
LANE = 128                 # lane-dense channel padding for all conv outputs
STEM_CIN = 8               # stem input channels padded 3 -> 8
ACT_DTYPE = jnp.bfloat16
_VMEM_LIMIT = 32 * 1024 * 1024


# ----------------------- "guarded flat" activation layout -------------------- #
# An (H, W, C) activation is stored as (N, Lg, C):
#   Hp, Wp = H + 2, W + 2      zero spatial padding for the 3x3 conv
#   L      = Hp * Wp           row-major flattened padded spatial
#   G      = Wp + 1            zero guard rows before/after, so every shifted
#                              3x3 tap is a contiguous 2-D slice of the block
#   Lg     = L + 2 * G
# Real pixel (h, w) lives at flat index G + (h + 1) * Wp + (w + 1).

def _layout(H, W):
    Hp, Wp = H + 2, W + 2
    L = Hp * Wp
    G = Wp + 1
    return Hp, Wp, L, G, L + 2 * G


def nhwc_to_guarded(x):
    N, H, W, C = x.shape
    _, _, L, G, _ = _layout(H, W)
    xp = jnp.pad(x, ((0, 0), (1, 1), (1, 1), (0, 0))).reshape(N, L, C)
    return jnp.pad(xp, ((0, 0), (G, G), (0, 0)))


def guarded_to_nhwc(xg, H, W):
    N, _, C = xg.shape
    Hp, Wp, L, G, _ = _layout(H, W)
    return xg[:, G:G + L, :].reshape(N, Hp, Wp, C)[:, 1:1 + H, 1:1 + W, :]


def interior_mask(H, W):
    # 1.0 on real pixel positions, 0.0 on the spatial zero-pad border.
    _, _, L, _, _ = _layout(H, W)
    m = jnp.pad(jnp.ones((H, W), jnp.float32), ((1, 1), (1, 1)))
    return m.reshape(1, L, 1)


# ------------------------------- Pallas kernels ------------------------------ #

def _conv3x3_kernel(*refs, Wp, L, G, relu, has_residual):
    # Fused 3x3 conv (9 shift-matmul taps) + folded-BN bias (+ residual)(+ ReLU)
    if has_residual:
        x_ref, w_ref, b_ref, m_ref, r_ref, o_ref = refs
    else:
        x_ref, w_ref, b_ref, m_ref, o_ref = refs
        r_ref = None
    cout = o_ref.shape[-1]

    acc = jnp.zeros((L, cout), jnp.float32)
    tap = 0
    for ky in range(3):
        for kx in range(3):
            off = G + (ky - 1) * Wp + (kx - 1)          # static per-tap shift
            patch = x_ref[0, off:off + L, :]            # (L, Cin) bf16, contiguous
            acc = acc + jnp.dot(patch, w_ref[tap],
                                preferred_element_type=jnp.float32)
            tap += 1

    acc = acc + b_ref[...]                              # folded BN bias (f32)
    if r_ref is not None:
        acc = acc + r_ref[0, G:G + L, :].astype(jnp.float32)
    if relu:
        acc = jnp.maximum(acc, 0.0)
    acc = acc * m_ref[0]                                # zero the pad border

    o_ref[0, :G, :] = jnp.zeros((G, cout), o_ref.dtype)        # guard rows
    o_ref[0, G + L:, :] = jnp.zeros((G, cout), o_ref.dtype)    # guard rows
    o_ref[0, G:G + L, :] = acc.astype(o_ref.dtype)


def _head_kernel(x_ref, w_ref, b_ref, o_ref, *, inv_hw):
    # global average pool + linear
    pooled = jnp.sum(x_ref[0].astype(jnp.float32), axis=0, keepdims=True) * inv_hw
    o_ref[...] = (jnp.dot(pooled, w_ref[...],
                          preferred_element_type=jnp.float32) + b_ref[...])


# ------------------------------ kernel wrappers ------------------------------ #

def conv3x3_bn_act(xg, H, W, w9, bias, residual=None, relu=True):
    # xg: (N, Lg, Cin) bf16 guarded-flat; w9: (9, Cin, Cout) bf16 (BN folded);
    # bias: (1, Cout) f32; residual (optional): (N, Lg, Cout) bf16.
    N, Lg, cin = xg.shape
    cout = w9.shape[-1]
    _, Wp, L, G, Lg2 = _layout(H, W)
    assert Lg == Lg2
    mask = interior_mask(H, W)

    kernel = functools.partial(_conv3x3_kernel, Wp=Wp, L=L, G=G, relu=relu,
                               has_residual=residual is not None)
    in_specs = [
        pl.BlockSpec((1, Lg, cin), lambda n: (n, 0, 0)),     # one image / grid step
        pl.BlockSpec((9, cin, cout), lambda n: (0, 0, 0)),   # weights stay resident
        pl.BlockSpec((1, cout), lambda n: (0, 0)),
        pl.BlockSpec((1, L, 1), lambda n: (0, 0, 0)),
    ]
    args = [xg, w9, bias, mask]
    if residual is not None:
        in_specs.append(pl.BlockSpec((1, Lg, cout), lambda n: (n, 0, 0)))
        args.append(residual)

    return pl.pallas_call(
        kernel,
        out_shape=jax.ShapeDtypeStruct((N, Lg, cout), ACT_DTYPE),
        grid=(N,),
        in_specs=in_specs,
        out_specs=pl.BlockSpec((1, Lg, cout), lambda n: (n, 0, 0)),
        compiler_params=pltpu.CompilerParams(
            dimension_semantics=("parallel",),        # megacore sharding on v7x
            vmem_limit_bytes=_VMEM_LIMIT),
    )(*args)


def head_pool_linear(x3, w, b):
    # x3: (N, H*W, C) bf16; w: (C, num_classes) f32; b: (1, num_classes) f32
    N, HW, C = x3.shape
    ncls = w.shape[1]
    kernel = functools.partial(_head_kernel, inv_hw=1.0 / HW)
    return pl.pallas_call(
        kernel,
        out_shape=jax.ShapeDtypeStruct((N, ncls), jnp.float32),
        grid=(N,),
        in_specs=[pl.BlockSpec((1, HW, C), lambda n: (n, 0, 0)),
                  pl.BlockSpec((C, ncls), lambda n: (0, 0)),
                  pl.BlockSpec((1, ncls), lambda n: (0, 0))],
        out_specs=pl.BlockSpec((1, ncls), lambda n: (n, 0)),
        compiler_params=pltpu.CompilerParams(
            dimension_semantics=("parallel",),
            vmem_limit_bytes=_VMEM_LIMIT),
    )(x3, w, b)


# ------------------------------- model glue ---------------------------------- #

def basic_block(xg, H, W, bp):
    stride, in_planes, planes = bp["stride"], bp["in_planes"], bp["planes"]

    # conv1 + BN + ReLU (stride handled by subsampling the stride-1 result)
    y = conv3x3_bn_act(xg, H, W, bp["w1"], bp["b1"], relu=True)
    if stride != 1:
        y = nhwc_to_guarded(guarded_to_nhwc(y, H, W)[:, ::stride, ::stride, :])
    newH, newW = -(-H // stride), -(-W // stride)

    # option-'A' shortcut: spatial subsample + planes//4 zero channels each side
    if stride != 1 or in_planes != planes:
        sc = guarded_to_nhwc(xg, H, W)[:, ::stride, ::stride, :in_planes]
        p = planes // 4
        sc = jnp.pad(sc, ((0, 0), (0, 0), (0, 0), (p, LANE - p - in_planes)))
        sc = nhwc_to_guarded(sc)
    else:
        sc = xg

    # conv2 + BN + residual + ReLU fused in one kernel
    out = conv3x3_bn_act(y, newH, newW, bp["w2"], bp["b2"], residual=sc, relu=True)
    return out, newH, newW


def resnet_forward(params, x_nchw):
    # NCHW -> NHWC -> bf16 -> channel pad -> guarded flat layout
    x = jnp.transpose(x_nchw, (0, 2, 3, 1)).astype(ACT_DTYPE)
    N, H, W, C = x.shape
    x = jnp.pad(x, ((0, 0), (0, 0), (0, 0), (0, STEM_CIN - C)))
    xg = nhwc_to_guarded(x)

    out = conv3x3_bn_act(xg, H, W, params["conv1_w"], params["conv1_b"], relu=True)
    curH, curW = H, W
    for blocks in params["layers"]:
        for bp in blocks:
            out, curH, curW = basic_block(out, curH, curW, bp)

    feats = guarded_to_nhwc(out, curH, curW).reshape(N, curH * curW, LANE)
    return head_pool_linear(feats, params["lin_w"], params["lin_b"])


# ------------------------------ parameter init ------------------------------- #

def init_params(key, num_blocks=(1, 1, 1), num_classes=10, width_mul=1):
    assert 64 * width_mul <= LANE
    keys = iter(jax.random.split(key, 1024))

    def conv_bn(cout, cin, cin_pad):
        # conv weight + BN params, with BN scale folded into the weight at init
        w = 0.1 * jax.random.normal(next(keys), (cout, cin, 3, 3), jnp.float32)
        gamma = 1.0 + 0.1 * jax.random.normal(next(keys), (cout,), jnp.float32)
        beta = 0.1 * jax.random.normal(next(keys), (cout,), jnp.float32)
        mean = 0.1 * jax.random.normal(next(keys), (cout,), jnp.float32)
        var = 0.5 + jnp.abs(jax.random.normal(next(keys), (cout,), jnp.float32))
        scale = gamma / jnp.sqrt(var + EPS)
        bias = beta - mean * scale
        # (cout,cin,ky,kx) -> (ky,kx,cin,cout), fold scale, pad cin/cout
        w_t = jnp.transpose(w, (2, 3, 1, 0)) * scale
        w_t = jnp.pad(w_t, ((0, 0), (0, 0), (0, cin_pad - cin), (0, LANE - cout)))
        w9 = w_t.reshape(9, cin_pad, LANE).astype(ACT_DTYPE)
        b = jnp.pad(bias, (0, LANE - cout)).reshape(1, LANE).astype(jnp.float32)
        return w9, b

    params = {}
    c1 = 16 * width_mul
    params["conv1_w"], params["conv1_b"] = conv_bn(c1, 3, STEM_CIN)

    in_planes = c1
    layers = []
    for planes_base, nb, stride0 in zip((16, 32, 64), num_blocks, (1, 2, 2)):
        planes = planes_base * width_mul
        blocks = []
        for s in [stride0] + [1] * (nb - 1):
            bp = {"stride": s, "in_planes": in_planes, "planes": planes}
            bp["w1"], bp["b1"] = conv_bn(planes, in_planes, LANE)
            bp["w2"], bp["b2"] = conv_bn(planes, planes, LANE)
            blocks.append(bp)
            in_planes = planes
        layers.append(blocks)
    params["layers"] = layers

    c_last = 64 * width_mul
    lw = 0.1 * jax.random.normal(next(keys), (num_classes, c_last), jnp.float32)
    lb = 0.1 * jax.random.normal(next(keys), (num_classes,), jnp.float32)
    params["lin_w"] = jnp.pad(jnp.transpose(lw), ((0, LANE - c_last), (0, 0)))
    params["lin_b"] = lb.reshape(1, num_classes)
    return params


# ----------------------------------- main ------------------------------------ #

if __name__ == "__main__":
    key = jax.random.PRNGKey(0)
    kp, kx = jax.random.split(key)
    # ResNet(BasicBlock, num_blocks=[1,1,1], num_classes=10, option='A')
    params = init_params(kp, num_blocks=(1, 1, 1), num_classes=10, width_mul=1)
    x = jax.random.normal(kx, (2, 3, 16, 16), jnp.float32)   # NCHW, small spatial
    logits = resnet_forward(params, x)
    jax.block_until_ready(logits)
    assert logits.shape == (2, 10) and logits.dtype == jnp.float32
    print("KERNEL_OK")
</pallas_src>

<mosaic_0001>
module attributes {stable_mosaic.version = 11 : i64} {
  func.func @_conv3x3_kernel(%arg0: i32, %arg1: memref<1x362x8xbf16, #tpu.memory_space<vmem>>, %arg2: memref<9x8x128xbf16, #tpu.memory_space<vmem>>, %arg3: memref<1x128xf32, #tpu.memory_space<vmem>>, %arg4: memref<1x324x1xf32, #tpu.memory_space<vmem>>, %arg5: memref<1x362x128xbf16, #tpu.memory_space<vmem>>) attributes {dimension_semantics = [#tpu.dimension_semantics<parallel>], iteration_bounds = array<i64: 2>, scalar_prefetch = 0 : i64, scratch_operands = 0 : i64, tpu.core_type = #tpu.core_type<tc>, window_params = [{transform_indices = @transform_0, window_bounds = array<i64: 1, 362, 8>}, {pipeline_mode = #tpu.pipeline_mode<synchronous>, transform_indices = @transform_1, window_bounds = array<i64: 9, 8, 128>}, {pipeline_mode = #tpu.pipeline_mode<synchronous>, transform_indices = @transform_2, window_bounds = array<i64: 1, 128>}, {pipeline_mode = #tpu.pipeline_mode<synchronous>, transform_indices = @transform_3, window_bounds = array<i64: 1, 324, 1>}, {transform_indices = @transform_4, window_bounds = array<i64: 1, 362, 128>}]} {
    %cst = arith.constant 0.000000e+00 : f32
    %0 = vector.broadcast %cst : f32 to vector<324x128xf32>
    %c0 = arith.constant 0 : index
    %c0_0 = arith.constant 0 : index
    %c0_1 = arith.constant 0 : index
    %1 = vector.load %arg1[%c0, %c0_0, %c0_1] : memref<1x362x8xbf16, #tpu.memory_space<vmem>>, vector<1x324x8xbf16>
    %2 = vector.shape_cast %1 : vector<1x324x8xbf16> to vector<324x8xbf16>
    %c0_2 = arith.constant 0 : index
    %c0_3 = arith.constant 0 : index
    %c0_4 = arith.constant 0 : index
    %3 = vector.load %arg2[%c0_2, %c0_3, %c0_4] : memref<9x8x128xbf16, #tpu.memory_space<vmem>>, vector<1x8x128xbf16>
    %4 = vector.shape_cast %3 : vector<1x8x128xbf16> to vector<8x128xbf16>
    %cst_5 = arith.constant dense<0.000000e+00> : vector<324x128xf32>
    %5 = tpu.matmul %2, %4, %cst_5 {dimension_numbers = #tpu.dot_dimension_numbers<[1], [0], [0], [1], [0, 0, 1, 1], [], []>} : vector<324x8xbf16>, vector<8x128xbf16>, vector<324x128xf32> -> vector<324x128xf32>
    %6 = arith.addf %0, %5 : vector<324x128xf32>
    %c0_6 = arith.constant 0 : index
    %c1 = arith.constant 1 : index
    %c0_7 = arith.constant 0 : index
    %7 = vector.load %arg1[%c0_6, %c1, %c0_7] : memref<1x362x8xbf16, #tpu.memory_space<vmem>>, vector<1x324x8xbf16>
    %8 = vector.shape_cast %7 : vector<1x324x8xbf16> to vector<324x8xbf16>
    %c1_8 = arith.constant 1 : index
    %c0_9 = arith.constant 0 : index
    %c0_10 = arith.constant 0 : index
    %9 = vector.load %arg2[%c1_8, %c0_9, %c0_10] : memref<9x8x128xbf16, #tpu.memory_space<vmem>>, vector<1x8x128xbf16>
    %10 = vector.shape_cast %9 : vector<1x8x128xbf16> to vector<8x128xbf16>
    %cst_11 = arith.constant dense<0.000000e+00> : vector<324x128xf32>
    %11 = tpu.matmul %8, %10, %cst_11 {dimension_numbers = #tpu.dot_dimension_numbers<[1], [0], [0], [1], [0, 0, 1, 1], [], []>} : vector<324x8xbf16>, vector<8x128xbf16>, vector<324x128xf32> -> vector<324x128xf32>
    %12 = arith.addf %6, %11 : vector<324x128xf32>
    %c0_12 = arith.constant 0 : index
    %c2 = arith.constant 2 : index
    %c0_13 = arith.constant 0 : index
    %13 = vector.load %arg1[%c0_12, %c2, %c0_13] : memref<1x362x8xbf16, #tpu.memory_space<vmem>>, vector<1x324x8xbf16>
    %14 = vector.shape_cast %13 : vector<1x324x8xbf16> to vector<324x8xbf16>
    %c2_14 = arith.constant 2 : index
    %c0_15 = arith.constant 0 : index
    %c0_16 = arith.constant 0 : index
    %15 = vector.load %arg2[%c2_14, %c0_15, %c0_16] : memref<9x8x128xbf16, #tpu.memory_space<vmem>>, vector<1x8x128xbf16>
    %16 = vector.shape_cast %15 : vector<1x8x128xbf16> to vector<8x128xbf16>
    %cst_17 = arith.constant dense<0.000000e+00> : vector<324x128xf32>
    %17 = tpu.matmul %14, %16, %cst_17 {dimension_numbers = #tpu.dot_dimension_numbers<[1], [0], [0], [1], [0, 0, 1, 1], [], []>} : vector<324x8xbf16>, vector<8x128xbf16>, vector<324x128xf32> -> vector<324x128xf32>
    %18 = arith.addf %12, %17 : vector<324x128xf32>
    %c0_18 = arith.constant 0 : index
    %c18 = arith.constant 18 : index
    %c0_19 = arith.constant 0 : index
    %19 = vector.load %arg1[%c0_18, %c18, %c0_19] : memref<1x362x8xbf16, #tpu.memory_space<vmem>>, vector<1x324x8xbf16>
    %20 = vector.shape_cast %19 : vector<1x324x8xbf16> to vector<324x8xbf16>
    %c3 = arith.constant 3 : index
    %c0_20 = arith.constant 0 : index
    %c0_21 = arith.constant 0 : index
    %21 = vector.load %arg2[%c3, %c0_20, %c0_21] : memref<9x8x128xbf16, #tpu.memory_space<vmem>>, vector<1x8x128xbf16>
    %22 = vector.shape_cast %21 : vector<1x8x128xbf16> to vector<8x128xbf16>
    %cst_22 = arith.constant dense<0.000000e+00> : vector<324x128xf32>
    %23 = tpu.matmul %20, %22, %cst_22 {dimension_numbers = #tpu.dot_dimension_numbers<[1], [0], [0], [1], [0, 0, 1, 1], [], []>} : vector<324x8xbf16>, vector<8x128xbf16>, vector<324x128xf32> -> vector<324x128xf32>
    %24 = arith.addf %18, %23 : vector<324x128xf32>
    %c0_23 = arith.constant 0 : index
    %c19 = arith.constant 19 : index
    %c0_24 = arith.constant 0 : index
    %25 = vector.load %arg1[%c0_23, %c19, %c0_24] : memref<1x362x8xbf16, #tpu.memory_space<vmem>>, vector<1x324x8xbf16>
    %26 = vector.shape_cast %25 : vector<1x324x8xbf16> to vector<324x8xbf16>
    %c4 = arith.constant 4 : index
    %c0_25 = arith.constant 0 : index
    %c0_26 = arith.constant 0 : index
    %27 = vector.load %arg2[%c4, %c0_25, %c0_26] : memref<9x8x128xbf16, #tpu.memory_space<vmem>>, vector<1x8x128xbf16>
    %28 = vector.shape_cast %27 : vector<1x8x128xbf16> to vector<8x128xbf16>
    %cst_27 = arith.constant dense<0.000000e+00> : vector<324x128xf32>
    %29 = tpu.matmul %26, %28, %cst_27 {dimension_numbers = #tpu.dot_dimension_numbers<[1], [0], [0], [1], [0, 0, 1, 1], [], []>} : vector<324x8xbf16>, vector<8x128xbf16>, vector<324x128xf32> -> vector<324x128xf32>
    %30 = arith.addf %24, %29 : vector<324x128xf32>
    %c0_28 = arith.constant 0 : index
    %c20 = arith.constant 20 : index
    %c0_29 = arith.constant 0 : index
    %31 = vector.load %arg1[%c0_28, %c20, %c0_29] : memref<1x362x8xbf16, #tpu.memory_space<vmem>>, vector<1x324x8xbf16>
    %32 = vector.shape_cast %31 : vector<1x324x8xbf16> to vector<324x8xbf16>
    %c5 = arith.constant 5 : index
    %c0_30 = arith.constant 0 : index
    %c0_31 = arith.constant 0 : index
    %33 = vector.load %arg2[%c5, %c0_30, %c0_31] : memref<9x8x128xbf16, #tpu.memory_space<vmem>>, vector<1x8x128xbf16>
    %34 = vector.shape_cast %33 : vector<1x8x128xbf16> to vector<8x128xbf16>
    %cst_32 = arith.constant dense<0.000000e+00> : vector<324x128xf32>
    %35 = tpu.matmul %32, %34, %cst_32 {dimension_numbers = #tpu.dot_dimension_numbers<[1], [0], [0], [1], [0, 0, 1, 1], [], []>} : vector<324x8xbf16>, vector<8x128xbf16>, vector<324x128xf32> -> vector<324x128xf32>
    %36 = arith.addf %30, %35 : vector<324x128xf32>
    %c0_33 = arith.constant 0 : index
    %c36 = arith.constant 36 : index
    %c0_34 = arith.constant 0 : index
    %37 = vector.load %arg1[%c0_33, %c36, %c0_34] : memref<1x362x8xbf16, #tpu.memory_space<vmem>>, vector<1x324x8xbf16>
    %38 = vector.shape_cast %37 : vector<1x324x8xbf16> to vector<324x8xbf16>
    %c6 = arith.constant 6 : index
    %c0_35 = arith.constant 0 : index
    %c0_36 = arith.constant 0 : index
    %39 = vector.load %arg2[%c6, %c0_35, %c0_36] : memref<9x8x128xbf16, #tpu.memory_space<vmem>>, vector<1x8x128xbf16>
    %40 = vector.shape_cast %39 : vector<1x8x128xbf16> to vector<8x128xbf16>
    %cst_37 = arith.constant dense<0.000000e+00> : vector<324x128xf32>
    %41 = tpu.matmul %38, %40, %cst_37 {dimension_numbers = #tpu.dot_dimension_numbers<[1], [0], [0], [1], [0, 0, 1, 1], [], []>} : vector<324x8xbf16>, vector<8x128xbf16>, vector<324x128xf32> -> vector<324x128xf32>
    %42 = arith.addf %36, %41 : vector<324x128xf32>
    %c0_38 = arith.constant 0 : index
    %c37 = arith.constant 37 : index
    %c0_39 = arith.constant 0 : index
    %43 = vector.load %arg1[%c0_38, %c37, %c0_39] : memref<1x362x8xbf16, #tpu.memory_space<vmem>>, vector<1x324x8xbf16>
    %44 = vector.shape_cast %43 : vector<1x324x8xbf16> to vector<324x8xbf16>
    %c7 = arith.constant 7 : index
    %c0_40 = arith.constant 0 : index
    %c0_41 = arith.constant 0 : index
    %45 = vector.load %arg2[%c7, %c0_40, %c0_41] : memref<9x8x128xbf16, #tpu.memory_space<vmem>>, vector<1x8x128xbf16>
    %46 = vector.shape_cast %45 : vector<1x8x128xbf16> to vector<8x128xbf16>
    %cst_42 = arith.constant dense<0.000000e+00> : vector<324x128xf32>
    %47 = tpu.matmul %44, %46, %cst_42 {dimension_numbers = #tpu.dot_dimension_numbers<[1], [0], [0], [1], [0, 0, 1, 1], [], []>} : vector<324x8xbf16>, vector<8x128xbf16>, vector<324x128xf32> -> vector<324x128xf32>
    %48 = arith.addf %42, %47 : vector<324x128xf32>
    %c0_43 = arith.constant 0 : index
    %c38 = arith.constant 38 : index
    %c0_44 = arith.constant 0 : index
    %49 = vector.load %arg1[%c0_43, %c38, %c0_44] : memref<1x362x8xbf16, #tpu.memory_space<vmem>>, vector<1x324x8xbf16>
    %50 = vector.shape_cast %49 : vector<1x324x8xbf16> to vector<324x8xbf16>
    %c8 = arith.constant 8 : index
    %c0_45 = arith.constant 0 : index
    %c0_46 = arith.constant 0 : index
    %51 = vector.load %arg2[%c8, %c0_45, %c0_46] : memref<9x8x128xbf16, #tpu.memory_space<vmem>>, vector<1x8x128xbf16>
    %52 = vector.shape_cast %51 : vector<1x8x128xbf16> to vector<8x128xbf16>
    %cst_47 = arith.constant dense<0.000000e+00> : vector<324x128xf32>
    %53 = tpu.matmul %50, %52, %cst_47 {dimension_numbers = #tpu.dot_dimension_numbers<[1], [0], [0], [1], [0, 0, 1, 1], [], []>} : vector<324x8xbf16>, vector<8x128xbf16>, vector<324x128xf32> -> vector<324x128xf32>
    %54 = arith.addf %48, %53 : vector<324x128xf32>
    %c0_48 = arith.constant 0 : index
    %c0_49 = arith.constant 0 : index
    %55 = vector.load %arg3[%c0_48, %c0_49] : memref<1x128xf32, #tpu.memory_space<vmem>>, vector<1x128xf32>
    %56 = vector.broadcast %55 : vector<1x128xf32> to vector<324x128xf32>
    %57 = arith.addf %54, %56 : vector<324x128xf32>
    %cst_50 = arith.constant 0.000000e+00 : f32
    %58 = vector.broadcast %cst_50 : f32 to vector<324x128xf32>
    %59 = arith.maximumf %57, %58 : vector<324x128xf32>
    %c0_51 = arith.constant 0 : index
    %c0_52 = arith.constant 0 : index
    %c0_53 = arith.constant 0 : index
    %60 = vector.load %arg4[%c0_51, %c0_52, %c0_53] : memref<1x324x1xf32, #tpu.memory_space<vmem>>, vector<1x324x1xf32>
    %61 = vector.shape_cast %60 : vector<1x324x1xf32> to vector<324x1xf32>
    %62 = vector.broadcast %61 : vector<324x1xf32> to vector<324x128xf32>
    %63 = arith.mulf %59, %62 : vector<324x128xf32>
    %cst_54 = arith.constant 0.000000e+00 : bf16
    %64 = vector.broadcast %cst_54 : bf16 to vector<19x128xbf16>
    %c0_55 = arith.constant 0 : index
    %c0_56 = arith.constant 0 : index
    %c0_57 = arith.constant 0 : index
    %65 = vector.load %arg5[%c0_55, %c0_56, %c0_57] : memref<1x362x128xbf16, #tpu.memory_space<vmem>>, vector<1x19x128xbf16>
    %66 = vector.shape_cast %65 : vector<1x19x128xbf16> to vector<19x128xbf16>
    %67 = vector.shape_cast %64 : vector<19x128xbf16> to vector<1x19x128xbf16>
    tpu.vector_store %arg5[%c0_55, %c0_56, %c0_57], %67 {strides = array<i32>} : memref<1x362x128xbf16, #tpu.memory_space<vmem>>, vector<1x19x128xbf16>,
    %cst_58 = arith.constant 0.000000e+00 : bf16
    %68 = vector.broadcast %cst_58 : bf16 to vector<19x128xbf16>
    %c0_59 = arith.constant 0 : index
    %c343 = arith.constant 343 : index
    %c0_60 = arith.constant 0 : index
    %69 = vector.load %arg5[%c0_59, %c343, %c0_60] : memref<1x362x128xbf16, #tpu.memory_space<vmem>>, vector<1x19x128xbf16>
    %70 = vector.shape_cast %69 : vector<1x19x128xbf16> to vector<19x128xbf16>
    %71 = vector.shape_cast %68 : vector<19x128xbf16> to vector<1x19x128xbf16>
    tpu.vector_store %arg5[%c0_59, %c343, %c0_60], %71 {strides = array<i32>} : memref<1x362x128xbf16, #tpu.memory_space<vmem>>, vector<1x19x128xbf16>,
    %72 = arith.truncf %63 : vector<324x128xf32> to vector<324x128xbf16>
    %c0_61 = arith.constant 0 : index
    %c19_62 = arith.constant 19 : index
    %c0_63 = arith.constant 0 : index
    %73 = vector.load %arg5[%c0_61, %c19_62, %c0_63] : memref<1x362x128xbf16, #tpu.memory_space<vmem>>, vector<1x324x128xbf16>
    %74 = vector.shape_cast %73 : vector<1x324x128xbf16> to vector<324x128xbf16>
    %75 = vector.shape_cast %72 : vector<324x128xbf16> to vector<1x324x128xbf16>
    tpu.vector_store %arg5[%c0_61, %c19_62, %c0_63], %75 {strides = array<i32>} : memref<1x362x128xbf16, #tpu.memory_space<vmem>>, vector<1x324x128xbf16>,
    return
  }
  func.func @transform_0(%arg0: i32) -> (i32, i32, i32) {
    %c0_i32 = arith.constant 0 : i32
    %c0_i32_0 = arith.constant 0 : i32
    %c0_i32_1 = arith.constant 0 : i32
    return %arg0, %c0_i32, %c0_i32_0 : i32, i32, i32
  }
  func.func @transform_1(%arg0: i32) -> (i32, i32, i32) {
    %c0_i32 = arith.constant 0 : i32
    %c0_i32_0 = arith.constant 0 : i32
    %c0_i32_1 = arith.constant 0 : i32
    %c0_i32_2 = arith.constant 0 : i32
    return %c0_i32, %c0_i32_0, %c0_i32_1 : i32, i32, i32
  }
  func.func @transform_2(%arg0: i32) -> (i32, i32) {
    %c0_i32 = arith.constant 0 : i32
    %c0_i32_0 = arith.constant 0 : i32
    %c0_i32_1 = arith.constant 0 : i32
    return %c0_i32, %c0_i32_0 : i32, i32
  }
  func.func @transform_3(%arg0: i32) -> (i32, i32, i32) {
    %c0_i32 = arith.constant 0 : i32
    %c0_i32_0 = arith.constant 0 : i32
    %c0_i32_1 = arith.constant 0 : i32
    %c0_i32_2 = arith.constant 0 : i32
    return %c0_i32, %c0_i32_0, %c0_i32_1 : i32, i32, i32
  }
  func.func @transform_4(%arg0: i32) -> (i32, i32, i32) {
    %c0_i32 = arith.constant 0 : i32
    %c0_i32_0 = arith.constant 0 : i32
    %c0_i32_1 = arith.constant 0 : i32
    return %arg0, %c0_i32, %c0_i32_0 : i32, i32, i32
  }
}

</mosaic_0001>

<bundles_post_ra>
// kernel: tpu_custom_call.1
= control target key start
LH: loop header
LB: loop body
LE: loop exit
PB: predicated region body
PF: predicated region fallthrough
CT: control target
= control target key end

     0   :  { %s5119_s15 = smov 0   ;;  %s6985_s0 = inlined_call_operand.vmem [shape: bf16[2,362,8], index: 0, kind: input, shape index: {}]   ;;  %s6986_s1 = inlined_call_operand.vmem [shape: bf16[9,8,128], index: 1, kind: input, shape index: {}]   ;;  %s6987_s2 = inlined_call_operand.vmem [shape: f32[1,128], index: 2, kind: input, shape index: {}]   ;;  %s6988_s3 = inlined_call_operand.vmem [shape: f32[1,324,1], index: 3, kind: input, shape index: {}]   ;;  %s6989_s4 = inlined_call_operand.vmem [shape: bf16[2,362,128], index: 4, kind: output, shape index: {}]  }
   0x1 LB: > { %s4437_s16 = sadd.s32 4294967295, %s5091_s15   ;;  %p4441_p0 = scmp.ge.s32.totalorder %s5091_s15, 1  ;;  %s5091_s15 = sphi %s5119_s15, %s14_s15  }
   0x2   : > { %p162_p1 = scmp.lt.s32.totalorder %s5091_s15, 3 }
   0x4   : > { %p163_p2 = pnand %p4441_p0, %p162_p1 }
   0x6   : > { %166 = sbr.rel (%p163_p2) target bundleno = 932 (0x3a4), region = 36 }
   0xb   : > { %v4444_v0 = vld [vmem:[%s6986_s1 + $0x4] sm:$0xf]  ;;  %vm579_vm0 = vcmask 1043456   ;;  %p188_p3 = scmp.lt.s32.totalorder %s4437_s16, 1  ;;  %v4563_v2 = vld [vmem:[%s6986_s1 + $0x8] sm:$0xf] }
   0xc   : > { %v581_v1 = vsel %vm579_vm0, %v4444_v0, 0  ;;  %v240_v3 = vld [vmem:[%s6986_s1] sm:$0xf]  ;;  %v970_v4 = vsel %vm579_vm0, %v4563_v2, 0  ;;  %v4683_v6 = vld [vmem:[%s6986_s1 + $0x10] sm:$0xf] }
   0xd   : > { %5040 = vmatpush.bf16.msra.mxu1 %v581_v1  ;;  %5041 = vmatpush.bf16.msra.mxu2 %v581_v1  ;;  %s7063_s16 = smov (!%p188_p3, %s4437_s16), 1  ;;  %v743_v5 = vsel %vm579_vm0, %v240_v3, 0  ;;  %v1792_v7 = vsel %vm579_vm0, %v4683_v6, 0  ;;  %vm347_vm1 = vsmask.f32 7424  ;;  %vm515_vm2 = vcmask 64512  }
   0xe   : > { %590 = vmatpush.bf16.msra.mxu0 %v581_v1  ;;  %s5043_s25 = smul.u32 184, %s7063_s16  ;;  %5042 = vmatpush.bf16.msra.mxu3 %v581_v1  ;;  %v4585_v1 = vld [vmem:[%s6986_s1 + $0xc] sm:$0xf]  ;;  %vm864_vm3 = vcmask 1046528   ;;  %vm1539_vm4 = vsmask.f32 6400 }
   0xf   : > { %vm2772_vm5 = vsmask.f32 5376  ;;  %vm1954_vm6 = vcmask 1045504   ;;  %vm3187_vm7 = vcmask 1044480   ;;  %vm3824_vm8 = vcmask 1041408  }
  0x10   : > { %s5151_s28 = scalar_lea.vmem %s6985_s0, %s5043_s25  ;;  %s5859_s17 = scalar_lea.vmem %s6989_s4, %s5043_s25  ;;  %vm3825_vm9 = vsmask.f32 1280  ;;  %vm4331_vm11 = vcmask 1043457   ;;  %vm4332_vm12 = vsmask.f32 7942 }
  0x11   : > { %979 = vmatpush.bf16.msrb.mxu2 %v970_v4  ;;  %752 = vmatpush.bf16.msrb.mxu1 %v743_v5  ;;  %v5154_v8 = vld [vmem:[%s5151_s28 + $0x30] sm:$0xff]  ;;  %v5157_v9 = vld [vmem:[%s5151_s28 + $0x38] sm:$0xff]  ;;  %v5160_v10 = vld [vmem:[%s5151_s28 + $0x60] sm:$0xff]  ;;  %v1377_v5 = vsel %vm579_vm0, %v4585_v1, 0  ;;  %vm3880_vm14 = vsmask.f32 5392 }
  0x12   : > { %1801 = vmatpush.bf16.msrb.mxu0 %v1792_v7  ;;  %v5163_v11 = vld [vmem:[%s5151_s28 + $0x68] sm:$0xff]  ;;  %v5166_v12 = vld [vmem:[%s5151_s28] sm:$0xff]   ;;  %v396_v14 = vshll.u32 %v5154_v8, 16  ;;  %v400_v15 = vshrl.u32 %v5154_v8, 16  ;;  %v404_v16 = vshll.u32 %v5157_v9, 16  ;;  %v444_v17 = vshll.u32 %v5160_v10, 16  ;;  %1386 = vmatpush.bf16.msrb.mxu3 %v1377_v5  ;;  %vm3826_vm10 = vmand %vm3824_vm8, %vm3825_vm9 }
  0x13   : > { %v5169_v13 = vld [vmem:[%s5151_s28 + $0x8] sm:$0xff]  ;;  %v448_v18 = vshrl.u32 %v5160_v10, 16  ;;  %v452_v19 = vshll.u32 %v5163_v11, 16  ;;  %v349_v20 = vshrl.u32 %v5166_v12, 16  ;;  %v351_v21 = vshll.u32 %v5166_v12, 16  ;;  %v5192_v35 = vld [vmem:[%s5151_s28 + $0x40] sm:$0xff]  ;;  %vm6223_vm13 = vmand %vm4331_vm11, %vm4332_vm12 }
  0x14   : > { %v5179_v22 = vrot.slane %v396_v14, 1  ;;  %v406_v23 = vrot.slane %v404_v16, 1  ;;  %v5181_v24 = vrot.slane %v444_v17, 1  ;;  %v356_v25 = vshll.u32 %v5169_v13, 16  ;;  %v5196_v36 = vld [vmem:[%s5151_s28 + $0x70] sm:$0xff]  ;;  %v4973_v38 = vld [vmem:[%s5151_s28 + $0x98] sm:$0xff]  ;;  %vm6256_vm15 = vmor %vm3825_vm9, %vm3880_vm14 }
  0x15   : > { %v454_v26 = vrot.slane %v452_v19, 1  ;;  %v353_v27 = vrot.slane %v351_v21, 1  ;;  %v4972_v37 = vld [vmem:[%s5151_s28 + $0x90] sm:$0xff]  ;;  %v408_v40 = vshrl.u32 %v5157_v9, 16  ;;  %v412_v41 = vshll.u32 %v5192_v35, 16  ;;  %v5220_v62 = vld [vmem:[%s5151_s28 + $0x48] sm:$0xff] }
  0x16   : > { %v402_v28 = vor.u32 %v400_v15, %v5179_v22  ;;  %v450_v29 = vor.u32 %v448_v18, %v5181_v24  ;;  %v358_v30 = vrot.slane %v356_v25, 1  ;;  %v5201_v39 = vld [vmem:[%s5151_s28 + $0x10] sm:$0xff]  ;;  %v492_v42 = vshll.u32 %v4972_v37, 16  ;;  %v241_v63 = vld [vmem:[%s5151_s28 + $0xa0] sm:$0x7]  ;;  %v5225_v0 = vld [vmem:[%s5151_s28 + $0x78] sm:$0xff] }
  0x17   : > { %v354_v31 = vor.u32 %v353_v27, %v349_v20  ;;  %v456_v43 = vshrl.u32 %v5163_v11, 16  ;;  %v460_v44 = vshll.u32 %v5196_v36, 16  ;;  %v496_v45 = vshrl.u32 %v4972_v37, 16  ;;  %v5231_v4 = vld [vmem:[%s5151_s28 + $0x18] sm:$0xff] }
  0x18   : > { %v407_v32 = vsel %vm347_vm1, %v402_v28, %v406_v23  ;;  %v455_v33 = vsel %vm347_vm1, %v450_v29, %v454_v26  ;;  %v500_v46 = vshll.u32 %v4973_v38, 16  ;;  %v360_v47 = vshrl.u32 %v5169_v13, 16  ;;  %v5245_v29 = vld [vmem:[%s5151_s28 + $0x58] sm:$0xff] }
  0x19   : > { %4527 = vmatmul.msk.bf16.vlgmr.msra.gmra.mxu1 %vm515_vm2, %v407_v32  ;;  %4533 = vmatmul.msk.bf16.vlgmr.msra.gmra.mxu2 %vm515_vm2, %v455_v33  ;;  %v359_v34 = vsel %vm347_vm1, %v354_v31, %v358_v30  ;;  %v364_v48 = vshll.u32 %v5201_v39, 16  ;;  %v5209_v49 = vrot.slane %v492_v42, 1  ;;  %v410_v52 = vor.u32 %v408_v40, %v406_v23  ;;  %v5259_v40 = vld [vmem:[%s5151_s28 + $0x80] sm:$0xff] }
  0x1a   : > { %4521 = vmatmul.msk.bf16.vlgmr.msra.gmra.mxu0 %vm515_vm2, %v359_v34  ;;  %v502_v50 = vrot.slane %v500_v46, 1  ;;  %v414_v53 = vrot.slane %v412_v41, 1  ;;  %v458_v54 = vor.u32 %v456_v43, %v454_v26  ;;  %v462_v55 = vrot.slane %v460_v44, 1  ;;  %v5263_v43 = vld [vmem:[%s5151_s28 + $0x20] sm:$0xff]  ;;  %v5266_v44 = vld [vmem:[%s5151_s28 + $0x88] sm:$0xff] }
  0x1b   : > { %v498_v51 = vor.u32 %v496_v45, %v5209_v49  ;;  %v362_v56 = vor.u32 %v360_v47, %v358_v30  ;;  %v366_v57 = vrot.slane %v364_v48, 1  ;;  %v325_v2 = vunpack.c.l.b16 %v241_v63 }
  0x1c   : > { %v415_v59 = vsel %vm347_vm1, %v410_v52, %v414_v53  ;;  %v463_v60 = vsel %vm347_vm1, %v458_v54, %v462_v55  ;;  %v504_v3 = vshrl.u32 %v4973_v38, 16  ;;  %v416_v7 = vshrl.u32 %v5192_v35, 16  ;;  %v5255_v38 = vld [vmem:[%s5151_s28 + $0x50] sm:$0xff]  ;;  %v5274_v52 = vld [vmem:[%s5151_s28 + $0x28] sm:$0xff] }
  0x1d   : > { %v503_v58 = vsel %vm347_vm1, %v498_v51, %v502_v50  ;;  %v367_v61 = vsel %vm347_vm1, %v362_v56, %v366_v57  ;;  %v5234_v6 = vpack.c.b16 %v325_v2, %v325_v2  ;;  %v420_v14 = vshll.u32 %v5220_v62, 16 }
  0x1e   : > { %4539 = vmatmul.msk.bf16.vlgmr.msra.gmra.mxu3 %vm515_vm2, %v503_v58  ;;  %v464_v15 = vshrl.u32 %v5196_v36, 16  ;;  %v468_v16 = vshll.u32 %v5225_v0, 16  ;;  %v506_v17 = vor.u32 %v504_v3, %v502_v50  ;;  %v368_v19 = vshrl.u32 %v5201_v39, 16 }
  0x1f   : > { %v508_v18 = vshll.u32 %v5234_v6, 16  ;;  %v372_v20 = vshll.u32 %v5231_v4, 16  ;;  %v418_v23 = vor.u32 %v416_v7, %v414_v53  ;;  %v422_v25 = vrot.slane %v420_v14, 1 }
  0x20   : > { %v466_v26 = vor.u32 %v464_v15, %v462_v55  ;;  %v470_v27 = vrot.slane %v468_v16, 1  ;;  %v370_v30 = vor.u32 %v368_v19, %v366_v57  ;;  %v436_v34 = vshll.u32 %v5245_v29, 16 }
  0x21   : > { %v510_v21 = vrot.slane %v508_v18, 1  ;;  %v374_v31 = vrot.slane %v372_v20, 1  ;;  %v423_v32 = vsel %vm347_vm1, %v418_v23, %v422_v25  ;;  %v440_v42 = vshrl.u32 %v5245_v29, 16  ;;  %v5299_v23 = vld [vmem:[%s5151_s28 + $0xc] sm:$0xf] }
  0x22   : > { %v471_v33 = vsel %vm347_vm1, %v466_v26, %v470_v27  ;;  %v438_v41 = vrot.slane %v436_v34, 1  ;;  %v512_v45 = vshrl.u32 %v5234_v6, 16  ;;  %v424_v47 = vshrl.u32 %v5220_v62, 16 }
  0x23   : > { %v511_v28 = vsel %vm347_vm1, %v506_v17, %v510_v21  ;;  %v375_v37 = vsel %vm347_vm1, %v370_v30, %v374_v31  ;;  %v428_v48 = vshll.u32 %v5255_v38, 16  ;;  %v472_v50 = vshrl.u32 %v5225_v0, 16 }
  0x24   : > { %v442_v46 = vor.u32 %v440_v42, %v438_v41  ;;  %v476_v51 = vshll.u32 %v5259_v40, 16  ;;  %v376_v54 = vshrl.u32 %v5231_v4, 16  ;;  %v380_v55 = vshll.u32 %v5263_v43, 16 }
  0x25   : > { %v484_v56 = vshll.u32 %v5266_v44, 16  ;;  %v514_v57 = vor.u32 %v512_v45, %v510_v21  ;;  %v426_v58 = vor.u32 %v424_v47, %v422_v25  ;;  %v388_v63 = vshll.u32 %v5274_v52, 16  ;;  %v1126_v21 = vld [vmem:[%s5151_s28 + $0x8] sm:$0xe]  ;;  %v4974_v25 = vld [vmem:[%s5151_s28 + $0x10] sm:$0xff] }
  0x26   : > { %v5278_v53 = vsel %vm347_vm1, %v442_v46, %v5181_v24  ;;  %v378_v1 = vor.u32 %v376_v54, %v374_v31  ;;  %v382_v2 = vrot.slane %v380_v55, 1  ;;  %v488_v24 = vshrl.u32 %v5266_v44, 16  ;;  %v4975_v54 = vld [vmem:[%s5151_s28 + $0x18] sm:$0xff] }
  0x27   : > { %v486_v3 = vrot.slane %v484_v56, 1  ;;  %v390_v14 = vrot.slane %v388_v63, 1  ;;  %v392_v16 = vshrl.u32 %v5274_v52, 16  ;;  %v1210_v26 = vunpack.c.l.b16 %v1126_v21  ;;  %v4976_v63 = vld [vmem:[%s5151_s28 + $0x20] sm:$0xff] }
  0x28   : > { %v383_v17 = vsel %vm347_vm1, %v378_v1, %v382_v2  ;;  %v432_v30 = vshrl.u32 %v5255_v38, 16  ;;  %v480_v31 = vshrl.u32 %v5259_v40, 16  ;;  %v5038_v1 = vld [vmem:[%s5151_s28] sm:$0xe] }
  0x29   : > { %4528 = vmatmul.msk.bf16.gmra.mxu1 %vm515_vm2, %v415_v59  ;;  %4534 = vmatmul.msk.bf16.gmra.mxu2 %vm515_vm2, %v463_v60  ;;  %v430_v59 = vrot.slane %v428_v48, 1  ;;  %v474_v60 = vor.u32 %v472_v50, %v470_v27  ;;  %v490_v15 = vor.u32 %v488_v24, %v486_v3  ;;  %v394_v19 = vor.u32 %v392_v16, %v390_v14  ;;  %v4727_v48 = vld [vmem:[%s6986_s1 + $0x18] sm:$0xf] }
  0x2a   : > { %4522 = vmatmul.msk.bf16.gmra.mxu0 %vm515_vm2, %v367_v61  ;;  %v478_v61 = vrot.slane %v476_v51, 1  ;;  %v6990_v27 = vunpack.c.l.b16 %v5299_v23  ;;  %v2467_v50 = vsel %vm579_vm0, %v4727_v48, 0  ;;  %v4705_v51 = vld [vmem:[%s6986_s1 + $0x14] sm:$0xf]  ;;  %v1549_v24 = vshrl.u32 %v4974_v25, 16 }
  0x2b   : > { %v431_v5 = vsel %vm347_vm1, %v426_v58, %v430_v59  ;;  %v495_v18 = vsel %vm347_vm1, %v490_v15, %v5209_v49  ;;  %v399_v20 = vsel %vm347_vm1, %v394_v19, %v5179_v22  ;;  %v434_v34 = vor.u32 %v432_v30, %v430_v59  ;;  %2476 = vmatpush.bf16.msra.mxu2 %v2467_v50  ;;  %v4978_v48 = vld [vmem:[%s5151_s28 + $0x30] sm:$0xff] }
  0x2c   : > { %v479_v7 = vsel %vm347_vm1, %v474_v60, %v478_v61  ;;  %v1251_v49 = vpack.c.b16 %v6990_v27, %v1210_v26  ;;  %v2060_v56 = vsel %vm579_vm0, %v4705_v51, 0  ;;  %v1275_v59 = vrot.slane %v4975_v54, 1 }
  0x2d   : > { %v439_v45 = vsel %vm347_vm1, %v434_v34, %v438_v41  ;;  %v4829_v41 = vld [vmem:[%s6986_s1 + $0x1c] sm:$0xf]  ;;  %2069 = vmatpush.bf16.msra.mxu1 %v2060_v56  ;;  %v1561_v30 = vshll.u32 %v4975_v54, 16  ;;  %v868_v34 = vrot.slane %v5201_v39, 1  ;;  %v1281_v51 = vrot.slane %v4978_v48, 1 }
  0x2e   : > { %4540 = vmatmul.msk.bf16.gmra.mxu3 %vm515_vm2, %v511_v28  ;;  %v1273_v28 = vrot.slane %v4974_v25, 1  ;;  %v3025_v55 = vsel %vm579_vm0, %v4829_v41, 0  ;;  %v880_v27 = vrot.slane %v5192_v35, 1 }
  0x2f   : > { %3034 = vmatpush.bf16.msra.mxu3 %v3025_v55 }
  0x30   : > { %v1276_v60 = vsel %vm864_vm3, %v1273_v28, %v1275_v59 }
  0x39   : > { %4529 = vmatmul.msk.bf16.gmra.mxu1 %vm515_vm2, %v423_v32  ;;  %4535 = vmatmul.msk.bf16.gmra.mxu2 %vm515_vm2, %v471_v33  ;;  %v384_v32 = vshrl.u32 %v5263_v43, 16  ;;  %v1272_v33 = vrot.slane %v1251_v49, 1 }
  0x3a   : > { %4523 = vmatmul.msk.bf16.gmra.mxu0 %vm515_vm2, %v375_v37  ;;  %v482_v37 = vor.u32 %v480_v31, %v478_v61  ;;  %v5037_v61 = vld [vmem:[%s5151_s28] sm:$0xf0]  ;;  %v4977_v31 = vld [vmem:[%s5151_s28 + $0x28] sm:$0xff] }
  0x3b   : > { %v1274_v22 = vsel %vm864_vm3, %v1272_v33, %v1273_v28  ;;  %v386_v42 = vor.u32 %v384_v32, %v382_v2  ;;  %v1541_v2 = vshrl.u32 %v1251_v49, 16  ;;  %v1558_v28 = vshrl.u32 %v4975_v54, 16 }
  0x3c   : > { %v487_v46 = vsel %vm347_vm1, %v482_v37, %v486_v3  ;;  %v1544_v3 = vshll.u32 %v1251_v49, 16  ;;  %v1563_v33 = vrot.slane %v1561_v30, 2  ;;  %v870_v54 = vrot.slane %v5231_v4, 1 }
  0x3d   : > { %v391_v47 = vsel %vm347_vm1, %v386_v42, %v390_v14  ;;  %v5039_v14 = vor.u32 %v5038_v1, %v5037_v61  ;;  %v1543_v15 = vrot.slane %v1541_v2, 1  ;;  %v1560_v32 = vrot.slane %v1558_v28, 1  ;;  %v4979_v2 = vld [vmem:[%s5151_s28 + $0x38] sm:$0xff]  ;;  %v4980_v28 = vld [vmem:[%s5151_s28 + $0x40] sm:$0xff] }
  0x3e   : > { %4541 = vmatmul.msk.bf16.gmra.mxu3 %vm515_vm2, %v514_v57  ;;  %v4931_v57 = vld [vmem:[%s6986_s1 + $0x20] sm:$0xf]  ;;  %v1546_v16 = vrot.slane %v1544_v3, 2  ;;  %v1579_v61 = vshll.u32 %v4977_v31, 16  ;;  %vm3830_vm1 = vcmask 1043459  }
  0x3f   : > { %v3293_v58 = vsel %vm579_vm0, %v4931_v57, 0  ;;  %v865_v21 = vrot.slane %v5039_v14, 1  ;;  %v1564_v42 = vor.u32 %v1563_v33, %v1560_v32  ;;  %v872_v14 = vrot.slane %v5263_v43, 1 }
  0x40   : > { %3302 = vmatpush.bf16.msra.mxu0 %v3293_v58 }
  0x49   : > { %4530 = vmatmul.msk.bf16.gmra.mxu1 %vm515_vm2, %v431_v5  ;;  %4536 = vmatmul.msk.bf16.gmra.mxu2 %vm515_vm2, %v479_v7  ;;  %v1552_v5 = vshll.u32 %v4974_v25, 16  ;;  %v1277_v7 = vrot.slane %v4976_v63, 1 }
  0x4a   : > { %4524 = vmatmul.msk.bf16.gmra.mxu0 %vm515_vm2, %v383_v17  ;;  %v1551_v17 = vrot.slane %v1549_v24, 1 }
  0x4b   : > { %v1554_v19 = vrot.slane %v1552_v5, 2  ;;  %v1581_v5 = vrot.slane %v1579_v61, 2 }
  0x4d   : > { %v1555_v26 = vor.u32 %v1554_v19, %v1551_v17  ;;  %v873_v19 = vsel %vm864_vm3, %v870_v54, %v872_v14 }
  0x4e   : > { %4662 = vmatmul.msk.bf16.vlgmr.msrb.gmra.mxu3 %vm515_vm2, %v1274_v22  ;;  %v1279_v22 = vrot.slane %v4977_v31, 1 }
  0x50   : > { %v1280_v37 = vsel %vm864_vm3, %v1277_v7, %v1279_v22  ;;  %v1282_v55 = vsel %vm864_vm3, %v1279_v22, %v1281_v51  ;;  %v1285_v22 = vrot.slane %v4980_v28, 1 }
  0x59   : > { %4531 = vmatmul.msk.bf16.gmra.mxu1 %vm515_vm2, %v439_v45  ;;  %4537 = vmatmul.msk.bf16.gmra.mxu2 %vm515_vm2, %v487_v46  ;;  %v1565_v45 = vsel %vm1539_vm4, %v1555_v26, %v1564_v42  ;;  %v1567_v46 = vshrl.u32 %v4976_v63, 16 }
  0x5a   : > { %4525 = vmatmul.msk.bf16.gmra.mxu0 %vm515_vm2, %v391_v47  ;;  %v1570_v47 = vshll.u32 %v4976_v63, 16 }
  0x5b   : > { %v1569_v50 = vrot.slane %v1567_v46, 1 }
  0x5c   : > { %v1572_v41 = vrot.slane %v1570_v47, 2 }
  0x5e   : > { %4663 = vmatmul.msk.bf16.gmra.mxu3 %vm515_vm2, %v1276_v60  ;;  %v1573_v56 = vor.u32 %v1572_v41, %v1569_v50  ;;  %v1576_v60 = vshrl.u32 %v4977_v31, 16  ;;  %v1594_v50 = vshrl.u32 %v4979_v2, 16  ;;  %v1597_v41 = vshll.u32 %v4979_v2, 16 }
  0x60   : > { %v1578_v24 = vrot.slane %v1576_v60, 1 }
  0x69   : > { %4532 = vmatmul.msk.bf16.gmra.mxu1 %vm515_vm2, %v5278_v53  ;;  %4538 = vmatmul.msk.bf16.gmra.mxu2 %vm515_vm2, %v495_v18  ;;  %v1278_v53 = vsel %vm864_vm3, %v1275_v59, %v1277_v7  ;;  %v866_v18 = vrot.slane %v5169_v13, 1  ;;  %v1574_v59 = vsel %vm1539_vm4, %v1564_v42, %v1573_v56  ;;  %v1283_v7 = vrot.slane %v4979_v2, 1 }
  0x6a   : > { %4526 = vmatmul.msk.bf16.gmra.mxu0 %vm515_vm2, %v399_v20  ;;  %v1547_v20 = vor.u32 %v1546_v16, %v1543_v15  ;;  %v1582_v15 = vor.u32 %v1581_v5, %v1578_v24 }
  0x6b   : > { %v867_v49 = vsel %vm864_vm3, %v865_v21, %v866_v18 }
  0x6c   : > { %v1556_v25 = vsel %vm1539_vm4, %v1547_v20, %v1555_v26  ;;  %v1583_v21 = vsel %vm1539_vm4, %v1573_v56, %v1582_v15  ;;  %v1585_v20 = vshrl.u32 %v4978_v48, 16  ;;  %v1588_v26 = vshll.u32 %v4978_v48, 16 }
  0x6e   : > { %4664 = vmatmul.msk.bf16.gmra.mxu3 %vm515_vm2, %v1278_v53  ;;  %v1587_v31 = vrot.slane %v1585_v20, 1  ;;  %v1590_v32 = vrot.slane %v1588_v26, 2  ;;  %v1606_v20 = vshll.u32 %v4980_v28, 16 }
  0x79   : > { %4542 = vmatmul.msk.bf16.vlgmr.msrb.gmra.mxu1 %vm515_vm2, %v5166_v12  ;;  %4564 = vmatmul.msk.bf16.vlgmr.msrb.gmra.mxu2 %vm515_vm2, %v867_v49  ;;  %v869_v12 = vsel %vm864_vm3, %v866_v18, %v868_v34 }
  0x7a   : > { %4684 = vmatmul.msk.bf16.vlgmr.msrb.gmra.mxu0 %vm515_vm2, %v1556_v25 }
  0x7e   : > { %4665 = vmatmul.msk.bf16.gmra.mxu3 %vm515_vm2, %v1280_v37  ;;  %v1591_v37 = vor.u32 %v1590_v32, %v1587_v31  ;;  %v4982_v32 = vld [vmem:[%s5151_s28 + $0x50] sm:$0xff] }
  0x80   : > { %v1592_v47 = vsel %vm1539_vm4, %v1582_v15, %v1591_v37 }
  0x89   : > { %4543 = vmatmul.msk.bf16.gmra.mxu1 %vm515_vm2, %v5169_v13  ;;  %4565 = vmatmul.msk.bf16.gmra.mxu2 %vm515_vm2, %v869_v12  ;;  %v871_v13 = vsel %vm864_vm3, %v868_v34, %v870_v54  ;;  %v1286_v34 = vsel %vm864_vm3, %v1283_v7, %v1285_v22 }
  0x8a   : > { %4685 = vmatmul.msk.bf16.gmra.mxu0 %vm515_vm2, %v1565_v45 }
  0x8e   : > { %4666 = vmatmul.msk.bf16.gmra.mxu3 %vm515_vm2, %v1282_v55  ;;  %v4981_v55 = vld [vmem:[%s5151_s28 + $0x48] sm:$0xff] }
  0x8f   : > { %v1287_v61 = vrot.slane %v4981_v55, 1 }
  0x91   : > { %v1288_v24 = vsel %vm864_vm3, %v1285_v22, %v1287_v61 }
  0x96   : > { %v5365_v57 = vpop.f32.mrf.mxu1 }
  0x97   : > { %v5368_v58 = vpop.f32.mrf.mxu0 }
  0x99   : > { %4544 = vmatmul.msk.bf16.gmra.mxu1 %vm515_vm2, %v5201_v39  ;;  %4566 = vmatmul.msk.bf16.gmra.mxu2 %vm515_vm2, %v871_v13  ;;  %v1284_v39 = vsel %vm864_vm3, %v1281_v51, %v1283_v7  ;;  %v1596_v13 = vrot.slane %v1594_v50, 1 }
  0x9a   : > { %4686 = vmatmul.msk.bf16.gmra.mxu0 %vm515_vm2, %v1574_v59  ;;  %v1599_v59 = vrot.slane %v1597_v41, 2 }
  0x9c   : > { %v5375_v63 = vpop.f32.mrf.mxu2  ;;  %v1600_v5 = vor.u32 %v1599_v59, %v1596_v13 }
  0x9e   : > { %v5377_v1 = vpop.f32.mrf.mxu1  ;;  %4667 = vmatmul.msk.bf16.gmra.mxu3 %vm515_vm2, %v1284_v39  ;;  %v1601_v15 = vsel %vm1539_vm4, %v1591_v37, %v1600_v5 }
  0x9f   : > { %v5380_v3 = vpop.f32.mrf.mxu0 }
  0xa1   : > { %v5393_v18 = vpop.f32.mrf.mxu3 }
  0xa2   : > { %6994 = vst [vmem:[#allocation2_spill] sm:$0xff] %v5393_v18 }
  0xa4   : > { %v5384_v16 = vpop.f32.mrf.mxu2 }
  0xa6   : > { %v5387_v17 = vpop.f32.mrf.mxu1 }
  0xa7   : > { %v5390_v53 = vpop.f32.mrf.mxu0 }
  0xa9   : > { %4545 = vmatmul.msk.bf16.gmra.mxu1 %vm515_vm2, %v5231_v4  ;;  %4567 = vmatmul.msk.bf16.gmra.mxu2 %vm515_vm2, %v873_v19  ;;  %v5406_v33 = vpop.f32.mrf.mxu3  ;;  %v874_v4 = vrot.slane %v5274_v52, 1 }
  0xaa   : > { %4687 = vmatmul.msk.bf16.gmra.mxu0 %vm515_vm2, %v1583_v21  ;;  %6996 = vst [vmem:[#allocation4_spill] sm:$0xff] %v5406_v33  ;;  %v1603_v21 = vshrl.u32 %v4980_v28, 16 }
  0xab   : > { %v875_v45 = vsel %vm864_vm3, %v872_v14, %v874_v4 }
  0xac   : > { %v5399_v49 = vpop.f32.mrf.mxu2 }
  0xad   : > { %6995 = vst [vmem:[#allocation3_spill] sm:$0xff] %v5399_v49 }
  0xae   : > { %v5401_v25 = vpop.f32.mrf.mxu1  ;;  %4668 = vmatmul.msk.bf16.gmra.mxu3 %vm515_vm2, %v1286_v34  ;;  %v1608_v34 = vrot.slane %v1606_v20, 2 }
  0xaf   : > { %v5404_v30 = vpop.f32.mrf.mxu0 }
  0xb1   : > { %v5419_v48 = vpop.f32.mrf.mxu3 }
  0xb2   : > { %6998 = vst [vmem:[#allocation6_spill] sm:$0xff] %v5419_v48 }
  0xb4   : > { %v5410_v42 = vpop.f32.mrf.mxu2 }
  0xb5   : > { %6997 = vst [vmem:[#allocation5_spill] sm:$0xff] %v5410_v42 }
  0xb6   : > { %v5413_v12 = vpop.f32.mrf.mxu1 }
  0xb7   : > { %v5416_v46 = vpop.f32.mrf.mxu0 }
  0xb9   : > { %4546 = vmatmul.msk.bf16.gmra.mxu1 %vm515_vm2, %v5263_v43  ;;  %4568 = vmatmul.msk.bf16.gmra.mxu2 %vm515_vm2, %v875_v45  ;;  %v5432_v60 = vpop.f32.mrf.mxu3  ;;  %v876_v43 = vrot.slane %v5154_v8, 1  ;;  %v1289_v45 = vrot.slane %v4982_v32, 1 }
  0xba   : > { %4688 = vmatmul.msk.bf16.gmra.mxu0 %vm515_vm2, %v1592_v47  ;;  %7000 = vst [vmem:[#allocation8_spill] sm:$0xff] %v5432_v60  ;;  %v878_v47 = vrot.slane %v5157_v9, 1 }
  0xbb   : > { %v877_v14 = vsel %vm864_vm3, %v874_v4, %v876_v43  ;;  %v1605_v4 = vrot.slane %v1603_v21, 1 }
  0xbc   : > { %v5425_v51 = vpop.f32.mrf.mxu2  ;;  %v879_v13 = vsel %vm864_vm3, %v876_v43, %v878_v47 }
  0xbd   : > { %6999 = vst [vmem:[#allocation7_spill] sm:$0xff] %v5425_v51  ;;  %v1609_v50 = vor.u32 %v1608_v34, %v1605_v4  ;;  %v4983_v4 = vld [vmem:[%s5151_s28 + $0x58] sm:$0xff] }
  0xbe   : > { %v5427_v54 = vpop.f32.mrf.mxu1  ;;  %4669 = vmatmul.msk.bf16.gmra.mxu3 %vm515_vm2, %v1288_v24 }
  0xbf   : > { %v5430_v56 = vpop.f32.mrf.mxu0  ;;  %v1610_v24 = vsel %vm1539_vm4, %v1600_v5, %v1609_v50 }
  0xc1   : > { %v5445_v19 = vpop.f32.mrf.mxu3 }
  0xc2   : > { %7002 = vst [vmem:[#allocation10_spill] sm:$0xff] %v5445_v19  ;;  %v881_v19 = vsel %vm864_vm3, %v878_v47, %v880_v27  ;;  %v4984_v47 = vld [vmem:[%s5151_s28 + $0x60] sm:$0xff] }
  0xc4   : > { %v5436_v7 = vpop.f32.mrf.mxu2 }
  0xc5   : > { %7001 = vst [vmem:[#allocation9_spill] sm:$0xff] %v5436_v7 }
  0xc6   : > { %v5439_v2 = vpop.f32.mrf.mxu1 }
  0xc7   : > { %v5442_v39 = vpop.f32.mrf.mxu0 }
  0xc9   : > { %4547 = vmatmul.msk.bf16.gmra.mxu1 %vm515_vm2, %v5274_v52  ;;  %4569 = vmatmul.msk.bf16.gmra.mxu2 %vm515_vm2, %v877_v14  ;;  %v694_v37 = vpop.f32.mrf.mxu3  ;;  %v1290_v52 = vsel %vm864_vm3, %v1287_v61, %v1289_v45  ;;  %v1612_v61 = vshrl.u32 %v4981_v55, 16 }
  0xca   : > { %4689 = vmatmul.msk.bf16.gmra.mxu0 %vm515_vm2, %v1601_v15  ;;  %v1615_v15 = vshll.u32 %v4981_v55, 16 }
  0xcb   : > { %v1614_v34 = vrot.slane %v1612_v61, 1 }
  0xcc   : > { %v5451_v26 = vpop.f32.mrf.mxu2  ;;  %v1617_v37 = vrot.slane %v1615_v15, 2 }
  0xcd   : > { %7003 = vst [vmem:[#allocation11_spill] sm:$0xff] %v5451_v26 }
  0xce   : > { %v5453_v31 = vpop.f32.mrf.mxu1  ;;  %4670 = vmatmul.msk.bf16.gmra.mxu3 %vm515_vm2, %v1290_v52  ;;  %v1291_v52 = vrot.slane %v4983_v4, 1 }
  0xcf   : > { %v5456_v22 = vpop.f32.mrf.mxu0 }
  0xd1   : > { %v1388_v14 = vpop.f32.mrf.mxu3 }
  0xd4   : > { %v5460_v41 = vpop.f32.mrf.mxu2 }
  0xd5   : > { %7004 = vst [vmem:[#allocation12_spill] sm:$0xff] %v5460_v41 }
  0xd6   : > { %v5463_v28 = vpop.f32.mrf.mxu1 }
  0xd7   : > { %v5466_v59 = vpop.f32.mrf.mxu0 }
  0xd9   : > { %4548 = vmatmul.msk.bf16.gmra.mxu1 %vm515_vm2, %v5154_v8  ;;  %4570 = vmatmul.msk.bf16.gmra.mxu2 %vm515_vm2, %v879_v13  ;;  %v1390_v5 = vpop.f32.mrf.mxu3  ;;  %v1292_v8 = vsel %vm864_vm3, %v1289_v45, %v1291_v52  ;;  %v1618_v13 = vor.u32 %v1617_v37, %v1614_v34  ;;  %v1621_v45 = vshrl.u32 %v4982_v32, 16  ;;  %v1624_v34 = vshll.u32 %v4982_v32, 16 }
  0xda   : > { %4690 = vmatmul.msk.bf16.gmra.mxu0 %vm515_vm2, %v1610_v24 }
  0xdb   : > { %v1619_v61 = vsel %vm1539_vm4, %v1609_v50, %v1618_v13  ;;  %v1623_v33 = vrot.slane %v1621_v45, 1  ;;  %v1626_v50 = vrot.slane %v1624_v34, 2 }
  0xdc   : > { %v5473_v21 = vpop.f32.mrf.mxu2 }
  0xdd   : > { %7005 = vst [vmem:[#allocation13_spill] sm:$0xff] %v5473_v21  ;;  %v1627_v21 = vor.u32 %v1626_v50, %v1623_v33  ;;  %v1633_v50 = vshll.u32 %v4983_v4, 16 }
  0xde   : > { %v5475_v20 = vpop.f32.mrf.mxu1  ;;  %4671 = vmatmul.msk.bf16.gmra.mxu3 %vm515_vm2, %v1292_v8 }
  0xdf   : > { %v5478_v43 = vpop.f32.mrf.mxu0  ;;  %v1628_v45 = vsel %vm1539_vm4, %v1618_v13, %v1627_v21  ;;  %v1635_v42 = vrot.slane %v1633_v50, 2 }
  0xe1   : > { %v5491_v15 = vpop.f32.mrf.mxu3 }
  0xe4   : > { %v5482_v24 = vpop.f32.mrf.mxu2 }
  0xe5   : > { %7006 = vst [vmem:[#allocation14_spill] sm:$0xff] %v5482_v24  ;;  %v1293_v24 = vrot.slane %v4984_v47, 1 }
  0xe6   : > { %v5485_v55 = vpop.f32.mrf.mxu1 }
  0xe7   : > { %v5488_v60 = vpop.f32.mrf.mxu0 }
  0xe9   : > { %4549 = vmatmul.msk.bf16.gmra.mxu1 %vm515_vm2, %v5157_v9  ;;  %4571 = vmatmul.msk.bf16.gmra.mxu2 %vm515_vm2, %v881_v19  ;;  %v5504_v18 = vpop.f32.mrf.mxu3  ;;  %v882_v9 = vrot.slane %v5220_v62, 1  ;;  %v1294_v19 = vsel %vm864_vm3, %v1291_v52, %v1293_v24  ;;  %v1630_v52 = vshrl.u32 %v4983_v4, 16 }
  0xea   : > { %4691 = vmatmul.msk.bf16.gmra.mxu0 %vm515_vm2, %v1619_v61 }
  0xeb   : > { %v1632_v51 = vrot.slane %v1630_v52, 1 }
  0xec   : > { %v5497_v37 = vpop.f32.mrf.mxu2 }
  0xed   : > { %7007 = vst [vmem:[#allocation15_spill] sm:$0xff] %v5497_v37  ;;  %v883_v37 = vsel %vm864_vm3, %v880_v27, %v882_v9  ;;  %v5521_v27 = vld [vmem:[%s5151_s28 + $0x68] sm:$0xff] }
  0xee   : > { %v5499_v8 = vpop.f32.mrf.mxu1  ;;  %4672 = vmatmul.msk.bf16.gmra.mxu3 %vm515_vm2, %v1294_v19 }
  0xef   : > { %v5502_v48 = vpop.f32.mrf.mxu0 }
  0xf1   : > { %v5513_v34 = vpop.f32.mrf.mxu3 }
  0xf4   : > { %v5508_v61 = vpop.f32.mrf.mxu2 }
  0xf5   : > { %7008 = vst [vmem:[#allocation16_spill] sm:$0xff] %v5508_v61 }
  0xf6   : > { %v754_v32 = vpop.f32.mrf.mxu1 }
  0xf7   : > { %v1803_v41 = vpop.f32.mrf.mxu0  ;;  %v755_v33 = vadd.f32 %v754_v32, %v5368_v58  ;;  %v1636_v32 = vor.u32 %v1635_v42, %v1632_v51  ;;  %v1639_v51 = vshrl.u32 %v4984_v47, 16 }
  0xf9   : > { %4550 = vmatmul.msk.bf16.gmra.mxu1 %vm515_vm2, %v5192_v35  ;;  %4572 = vmatmul.msk.bf16.gmra.mxu2 %vm515_vm2, %v883_v37  ;;  %v5523_v49 = vpop.f32.mrf.mxu3  ;;  %v1295_v35 = vrot.slane %v5521_v27, 1 }
  0xfa   : > { %4692 = vmatmul.msk.bf16.gmra.mxu0 %vm515_vm2, %v1628_v45  ;;  %v884_v45 = vrot.slane %v5255_v38, 1 }
  0xfb   : > { %v1296_v58 = vsel %vm864_vm3, %v1293_v24, %v1295_v35 }
  0xfc   : > { %v981_v19 = vpop.f32.mrf.mxu2  ;;  %v885_v52 = vsel %vm864_vm3, %v882_v9, %v884_v45 }
  0xfd   : > { %v1085_v61 = vadd.f32 %v981_v19, %v755_v33 }
  0xfe   : > { %v756_v26 = vpop.f32.mrf.mxu1  ;;  %4673 = vmatmul.msk.bf16.gmra.mxu3 %vm515_vm2, %v1296_v58  ;;  %v5544_v58 = vld [vmem:[%s5151_s28 + $0x70] sm:$0xff] }
  0xff   : > { %v1492_v7 = vadd.f32 %v1388_v14, %v1085_v61  ;;  %v1805_v13 = vpop.f32.mrf.mxu0  ;;  %v757_v4 = vadd.f32 %v756_v26, %v5380_v3  ;;  %v1642_v26 = vshll.u32 %v4984_v47, 16 }
 0x101   : > { %v5526_v37 = vadd.f32 %v1803_v41, %v1492_v7  ;;  %v1637_v7 = vsel %vm1539_vm4, %v1627_v21, %v1636_v32  ;;  %v5534_v41 = vpop.f32.mrf.mxu3 }
 0x104   : > { %v983_v33 = vpop.f32.mrf.mxu2 }
 0x105   : > { %v1086_v14 = vadd.f32 %v983_v33, %v757_v4  ;;  %v1641_v33 = vrot.slane %v1639_v51, 1 }
 0x106   : > { %v759_v61 = vpop.f32.mrf.mxu1 }
 0x107   : > { %v1493_v50 = vadd.f32 %v1390_v5, %v1086_v14  ;;  %v1808_v19 = vpop.f32.mrf.mxu0  ;;  %v760_v42 = vadd.f32 %v759_v61, %v5390_v53  ;;  %v886_v53 = vrot.slane %v5245_v29, 1 }
 0x109   : > { %4551 = vmatmul.msk.bf16.gmra.mxu1 %vm515_vm2, %v5220_v62  ;;  %4573 = vmatmul.msk.bf16.gmra.mxu2 %vm515_vm2, %v885_v52  ;;  %v5539_v3 = vadd.f32 %v1805_v13, %v1493_v50  ;;  %v1644_v62 = vrot.slane %v1642_v26, 2  ;;  %v5547_v14 = vpop.f32.mrf.mxu3  ;;  %v1297_v13 = vrot.slane %v5544_v58, 1  ;;  %v887_v51 = vsel %vm864_vm3, %v884_v45, %v886_v53 }
 0x10a   : > { %4693 = vmatmul.msk.bf16.gmra.mxu0 %vm515_vm2, %v1637_v7  ;;  %v1648_v45 = vshrl.u32 %v5521_v27, 16 }
 0x10b   : > { %v1298_v47 = vsel %vm864_vm3, %v1295_v35, %v1297_v13  ;;  %v1645_v50 = vor.u32 %v1644_v62, %v1641_v33  ;;  %v5571_v33 = vld [vmem:[%s5151_s28 + $0x78] sm:$0xff] }
 0x10c   : > { %v986_v24 = vpop.f32.mrf.mxu2 }
 0x10d   : > { %v1087_v5 = vadd.f32 %v986_v24, %v760_v42 }
 0x10e   : > { %v761_v9 = vpop.f32.mrf.mxu1  ;;  %4674 = vmatmul.msk.bf16.gmra.mxu3 %vm515_vm2, %v1298_v47  ;;  %v1650_v47 = vrot.slane %v1648_v45, 1 }
 0x10f   : > { %v1494_v21 = vadd.f32 %v5491_v15, %v1087_v5  ;;  %v1810_v4 = vpop.f32.mrf.mxu0  ;;  %v762_v61 = vadd.f32 %v761_v9, %v5404_v30 }
 0x111   : > { %v5550_v52 = vadd.f32 %v1808_v19, %v1494_v21  ;;  %v1646_v19 = vsel %vm1539_vm4, %v1636_v32, %v1645_v50  ;;  %v5559_v5 = vpop.f32.mrf.mxu3 }
 0x114   : > { %v988_v7 = vpop.f32.mrf.mxu2 }
 0x115   : > { %v1088_v15 = vadd.f32 %v988_v7, %v762_v61  ;;  %v1299_v7 = vrot.slane %v5571_v33, 1 }
 0x116   : > { %v764_v42 = vpop.f32.mrf.mxu1 }
 0x117   : > { %v1495_v26 = vadd.f32 %v5504_v18, %v1088_v15  ;;  %v1813_v24 = vpop.f32.mrf.mxu0  ;;  %v765_v35 = vadd.f32 %v764_v42, %v5416_v46  ;;  %v1651_v18 = vshll.u32 %v5521_v27, 16  ;;  %v888_v46 = vrot.slane %v5160_v10, 1 }
 0x118   : > { %v1300_v27 = vsel %vm864_vm3, %v1297_v13, %v1299_v7 }
 0x119   : > { %4552 = vmatmul.msk.bf16.gmra.mxu1 %vm515_vm2, %v5255_v38  ;;  %4574 = vmatmul.msk.bf16.gmra.mxu2 %vm515_vm2, %v887_v51  ;;  %v5564_v30 = vadd.f32 %v1810_v4, %v1495_v26  ;;  %v1653_v61 = vrot.slane %v1651_v18, 2  ;;  %v5574_v4 = vpop.f32.mrf.mxu3 }
 0x11a   : > { %4694 = vmatmul.msk.bf16.gmra.mxu0 %vm515_vm2, %v1646_v19 }
 0x11b   : > { %v1654_v51 = vor.u32 %v1653_v61, %v1650_v47 }
 0x11c   : > { %v991_v9 = vpop.f32.mrf.mxu2 }
 0x11d   : > { %v1089_v21 = vadd.f32 %v991_v9, %v765_v35  ;;  %v889_v35 = vsel %vm864_vm3, %v886_v53, %v888_v46  ;;  %v1657_v53 = vshrl.u32 %v5544_v58, 16 }
 0x11e   : > { %v766_v32 = vpop.f32.mrf.mxu1  ;;  %4675 = vmatmul.msk.bf16.gmra.mxu3 %vm515_vm2, %v1300_v27 }
 0x11f   : > { %v1496_v62 = vadd.f32 %v5513_v34, %v1089_v21  ;;  %v1815_v38 = vpop.f32.mrf.mxu0  ;;  %v767_v42 = vadd.f32 %v766_v32, %v5430_v56  ;;  %v1659_v61 = vrot.slane %v1657_v53, 1 }
 0x121   : > { %v5577_v15 = vadd.f32 %v1813_v24, %v1496_v62  ;;  %v1655_v24 = vsel %vm1539_vm4, %v1645_v50, %v1654_v51  ;;  %v5586_v9 = vpop.f32.mrf.mxu3  ;;  %v5598_v62 = vld [vmem:[%s5151_s28 + $0x80] sm:$0xff] }
 0x124   : > { %v993_v26 = vpop.f32.mrf.mxu2 }
 0x125   : > { %v1090_v34 = vadd.f32 %v993_v26, %v767_v42  ;;  %v1301_v42 = vrot.slane %v5598_v62, 1 }
 0x126   : > { %v769_v19 = vpop.f32.mrf.mxu1 }
 0x127   : > { %v1497_v45 = vadd.f32 %v5523_v49, %v1090_v34  ;;  %v1818_v18 = vpop.f32.mrf.mxu0  ;;  %v770_v13 = vadd.f32 %v769_v19, %v5442_v39  ;;  %v1660_v49 = vshll.u32 %v5544_v58, 16  ;;  %v890_v39 = vrot.slane %v5163_v11, 1 }
 0x128   : > { %v1302_v58 = vsel %vm864_vm3, %v1299_v7, %v1301_v42  ;;  %v1666_v7 = vshrl.u32 %v5571_v33, 16 }
 0x129   : > { %4553 = vmatmul.msk.bf16.gmra.mxu1 %vm515_vm2, %v5245_v29  ;;  %4575 = vmatmul.msk.bf16.gmra.mxu2 %vm515_vm2, %v889_v35  ;;  %v5591_v56 = vadd.f32 %v1815_v38, %v1497_v45  ;;  %v1662_v27 = vrot.slane %v1660_v49, 2  ;;  %v5601_v38 = vpop.f32.mrf.mxu3 }
 0x12a   : > { %4695 = vmatmul.msk.bf16.gmra.mxu0 %vm515_vm2, %v1655_v24  ;;  %v891_v24 = vsel %vm864_vm3, %v888_v46, %v890_v39 }
 0x12b   : > { %v1663_v19 = vor.u32 %v1662_v27, %v1659_v61 }
 0x12c   : > { %v996_v21 = vpop.f32.mrf.mxu2 }
 0x12d   : > { %v1091_v32 = vadd.f32 %v996_v21, %v770_v13 }
 0x12e   : > { %v771_v50 = vpop.f32.mrf.mxu1  ;;  %4676 = vmatmul.msk.bf16.gmra.mxu3 %vm515_vm2, %v1302_v58  ;;  %v892_v58 = vrot.slane %v5196_v36, 1  ;;  %v5057_v36 = vld [vmem:[%s5151_s28 + $0x68] sm:$0xff] }
 0x12f   : > { %v1498_v47 = vadd.f32 %v5534_v41, %v1091_v32  ;;  %v1820_v29 = vpop.f32.mrf.mxu0  ;;  %v772_v34 = vadd.f32 %v771_v50, %v5456_v22  ;;  %v5625_v32 = vld [vmem:[%s5151_s28 + $0x88] sm:$0xff] }
 0x130   : > { %v1303_v27 = vrot.slane %v5625_v32, 1 }
 0x131   : > { %v5604_v26 = vadd.f32 %v1818_v18, %v1498_v47  ;;  %v1664_v18 = vsel %vm1539_vm4, %v1654_v51, %v1663_v19  ;;  %v5613_v49 = vpop.f32.mrf.mxu3  ;;  %v1668_v47 = vrot.slane %v1666_v7, 1 }
 0x134   : > { %v998_v35 = vpop.f32.mrf.mxu2 }
 0x135   : > { %v1092_v41 = vadd.f32 %v998_v35, %v772_v34 }
 0x136   : > { %v774_v45 = vpop.f32.mrf.mxu1 }
 0x137   : > { %v1499_v13 = vadd.f32 %v5547_v14, %v1092_v41  ;;  %v1823_v53 = vpop.f32.mrf.mxu0  ;;  %v775_v22 = vadd.f32 %v774_v45, %v5466_v59  ;;  %v1669_v14 = vshll.u32 %v5571_v33, 16  ;;  %v1304_v33 = vsel %vm864_vm3, %v1301_v42, %v1303_v27 }
 0x139   : > { %4554 = vmatmul.msk.bf16.gmra.mxu1 %vm515_vm2, %v5160_v10  ;;  %4576 = vmatmul.msk.bf16.gmra.mxu2 %vm515_vm2, %v891_v24  ;;  %v5618_v11 = vadd.f32 %v1820_v29, %v1499_v13  ;;  %v1671_v61 = vrot.slane %v1669_v14, 2  ;;  %v5628_v29 = vpop.f32.mrf.mxu3  ;;  %v893_v24 = vsel %vm864_vm3, %v890_v39, %v892_v58  ;;  %v1675_v39 = vshrl.u32 %v5598_v62, 16 }
 0x13a   : > { %4696 = vmatmul.msk.bf16.gmra.mxu0 %vm515_vm2, %v1664_v18 }
 0x13b   : > { %v1672_v35 = vor.u32 %v1671_v61, %v1668_v47 }
 0x13c   : > { %v1001_v46 = vpop.f32.mrf.mxu2 }
 0x13d   : > { %v1093_v21 = vadd.f32 %v1001_v46, %v775_v22  ;;  %v5652_v46 = vld [vmem:[%s5151_s28 + $0x90] sm:$0xff] }
 0x13e   : > { %v776_v51 = vpop.f32.mrf.mxu1  ;;  %4677 = vmatmul.msk.bf16.gmra.mxu3 %vm515_vm2, %v1304_v33  ;;  %v1305_v61 = vrot.slane %v5652_v46, 1  ;;  %v894_v33 = vrot.slane %v5225_v0, 1  ;;  %v5058_v0 = vld [vmem:[%s5151_s28 + $0x70] sm:$0xff] }
 0x13f   : > { %v1500_v50 = vadd.f32 %v5559_v5, %v1093_v21  ;;  %v1825_v10 = vpop.f32.mrf.mxu0  ;;  %v777_v34 = vadd.f32 %v776_v51, %v5478_v43 }
 0x141   : > { %v5631_v59 = vadd.f32 %v1823_v53, %v1500_v50  ;;  %v1673_v53 = vsel %vm1539_vm4, %v1663_v19, %v1672_v35  ;;  %v5640_v22 = vpop.f32.mrf.mxu3  ;;  %v1677_v50 = vrot.slane %v1675_v39, 1 }
 0x144   : > { %v1003_v41 = vpop.f32.mrf.mxu2 }
 0x145   : > { %v1094_v5 = vadd.f32 %v1003_v41, %v777_v34 }
 0x146   : > { %v779_v45 = vpop.f32.mrf.mxu1 }
 0x147   : > { %v1501_v13 = vadd.f32 %v5574_v4, %v1094_v5  ;;  %v1828_v18 = vpop.f32.mrf.mxu0  ;;  %v780_v42 = vadd.f32 %v779_v45, %v5488_v60  ;;  %v1678_v4 = vshll.u32 %v5598_v62, 16  ;;  %v1306_v62 = vsel %vm864_vm3, %v1303_v27, %v1305_v61 }
 0x149   : > { %4555 = vmatmul.msk.bf16.gmra.mxu1 %vm515_vm2, %v5057_v36  ;;  %4577 = vmatmul.msk.bf16.gmra.mxu2 %vm515_vm2, %v893_v24  ;;  %v5645_v43 = vadd.f32 %v1825_v10, %v1501_v13  ;;  %v1680_v47 = vrot.slane %v1678_v4, 2  ;;  %v5655_v10 = vpop.f32.mrf.mxu3  ;;  %v895_v24 = vsel %vm864_vm3, %v892_v58, %v894_v33  ;;  %v1684_v58 = vshrl.u32 %v5625_v32, 16  ;;  %v5679_v4 = vld [vmem:[%s5151_s28 + $0x98] sm:$0xff] }
 0x14a   : > { %4697 = vmatmul.msk.bf16.gmra.mxu0 %vm515_vm2, %v1673_v53 }
 0x14b   : > { %v1681_v41 = vor.u32 %v1680_v47, %v1677_v50  ;;  %v1307_v50 = vrot.slane %v5679_v4, 1  ;;  %v896_v47 = vrot.slane %v5259_v40, 1  ;;  %v5059_v40 = vld [vmem:[%s5151_s28 + $0x78] sm:$0xff] }
 0x14c   : > { %v1006_v7 = vpop.f32.mrf.mxu2 }
 0x14d   : > { %v1095_v14 = vadd.f32 %v1006_v7, %v780_v42 }
 0x14e   : > { %v781_v19 = vpop.f32.mrf.mxu1  ;;  %4678 = vmatmul.msk.bf16.gmra.mxu3 %vm515_vm2, %v1306_v62 }
 0x14f   : > { %v1502_v21 = vadd.f32 %v5586_v9, %v1095_v14  ;;  %v1830_v51 = vpop.f32.mrf.mxu0  ;;  %v782_v34 = vadd.f32 %v781_v19, %v5502_v48  ;;  %v1686_v19 = vrot.slane %v1684_v58, 1  ;;  %v5706_v58 = vld [vmem:[%s5151_s28 + $0xa0] sm:$0xff] }
 0x151   : > { %v5658_v60 = vadd.f32 %v1828_v18, %v1502_v21  ;;  %v1682_v18 = vsel %vm1539_vm4, %v1672_v35, %v1681_v41  ;;  %v5667_v36 = vpop.f32.mrf.mxu3 }
 0x154   : > { %v1008_v5 = vpop.f32.mrf.mxu2 }
 0x155   : > { %v1096_v9 = vadd.f32 %v1008_v5, %v782_v34 }
 0x156   : > { %v784_v45 = vpop.f32.mrf.mxu1 }
 0x157   : > { %v1503_v13 = vadd.f32 %v5601_v38, %v1096_v9  ;;  %v1833_v53 = vpop.f32.mrf.mxu0  ;;  %v785_v27 = vadd.f32 %v784_v45, %v5365_v57  ;;  %v1687_v38 = vshll.u32 %v5625_v32, 16  ;;  %v1308_v32 = vsel %vm864_vm3, %v1305_v61, %v1307_v50 }
 0x158   : > { %v897_v45 = vsel %vm864_vm3, %v894_v33, %v896_v47  ;;  %v1693_v33 = vshrl.u32 %v5652_v46, 16 }
 0x159   : > { %4556 = vmatmul.msk.bf16.gmra.mxu1 %vm515_vm2, %v5058_v0  ;;  %4578 = vmatmul.msk.bf16.gmra.mxu2 %vm515_vm2, %v895_v24  ;;  %v5672_v48 = vadd.f32 %v1830_v51, %v1503_v13  ;;  %v1689_v21 = vrot.slane %v1687_v38, 2  ;;  %v5682_v51 = vpop.f32.mrf.mxu3 }
 0x15a   : > { %4698 = vmatmul.msk.bf16.gmra.mxu0 %vm515_vm2, %v1682_v18 }
 0x15b   : > { %v1690_v34 = vor.u32 %v1689_v21, %v1686_v19  ;;  %v898_v19 = vrot.slane %v5266_v44, 1  ;;  %v5060_v44 = vld [vmem:[%s5151_s28 + $0x80] sm:$0xff] }
 0x15c   : > { %v1011_v42 = vpop.f32.mrf.mxu2 }
 0x15d   : > { %v1097_v39 = vadd.f32 %v1011_v42, %v785_v27 }
 0x15e   : > { %v786_v35 = vpop.f32.mrf.mxu1  ;;  %4679 = vmatmul.msk.bf16.gmra.mxu3 %vm515_vm2, %v1308_v32 }
 0x15f   : > { %v1504_v7 = vadd.f32 %v5613_v49, %v1097_v39  ;;  %v1835_v14 = vpop.f32.mrf.mxu0  ;;  %v787_v62 = vadd.f32 %v786_v35, %v5377_v1  ;;  %v1695_v39 = vrot.slane %v1693_v33, 1 }
 0x161   : > { %v5685_v57 = vadd.f32 %v1833_v53, %v1504_v7  ;;  %v1691_v53 = vsel %vm1539_vm4, %v1681_v41, %v1690_v34  ;;  %v5694_v18 = vpop.f32.mrf.mxu3 }
 0x164   : > { %v1013_v5 = vpop.f32.mrf.mxu2 }
 0x165   : > { %v1098_v49 = vadd.f32 %v1013_v5, %v787_v62 }
 0x166   : > { %v789_v9 = vpop.f32.mrf.mxu1 }
 0x167   : > { %v1505_v24 = vadd.f32 %v5628_v29, %v1098_v49  ;;  %v1838_v13 = vpop.f32.mrf.mxu0  ;;  %v790_v61 = vadd.f32 %v789_v9, %v5387_v17  ;;  %v1696_v29 = vshll.u32 %v5652_v46, 16  ;;  %v899_v49 = vsel %vm864_vm3, %v896_v47, %v898_v19 }
 0x168   : > { %v1702_v47 = vshrl.u32 %v5679_v4, 16 }
 0x169   : > { %4557 = vmatmul.msk.bf16.gmra.mxu1 %vm515_vm2, %v5059_v40  ;;  %4579 = vmatmul.msk.bf16.gmra.mxu2 %vm515_vm2, %v897_v45  ;;  %v5699_v1 = vadd.f32 %v1835_v14, %v1505_v24  ;;  %v1698_v35 = vrot.slane %v1696_v29, 2  ;;  %v5709_v7 = vpop.f32.mrf.mxu3  ;;  %v1309_v14 = vrot.slane %v5706_v58, 1 }
 0x16a   : > { %4699 = vmatmul.msk.bf16.gmra.mxu0 %vm515_vm2, %v1691_v53  ;;  %v1166_v53 = vld [vmem:[%s5151_s28 + $0xa8] sm:$0x7] }
 0x16b   : > { %v1310_v46 = vsel %vm864_vm3, %v1307_v50, %v1309_v14  ;;  %v1699_v32 = vor.u32 %v1698_v35, %v1695_v39  ;;  %v1250_v40 = vunpack.c.l.b16 %v1166_v53  ;;  %v5061_v35 = vld [vmem:[%s5151_s28 + $0x90] sm:$0xff] }
 0x16c   : > { %v1016_v0 = vpop.f32.mrf.mxu2 }
 0x16d   : > { %v1099_v27 = vadd.f32 %v1016_v0, %v790_v61  ;;  %v1700_v24 = vsel %vm1539_vm4, %v1690_v34, %v1699_v32  ;;  %v1271_v29 = vpack.c.b16 %v1250_v40, %v1250_v40 }
 0x16e   : > { %v791_v41 = vpop.f32.mrf.mxu1  ;;  %4680 = vmatmul.msk.bf16.gmra.mxu3 %vm515_vm2, %v1310_v46  ;;  %v900_v46 = vrot.slane %v5061_v35, 1 }
 0x16f   : > { %v1506_v38 = vadd.f32 %v5640_v22, %v1099_v27  ;;  %v1840_v42 = vpop.f32.mrf.mxu0  ;;  %v792_v21 = vadd.f32 %v791_v41, %v5401_v25  ;;  %v1704_v41 = vrot.slane %v1702_v47, 1  ;;  %v1311_v39 = vrot.slane %v1271_v29, 1  ;;  %v1533_v29 = vld [vmem:[%s5151_s28 + $0xa8] sm:$0xf] }
 0x171   : > { %v5712_v17 = vadd.f32 %v1838_v13, %v1506_v38  ;;  %v5721_v13 = vpop.f32.mrf.mxu3 }
 0x174   : > { %v1018_v62 = vpop.f32.mrf.mxu2 }
 0x175   : > { %v1100_v22 = vadd.f32 %v1018_v62, %v792_v21 }
 0x176   : > { %v794_v5 = vpop.f32.mrf.mxu1 }
 0x177   : > { %v1507_v9 = vadd.f32 %v5655_v10, %v1100_v22  ;;  %v1843_v45 = vpop.f32.mrf.mxu0  ;;  %v795_v50 = vadd.f32 %v794_v5, %v5413_v12  ;;  %v1705_v10 = vshll.u32 %v5679_v4, 16  ;;  %v1312_v4 = vsel %vm864_vm3, %v1309_v14, %v1311_v39 }
 0x179   : > { %4558 = vmatmul.msk.bf16.gmra.mxu1 %vm515_vm2, %v5060_v44  ;;  %4580 = vmatmul.msk.bf16.gmra.mxu2 %vm515_vm2, %v899_v49  ;;  %v5726_v25 = vadd.f32 %v1840_v42, %v1507_v9  ;;  %v1707_v38 = vrot.slane %v1705_v10, 2  ;;  %v5734_v42 = vpop.f32.mrf.mxu3  ;;  %v901_v49 = vsel %vm864_vm3, %v898_v19, %v900_v46  ;;  %v1714_v19 = vshll.u32 %v5706_v58, 16 }
 0x17a   : > { %4700 = vmatmul.msk.bf16.gmra.mxu0 %vm515_vm2, %v1700_v24 }
 0x17b   : > { %v1708_v62 = vor.u32 %v1707_v38, %v1704_v41  ;;  %v1537_v38 = vunpack.c.l.b16 %v1533_v29 }
 0x17c   : > { %v1021_v34 = vpop.f32.mrf.mxu2 }
 0x17d   : > { %v1101_v61 = vadd.f32 %v1021_v34, %v795_v50  ;;  %v5062_v50 = vld [vmem:[%s5151_s28 + $0x88] sm:$0xff] }
 0x17e   : > { %v796_v33 = vpop.f32.mrf.mxu1  ;;  %4681 = vmatmul.msk.bf16.gmra.mxu3 %vm515_vm2, %v1312_v4 }
 0x17f   : > { %v1508_v0 = vadd.f32 %v5667_v36, %v1101_v61  ;;  %v1845_v27 = vpop.f32.mrf.mxu0  ;;  %v797_v21 = vadd.f32 %v796_v33, %v5427_v54  ;;  %v1716_v61 = vrot.slane %v1714_v19, 2 }
 0x181   : > { %v5736_v12 = vadd.f32 %v1843_v45, %v1508_v0  ;;  %v1709_v45 = vsel %vm1539_vm4, %v1699_v32, %v1708_v62  ;;  %v5745_v44 = vpop.f32.mrf.mxu3 }
 0x184   : > { %v1023_v22 = vpop.f32.mrf.mxu2 }
 0x185   : > { %v1102_v36 = vadd.f32 %v1023_v22, %v797_v21 }
 0x186   : > { %v799_v5 = vpop.f32.mrf.mxu1 }
 0x187   : > { %v1509_v9 = vadd.f32 %v5682_v51, %v1102_v36  ;;  %v1848_v24 = vpop.f32.mrf.mxu0  ;;  %v800_v14 = vadd.f32 %v799_v5, %v5439_v2  ;;  %v1711_v51 = vshrl.u32 %v5706_v58, 16 }
 0x189   : > { %4559 = vmatmul.msk.bf16.gmra.mxu1 %vm515_vm2, %v5062_v50  ;;  %4581 = vmatmul.msk.bf16.gmra.mxu2 %vm515_vm2, %v901_v49  ;;  %v5750_v54 = vadd.f32 %v1845_v27, %v1509_v9  ;;  %v1713_v40 = vrot.slane %v1711_v51, 1  ;;  %v5757_v33 = vpop.f32.mrf.mxu3  ;;  %v5063_v27 = vld [vmem:[%s5151_s28 + $0x98] sm:$0xff]  ;;  %v5768_v9 = vpack.c.b16 %v1537_v38, %v1537_v38 }
 0x18a   : > { %4701 = vmatmul.msk.bf16.gmra.mxu0 %vm515_vm2, %v1709_v45  ;;  %v902_v2 = vrot.slane %v5063_v27, 1  ;;  %v5774_v45 = vld [vmem:[%s5151_s28 + $0x14] sm:$0xf] }
 0x18b   : > { %v1717_v58 = vor.u32 %v1716_v61, %v1713_v40  ;;  %v1720_v51 = vshrl.u32 %v5768_v9, 16  ;;  %v1723_v19 = vshll.u32 %v5768_v9, 16 }
 0x18c   : > { %v1026_v32 = vpop.f32.mrf.mxu2  ;;  %v903_v22 = vsel %vm864_vm3, %v900_v46, %v902_v2 }
 0x18d   : > { %v1103_v47 = vadd.f32 %v1026_v32, %v800_v14  ;;  %v1718_v49 = vsel %vm1539_vm4, %v1708_v62, %v1717_v58 }
 0x18e   : > { %v801_v10 = vpop.f32.mrf.mxu1  ;;  %4682 = vmatmul.msk.bf16.gmra.mxu3 %vm515_vm2, %v1311_v39  ;;  %v2710_v39 = vunpack.c.l.b16 %v5774_v45 }
 0x18f   : > { %v1510_v53 = vadd.f32 %v5694_v18, %v1103_v47  ;;  %v1850_v34 = vpop.f32.mrf.mxu0  ;;  %v802_v41 = vadd.f32 %v801_v10, %v5453_v31  ;;  %v2623_v31 = vld [vmem:[%s5151_s28 + $0x10] sm:$0xc] }
 0x190   : > { %v2709_v50 = vunpack.c.l.b16 %v2623_v31 }
 0x191   : > { %v5760_v0 = vadd.f32 %v1848_v24, %v1510_v53  ;;  %v5770_v24 = vpop.f32.mrf.mxu3 }
 0x192   : > { %v2751_v62 = vpack.c.b16 %v2710_v39, %v2709_v50  ;;  %v904_v50 = vrot.slane %v5234_v6, 1 }
 0x194   : > { %v1028_v4 = vpop.f32.mrf.mxu2  ;;  %v2774_v47 = vshrl.u32 %v2751_v62, 16 }
 0x195   : > { %v1104_v18 = vadd.f32 %v1028_v4, %v802_v41 }
 0x196   : > { %v804_v21 = vpop.f32.mrf.mxu1  ;;  %v2776_v61 = vrot.slane %v2774_v47, 2 }
 0x197   : > { %v1511_v36 = vadd.f32 %v5709_v7, %v1104_v18  ;;  %v1853_v5 = vpop.f32.mrf.mxu0  ;;  %v5783_v7 = vld [vmem:[%s5151_s28 + $0x18] sm:$0xff]  ;;  %v805_v14 = vadd.f32 %v804_v21, %v5463_v28  ;;  %v1722_v18 = vrot.slane %v1720_v51, 1  ;;  %v1725_v21 = vrot.slane %v1723_v19, 2 }
 0x198   : > { %v2782_v10 = vshrl.u32 %v5783_v7, 16  ;;  %v2785_v53 = vshll.u32 %v5783_v7, 16  ;;  %v905_v19 = vsel %vm864_vm3, %v902_v2, %v904_v50 }
 0x199   : > { %4560 = vmatmul.msk.bf16.gmra.mxu1 %vm515_vm2, %v5061_v35  ;;  %4582 = vmatmul.msk.bf16.gmra.mxu2 %vm515_vm2, %v903_v22  ;;  %v5779_v46 = vadd.f32 %v1850_v34, %v1511_v36  ;;  %v2777_v35 = vshll.u32 %v2751_v62, 16  ;;  %v5793_v22 = vpop.f32.mrf.mxu3 }
 0x19a   : > { %4702 = vmatmul.msk.bf16.gmra.mxu0 %vm515_vm2, %v1718_v49  ;;  %v2784_v41 = vrot.slane %v2782_v10, 2  ;;  %v2787_v38 = vrot.slane %v2785_v53, 3  ;;  %v5812_v53 = vld [vmem:[%s5151_s28 + $0x20] sm:$0xff] }
 0x19b   : > { %v2779_v29 = vrot.slane %v2777_v35, 3 }
 0x19c   : > { %v1031_v32 = vpop.f32.mrf.mxu2  ;;  %v2788_v49 = vor.u32 %v2787_v38, %v2784_v41 }
 0x19d   : > { %v1105_v34 = vadd.f32 %v1031_v32, %v805_v14  ;;  %v2780_v36 = vor.u32 %v2779_v29, %v2776_v61  ;;  %v1726_v32 = vor.u32 %v1725_v21, %v1722_v18  ;;  %v239_v29 = vld [vmem:[%s5151_s28 + $0xa0] sm:$0x3] }
 0x19e   : > { %v806_v40 = vpop.f32.mrf.mxu1  ;;  %v697_v21 = vunpack.c.l.b16 %v239_v29 }
 0x19f   : > { %v1512_v4 = vadd.f32 %v5721_v13, %v1105_v34  ;;  %v1855_v28 = vpop.f32.mrf.mxu0  ;;  %v2789_v62 = vsel %vm2772_vm5, %v2780_v36, %v2788_v49  ;;  %v807_v14 = vadd.f32 %v806_v40, %v5475_v20  ;;  %v1727_v10 = vsel %vm1539_vm4, %v1717_v58, %v1726_v32 }
 0x1a0   : > { %4910 = vmatmul.msk.bf16.vlgmr.msra.gmra.mxu3 %vm515_vm2, %v2789_v62  ;;  %v2794_v40 = vshll.u32 %v5812_v53, 16  ;;  %vm4377_vm4 = vsmask.f32 3328 }
 0x1a1   : > { %v5795_v31 = vadd.f32 %v1853_v5, %v1512_v4  ;;  %v5804_v6 = vpop.f32.mrf.mxu3 }
 0x1a2   : > { %v2796_v41 = vrot.slane %v2794_v40, 3 }
 0x1a4   : > { %v1033_v47 = vpop.f32.mrf.mxu2 }
 0x1a5   : > { %v1106_v13 = vadd.f32 %v1033_v47, %v807_v14 }
 0x1a6   : > { %v809_v51 = vpop.f32.mrf.mxu1 }
 0x1a7   : > { %v1513_v35 = vadd.f32 %v5734_v42, %v1106_v13  ;;  %v1858_v5 = vpop.f32.mrf.mxu0  ;;  %v810_v2 = vadd.f32 %v809_v51, %v5485_v55  ;;  %v2791_v42 = vshrl.u32 %v5812_v53, 16  ;;  %v1948_v51 = vld [vmem:[%s5151_s28 + $0x8] sm:$0xc] }
 0x1a9   : > { %4561 = vmatmul.msk.bf16.gmra.mxu1 %vm515_vm2, %v5063_v27  ;;  %4583 = vmatmul.msk.bf16.gmra.mxu2 %vm515_vm2, %v905_v19  ;;  %v5808_v20 = vadd.f32 %v1855_v28, %v1513_v35  ;;  %v2793_v27 = vrot.slane %v2791_v42, 2  ;;  %v5819_v28 = vpop.f32.mrf.mxu3  ;;  %v4730_v42 = vld [vmem:[%s5151_s28 + $0x10] sm:$0xc] }
 0x1aa   : > { %4703 = vmatmul.msk.bf16.gmra.mxu0 %vm515_vm2, %v1727_v10 }
 0x1ab   : > { %v2797_v18 = vor.u32 %v2796_v41, %v2793_v27 }
 0x1ac   : > { %v1036_v34 = vpop.f32.mrf.mxu2 }
 0x1ad   : > { %v1107_v58 = vadd.f32 %v1036_v34, %v810_v2  ;;  %v2798_v36 = vsel %vm2772_vm5, %v2788_v49, %v2797_v18  ;;  %v5837_v2 = vld [vmem:[%s5151_s28 + $0x28] sm:$0xff] }
 0x1ae   : > { %v811_v61 = vpop.f32.mrf.mxu1  ;;  %v2803_v29 = vshll.u32 %v5837_v2, 16 }
 0x1af   : > { %v1514_v38 = vadd.f32 %v5745_v44, %v1107_v58  ;;  %v1860_v4 = vpop.f32.mrf.mxu0  ;;  %v812_v62 = vadd.f32 %v811_v61, %v5499_v8  ;;  %v698_v44 = vpack.c.b16 %v697_v21, %v697_v21  ;;  %v1952_v8 = vunpack.c.l.b16 %v1948_v51 }
 0x1b0   : > { %4911 = vmatmul.msk.bf16.gmra.mxu3 %vm515_vm2, %v2798_v36  ;;  %v2800_v61 = vshrl.u32 %v5837_v2, 16  ;;  %v2805_v36 = vrot.slane %v2803_v29, 3 }
 0x1b1   : > { %v5821_v55 = vadd.f32 %v1858_v5, %v1514_v38  ;;  %v5828_v10 = vpop.f32.mrf.mxu3  ;;  %v3181_v5 = vld [vmem:[%s5151_s28 + $0x10] sm:$0x8] }
 0x1b2   : > { %v3185_v40 = vunpack.c.l.b16 %v3181_v5  ;;  %v2802_v21 = vrot.slane %v2800_v61, 2 }
 0x1b4   : > { %v1038_v14 = vpop.f32.mrf.mxu2  ;;  %v2806_v45 = vor.u32 %v2805_v36, %v2802_v21 }
 0x1b5   : > { %v1108_v47 = vadd.f32 %v1038_v14, %v812_v62  ;;  %v3186_v14 = vpack.c.b16 %v2710_v39, %v3185_v40 }
 0x1b6   : > { %v814_v13 = vpop.f32.mrf.mxu1 }
 0x1b7   : > { %v1515_v19 = vadd.f32 %v5757_v33, %v1108_v47  ;;  %v1863_v35 = vpop.f32.mrf.mxu0  ;;  %v815_v34 = vadd.f32 %v814_v13, %v5375_v63  ;;  %v4993_v33 = vld [vmem:[%s5151_s28 + $0x10] sm:$0xf0] }
 0x1b8   : > { %v5064_v13 = vld [vmem:[%s5151_s28 + $0x10] sm:$0xff] }
 0x1b9   : > { %4562 = vmatmul.msk.bf16.gmra.mxu1 %vm515_vm2, %v698_v44  ;;  %4584 = vmatmul.msk.bf16.gmra.mxu2 %vm515_vm2, %v904_v50  ;;  %v5833_v49 = vadd.f32 %v1860_v4, %v1515_v19  ;;  %v7009_v50 = vunpack.c.l.b16 %v5299_v23  ;;  %v5847_v4 = vld [vmem:[%s5151_s28 + $0x18] sm:$0xff]  ;;  %v5852_v47 = vpop.f32.mrf.mxu3  ;;  %v3535_v23 = vld [vmem:[%s6988_s3] sm:$0xff]  ;;  %v1956_v51 = vrot.slane %v5064_v13, 2 }
 0x1ba   : > { %4704 = vmatmul.msk.bf16.gmra.mxu0 %vm515_vm2, %v1726_v32  ;;  %v4731_v32 = vor.u32 %v4993_v33, %v4730_v42  ;;  %v2363_v5 = vrot.slane %v5847_v4, 2  ;;  %v3188_v42 = vrot.slane %v3186_v14, 3  ;;  %v3189_v33 = vrot.slane %v5783_v7, 3  ;;  %v4995_v14 = vld [vmem:[%s5151_s28 + $0x20] sm:$0xff] }
 0x1bb   : > { %v1953_v41 = vpack.c.b16 %v7009_v50, %v1952_v8  ;;  %v2807_v8 = vsel %vm2772_vm5, %v2797_v18, %v2806_v45 }
 0x1bc   : > { %v1041_v58 = vpop.f32.mrf.mxu2  ;;  %v2362_v19 = vrot.slane %v4731_v32, 2 }
 0x1bd   : > { %v1109_v27 = vadd.f32 %v1041_v58, %v815_v34  ;;  %v1955_v39 = vrot.slane %v1953_v41, 2  ;;  %v3536_v41 = vld [vmem:[%s6988_s3 + $0x8] sm:$0xff] }
 0x1be   : > { %v816_v38 = vpop.f32.mrf.mxu1  ;;  %v2364_v29 = vsel %vm1954_vm6, %v2362_v19, %v2363_v5 }
 0x1bf   : > { %v1516_v63 = vadd.f32 %v5770_v24, %v1109_v27  ;;  %v1865_v62 = vpop.f32.mrf.mxu0  ;;  %v5093_v24 = vmov 0   ;;  %v817_v34 = vadd.f32 %v816_v38, %v5384_v16  ;;  %v1957_v61 = vsel %vm1954_vm6, %v1955_v39, %v1956_v51  ;;  %v5892_v38 = vld [vmem:[%s5151_s28 + $0x30] sm:$0xff] }
 0x1c0   : > { %5053 = vset.pattern.permute.xlu0 %v5093_v24  ;;  %3822 = vst [vmem:[%s5859_s17] sm:$0xf] %v5093_v24  ;;  %5054 = vset.pattern.permute.xlu1 %v5093_v24  ;;  %v3190_v27 = vsel %vm3187_vm7, %v3188_v42, %v3189_v33  ;;  %v2809_v21 = vshrl.u32 %v5892_v38, 16  ;;  %v2812_v36 = vshll.u32 %v5892_v38, 16 }
 0x1c1   : > { %3823 = vst [vmem:[%s5859_s17 + $0x4] sm:$0xf] %v5093_v24  ;;  %3578 = vperm.xlu0 %5053, %v3535_v23   ;;  %5055 = vset.pattern.permute.xlu2 %v5093_v24  ;;  %v5866_v44 = vadd.f32 %v1863_v35, %v1516_v63  ;;  %v5881_v7 = vpop.f32.mrf.mxu3 }
 0x1c2   : > { %3836 = vst [vmem:[%s5859_s17 + $0xac] sm:$0xf] %v5093_v24  ;;  %4912 = vmatmul.msk.bf16.gmra.mxu3 %vm515_vm2, %v2807_v8  ;;  %v2811_v23 = vrot.slane %v2809_v21, 2  ;;  %v3537_v8 = vld [vmem:[%s6988_s3 + $0x10] sm:$0xff] }
 0x1c3   : > { %3837 = vst [vmem:[%s5859_s17 + $0xb0] sm:$0xf] %v5093_v24  ;;  %3588 = vperm.xlu1 %5054, %v3537_v8  }
 0x1c4   : > { %v1043_v40 = vpop.f32.mrf.mxu2  ;;  %3838 = vst [vmem:[%s5859_s17 + $0xb4] sm:$0x1] %v5093_v24  ;;  %v2814_v24 = vrot.slane %v2812_v36, 3 }
 0x1c5   : > { %v1110_v35 = vadd.f32 %v1043_v40, %v817_v34  ;;  %v5065_v40 = vld [vmem:[%s5151_s28 + $0x18] sm:$0xff] }
 0x1c6   : > { %v819_v58 = vpop.f32.mrf.mxu1  ;;  %v2815_v34 = vor.u32 %v2814_v24, %v2811_v23 }
 0x1c7   : > { %v1517_v18 = vadd.f32 %v5793_v22, %v1110_v35  ;;  %v1868_v16 = vpop.f32.mrf.mxu0  ;;  %v7010_v22 = vld [vmem:[#allocation3_spill] sm:$0xff]  ;;  %v1958_v35 = vrot.slane %v5065_v40, 2 }
 0x1c8   : > { %v820_v4 = vadd.f32 %v819_v58, %v7010_v22  ;;  %v2365_v58 = vrot.slane %v4995_v14, 2 }
 0x1c9   : > { %4706 = vmatmul.msk.bf16.vlgmr.msra.gmra.mxu1 %vm515_vm2, %v1957_v61  ;;  %4808 = vmatmul.msk.bf16.vlgmr.msra.gmra.mxu2 %vm515_vm2, %v2364_v29  ;;  %v5885_v50 = vadd.f32 %v1865_v62, %v1517_v18  ;;  %v5899_v19 = vpop.f32.mrf.mxu3  ;;  %v2816_v61 = vsel %vm2772_vm5, %v2806_v45, %v2815_v34  ;;  %v7011_v29 = vld [vmem:[#allocation5_spill] sm:$0xff] }
 0x1ca   : > { %4932 = vmatmul.msk.bf16.vlgmr.msra.gmra.mxu0 %vm515_vm2, %v3190_v27  ;;  %3583 = vperm.xlu0 %5053, %v3536_v41  }
 0x1cc   : > { %v1046_v32 = vpop.f32.mrf.mxu2 }
 0x1cd   : > { %v1111_v63 = vadd.f32 %v1046_v32, %v820_v4  ;;  %v1959_v4 = vsel %vm1954_vm6, %v1956_v51, %v1958_v35  ;;  %v3538_v51 = vld [vmem:[%s6988_s3 + $0x18] sm:$0xff] }
 0x1ce   : > { %v821_v62 = vpop.f32.mrf.mxu1  ;;  %3593 = vperm.xlu1 %5054, %v3538_v51   ;;  %v3193_v51 = vrot.slane %v5837_v2, 3 }
 0x1cf   : > { %v1518_v39 = vadd.f32 %v5804_v6, %v1111_v63  ;;  %v1870_v13 = vpop.f32.mrf.mxu0  ;;  %v822_v18 = vadd.f32 %v821_v62, %v7011_v29  ;;  %v3191_v6 = vrot.slane %v5812_v53, 3 }
 0x1d1   : > { %v5904_v42 = vadd.f32 %v1868_v16, %v1518_v39  ;;  %v2366_v16 = vsel %vm1954_vm6, %v2363_v5, %v2365_v58  ;;  %v3192_v45 = vsel %vm3187_vm7, %v3189_v33, %v3191_v6  ;;  %v5915_v36 = vpop.f32.mrf.mxu3  ;;  %v5926_v5 = vld [vmem:[%s5151_s28 + $0x38] sm:$0xff]  ;;  %v4996_v39 = vld [vmem:[%s5151_s28 + $0x28] sm:$0xff] }
 0x1d2   : > { %4913 = vmatmul.msk.bf16.gmra.mxu3 %vm515_vm2, %v2816_v61  ;;  %v2818_v62 = vshrl.u32 %v5926_v5, 16  ;;  %v2821_v14 = vshll.u32 %v5926_v5, 16 }
 0x1d4   : > { %v1048_v27 = vpop.f32.mrf.mxu2  ;;  %v2823_v8 = vrot.slane %v2821_v14, 3 }
 0x1d5   : > { %v1112_v41 = vadd.f32 %v1048_v27, %v822_v18 }
 0x1d6   : > { %v824_v22 = vpop.f32.mrf.mxu1 }
 0x1d7   : > { %v1519_v32 = vadd.f32 %v5819_v28, %v1112_v41  ;;  %v1873_v21 = vpop.f32.mrf.mxu0  ;;  %v7012_v28 = vld [vmem:[#allocation7_spill] sm:$0xff]  ;;  %v5066_v41 = vld [vmem:[%s5151_s28 + $0x20] sm:$0xff] }
 0x1d8   : > { %v825_v63 = vadd.f32 %v824_v22, %v7012_v28  ;;  %v1960_v22 = vrot.slane %v5066_v41, 2 }
 0x1d9   : > { %4707 = vmatmul.msk.bf16.gmra.mxu1 %vm515_vm2, %v1959_v4  ;;  %4809 = vmatmul.msk.bf16.gmra.mxu2 %vm515_vm2, %v2366_v16  ;;  %v5919_v53 = vadd.f32 %v1870_v13, %v1519_v32  ;;  %v2820_v13 = vrot.slane %v2818_v62, 2  ;;  %v5933_v29 = vpop.f32.mrf.mxu3  ;;  %v2367_v4 = vrot.slane %v4996_v39, 2  ;;  %v7014_v32 = vld [vmem:[#allocation9_spill] sm:$0xff] }
 0x1da   : > { %4933 = vmatmul.msk.bf16.gmra.mxu0 %vm515_vm2, %v3192_v45 }
 0x1db   : > { %v2824_v18 = vor.u32 %v2823_v8, %v2820_v13 }
 0x1dc   : > { %v1051_v33 = vpop.f32.mrf.mxu2 }
 0x1dd   : > { %v1113_v23 = vadd.f32 %v1051_v33, %v825_v63  ;;  %v2825_v16 = vsel %vm2772_vm5, %v2815_v34, %v2824_v18  ;;  %v1961_v33 = vsel %vm1954_vm6, %v1958_v35, %v1960_v22  ;;  %v3194_v34 = vsel %vm3187_vm7, %v3191_v6, %v3193_v51  ;;  %v7016_v35 = vld [vmem:[#allocation11_spill] sm:$0xff] }
 0x1de   : > { %v826_v24 = vpop.f32.mrf.mxu1 }
 0x1df   : > { %v1520_v40 = vadd.f32 %v5828_v10, %v1113_v23  ;;  %v1875_v61 = vpop.f32.mrf.mxu0  ;;  %v827_v45 = vadd.f32 %v826_v24, %v7014_v32  ;;  %v5954_v24 = vld [vmem:[%s5151_s28 + $0x40] sm:$0xff] }
 0x1e0   : > { %v2830_v6 = vshll.u32 %v5954_v24, 16 }
 0x1e1   : > { %v5935_v27 = vadd.f32 %v1873_v21, %v1520_v40  ;;  %v2368_v21 = vsel %vm1954_vm6, %v2365_v58, %v2367_v4  ;;  %v5946_v23 = vpop.f32.mrf.mxu3  ;;  %v5960_v40 = vld [vmem:[%s5151_s28 + $0x30] sm:$0xff] }
 0x1e2   : > { %4914 = vmatmul.msk.bf16.gmra.mxu3 %vm515_vm2, %v2825_v16  ;;  %v2832_v16 = vrot.slane %v2830_v6, 3 }
 0x1e3   : > { %7013 = vst [vmem:[#allocation3_spill] sm:$0xff] %v5935_v27  ;;  %v6240_v27 = vld [vmem:[%s5151_s28 + $0x60] sm:$0xff] }
 0x1e4   : > { %v1053_v28 = vpop.f32.mrf.mxu2 }
 0x1e5   : > { %v1114_v10 = vadd.f32 %v1053_v28, %v827_v45  ;;  %v3541_v28 = vld [vmem:[%s6988_s3 + $0x30] sm:$0xff] }
 0x1e6   : > { %v829_v63 = vpop.f32.mrf.mxu1  ;;  %3608 = vperm.xlu0 %5053, %v3541_v28  }
 0x1e7   : > { %v1521_v62 = vadd.f32 %v5852_v47, %v1114_v10  ;;  %v1878_v14 = vpop.f32.mrf.mxu0  ;;  %v830_v58 = vadd.f32 %v829_v63, %v7016_v35  ;;  %v2827_v47 = vshrl.u32 %v5954_v24, 16  ;;  %v7018_v35 = vld [vmem:[#allocation12_spill] sm:$0xff] }
 0x1e9   : > { %4708 = vmatmul.msk.bf16.gmra.mxu1 %vm515_vm2, %v1961_v33  ;;  %4810 = vmatmul.msk.bf16.gmra.mxu2 %vm515_vm2, %v2368_v21  ;;  %v5950_v2 = vadd.f32 %v1875_v61, %v1521_v62  ;;  %v2829_v41 = vrot.slane %v2827_v47, 2  ;;  %v5963_v45 = vpop.f32.mrf.mxu3  ;;  %v5067_v33 = vld [vmem:[%s5151_s28 + $0x28] sm:$0xff]  ;;  %v2369_v62 = vrot.slane %v5960_v40, 2 }
 0x1ea   : > { %4934 = vmatmul.msk.bf16.gmra.mxu0 %vm515_vm2, %v3194_v34  ;;  %v1962_v21 = vrot.slane %v5067_v33, 2 }
 0x1eb   : > { %7015 = vst [vmem:[#allocation5_spill] sm:$0xff] %v5950_v2  ;;  %v2833_v10 = vor.u32 %v2832_v16, %v2829_v41 }
 0x1ec   : > { %v1056_v39 = vpop.f32.mrf.mxu2 }
 0x1ed   : > { %v1115_v13 = vadd.f32 %v1056_v39, %v830_v58  ;;  %v2834_v34 = vsel %vm2772_vm5, %v2824_v18, %v2833_v10 }
 0x1ee   : > { %v831_v8 = vpop.f32.mrf.mxu1 }
 0x1ef   : > { %v1522_v61 = vadd.f32 %v5881_v7, %v1115_v13  ;;  %v1880_v32 = vpop.f32.mrf.mxu0  ;;  %v832_v58 = vadd.f32 %v831_v8, %v7018_v35  ;;  %v3195_v7 = vrot.slane %v5892_v38, 3  ;;  %v1963_v13 = vsel %vm1954_vm6, %v1960_v22, %v1962_v21  ;;  %v3539_v22 = vld [vmem:[%s6988_s3 + $0x20] sm:$0xff]  ;;  %v4998_v35 = vld [vmem:[%s5151_s28 + $0x38] sm:$0xff] }
 0x1f0   : > { %3598 = vperm.xlu2 %5055, %v3539_v22   ;;  %v5068_v22 = vld [vmem:[%s5151_s28 + $0x30] sm:$0xff] }
 0x1f1   : > { %v5968_v63 = vadd.f32 %v1878_v14, %v1522_v61  ;;  %v2370_v14 = vsel %vm1954_vm6, %v2367_v4, %v2369_v62  ;;  %v3196_v40 = vsel %vm3187_vm7, %v3193_v51, %v3195_v7  ;;  %v5980_v18 = vpop.f32.mrf.mxu3  ;;  %v5994_v4 = vld [vmem:[%s5151_s28 + $0x48] sm:$0xff]  ;;  %v7020_v51 = vld [vmem:[#allocation13_spill] sm:$0xff] }
 0x1f2   : > { %4915 = vmatmul.msk.bf16.gmra.mxu3 %vm515_vm2, %v2834_v34  ;;  %v2839_v28 = vshll.u32 %v5994_v4, 16 }
 0x1f3   : > { %7017 = vst [vmem:[#allocation7_spill] sm:$0xff] %v5968_v63 }
 0x1f4   : > { %v1058_v39 = vpop.f32.mrf.mxu2 }
 0x1f5   : > { %v1116_v47 = vadd.f32 %v1058_v39, %v832_v58  ;;  %v2841_v39 = vrot.slane %v2839_v28, 3  ;;  %v3197_v28 = vrot.slane %v5926_v5, 3 }
 0x1f6   : > { %v834_v6 = vpop.f32.mrf.mxu1 }
 0x1f7   : > { %v1523_v41 = vadd.f32 %v5899_v19, %v1116_v47  ;;  %v1883_v16 = vpop.f32.mrf.mxu0  ;;  %v3542_v19 = vld [vmem:[%s6988_s3 + $0x38] sm:$0xff]  ;;  %v835_v8 = vadd.f32 %v834_v6, %v7020_v51  ;;  %v3540_v6 = vld [vmem:[%s6988_s3 + $0x28] sm:$0xff]  ;;  %v2371_v51 = vrot.slane %v4998_v35, 2 }
 0x1f8   : > { %3613 = vperm.xlu1 %5054, %v3542_v19   ;;  %v1964_v19 = vrot.slane %v5068_v22, 2  ;;  %3603 = vperm.xlu2 %5055, %v3540_v6  }
 0x1f9   : > { %4709 = vmatmul.msk.bf16.gmra.mxu1 %vm515_vm2, %v1963_v13  ;;  %4811 = vmatmul.msk.bf16.gmra.mxu2 %vm515_vm2, %v2370_v14  ;;  %v5984_v38 = vadd.f32 %v1880_v32, %v1523_v41  ;;  %v2836_v32 = vshrl.u32 %v5994_v4, 16  ;;  %v6001_v14 = vpop.f32.mrf.mxu3 }
 0x1fa   : > { %4935 = vmatmul.msk.bf16.gmra.mxu0 %vm515_vm2, %v3196_v40 }
 0x1fb   : > { %7019 = vst [vmem:[#allocation9_spill] sm:$0xff] %v5984_v38  ;;  %v2838_v58 = vrot.slane %v2836_v32, 2 }
 0x1fc   : > { %v1061_v61 = vpop.f32.mrf.mxu2 }
 0x1fd   : > { %v1117_v33 = vadd.f32 %v1061_v61, %v835_v8  ;;  %v2842_v41 = vor.u32 %v2841_v39, %v2838_v58  ;;  %v7022_v61 = vld [vmem:[#allocation14_spill] sm:$0xff]  ;;  %v1965_v39 = vsel %vm1954_vm6, %v1962_v21, %v1964_v19  ;;  %v3544_v21 = vld [vmem:[%s6988_s3 + $0x48] sm:$0xff] }
 0x1fe   : > { %v836_v34 = vpop.f32.mrf.mxu1  ;;  %3623 = vperm.xlu0 %5053, %v3544_v21  }
 0x1ff   : > { %v1524_v47 = vadd.f32 %v5915_v36, %v1117_v33  ;;  %v1885_v13 = vpop.f32.mrf.mxu0  ;;  %v2843_v8 = vsel %vm2772_vm5, %v2833_v10, %v2842_v41  ;;  %v837_v32 = vadd.f32 %v836_v34, %v7022_v61  ;;  %v3198_v10 = vsel %vm3187_vm7, %v3195_v7, %v3197_v28 }
 0x201   : > { %v6006_v40 = vadd.f32 %v1883_v16, %v1524_v47  ;;  %v2372_v16 = vsel %vm1954_vm6, %v2369_v62, %v2371_v51  ;;  %v6017_v34 = vpop.f32.mrf.mxu3  ;;  %v6028_v62 = vld [vmem:[%s5151_s28 + $0x50] sm:$0xff] }
 0x202   : > { %4916 = vmatmul.msk.bf16.gmra.mxu3 %vm515_vm2, %v2843_v8  ;;  %v2845_v22 = vshrl.u32 %v6028_v62, 16  ;;  %v2848_v8 = vshll.u32 %v6028_v62, 16 }
 0x203   : > { %7021 = vst [vmem:[#allocation11_spill] sm:$0xff] %v6006_v40 }
 0x204   : > { %v1063_v36 = vpop.f32.mrf.mxu2 }
 0x205   : > { %v1118_v33 = vadd.f32 %v1063_v36, %v837_v32  ;;  %v4999_v32 = vld [vmem:[%s5151_s28 + $0x40] sm:$0xff]  ;;  %v2847_v36 = vrot.slane %v2845_v22, 2  ;;  %v7026_v22 = vld [vmem:[#allocation16_spill] sm:$0xff] }
 0x206   : > { %v839_v58 = vpop.f32.mrf.mxu1 }
 0x207   : > { %v1525_v47 = vadd.f32 %v5933_v29, %v1118_v33  ;;  %v1888_v35 = vpop.f32.mrf.mxu0  ;;  %v7024_v29 = vld [vmem:[#allocation15_spill] sm:$0xff]  ;;  %v2850_v33 = vrot.slane %v2848_v8, 3 }
 0x208   : > { %v840_v6 = vadd.f32 %v839_v58, %v7024_v29  ;;  %v3545_v58 = vld [vmem:[%s6988_s3 + $0x50] sm:$0xff]  ;;  %v5069_v29 = vld [vmem:[%s5151_s28 + $0x38] sm:$0xff] }
 0x209   : > { %4710 = vmatmul.msk.bf16.gmra.mxu1 %vm515_vm2, %v1965_v39  ;;  %4812 = vmatmul.msk.bf16.gmra.mxu2 %vm515_vm2, %v2372_v16  ;;  %v6021_v5 = vadd.f32 %v1885_v13, %v1525_v47  ;;  %v6035_v47 = vpop.f32.mrf.mxu3 }
 0x20a   : > { %4936 = vmatmul.msk.bf16.gmra.mxu0 %vm515_vm2, %v3198_v10  ;;  %v2851_v10 = vor.u32 %v2850_v33, %v2847_v36  ;;  %3628 = vperm.xlu1 %5054, %v3545_v58  }
 0x20b   : > { %7023 = vst [vmem:[#allocation12_spill] sm:$0xff] %v6021_v5  ;;  %v1966_v5 = vrot.slane %v5069_v29, 2 }
 0x20c   : > { %v1066_v7 = vpop.f32.mrf.mxu2 }
 0x20d   : > { %v1119_v61 = vadd.f32 %v1066_v7, %v840_v6  ;;  %v2373_v6 = vrot.slane %v4999_v32, 2  ;;  %v2852_v7 = vsel %vm2772_vm5, %v2842_v41, %v2851_v10  ;;  %v1967_v36 = vsel %vm1954_vm6, %v1964_v19, %v1966_v5  ;;  %v3543_v19 = vld [vmem:[%s6988_s3 + $0x40] sm:$0xff] }
 0x20e   : > { %v841_v13 = vpop.f32.mrf.mxu1  ;;  %3618 = vperm.xlu2 %5055, %v3543_v19   ;;  %v5070_v19 = vld [vmem:[%s5151_s28 + $0x40] sm:$0xff] }
 0x20f   : > { %v1526_v39 = vadd.f32 %v5946_v23, %v1119_v61  ;;  %v1890_v16 = vpop.f32.mrf.mxu0  ;;  %v842_v8 = vadd.f32 %v841_v13, %v7026_v22  ;;  %v3199_v23 = vrot.slane %v5954_v24, 3 }
 0x211   : > { %v6040_v21 = vadd.f32 %v1888_v35, %v1526_v39  ;;  %v2374_v35 = vsel %vm1954_vm6, %v2371_v51, %v2373_v6  ;;  %v3200_v41 = vsel %vm3187_vm7, %v3197_v28, %v3199_v23  ;;  %v6051_v32 = vpop.f32.mrf.mxu3  ;;  %v6062_v51 = vld [vmem:[%s5151_s28 + $0x58] sm:$0xff] }
 0x212   : > { %4917 = vmatmul.msk.bf16.gmra.mxu3 %vm515_vm2, %v2852_v7  ;;  %v2854_v13 = vshrl.u32 %v6062_v51, 16  ;;  %v2857_v58 = vshll.u32 %v6062_v51, 16  ;;  %v5000_v7 = vld [vmem:[%s5151_s28 + $0x48] sm:$0xff] }
 0x213   : > { %7025 = vst [vmem:[#allocation13_spill] sm:$0xff] %v6040_v21 }
 0x214   : > { %v1068_v61 = vpop.f32.mrf.mxu2  ;;  %v2856_v22 = vrot.slane %v2854_v13, 2 }
 0x215   : > { %v1120_v40 = vadd.f32 %v1068_v61, %v842_v8  ;;  %v2859_v8 = vrot.slane %v2857_v58, 3  ;;  %v3201_v58 = vrot.slane %v5994_v4, 3 }
 0x216   : > { %v844_v38 = vpop.f32.mrf.mxu1 }
 0x217   : > { %v1527_v33 = vadd.f32 %v5963_v45, %v1120_v40  ;;  %v1893_v39 = vpop.f32.mrf.mxu0  ;;  %v7028_v45 = vld [vmem:[#allocation2_spill] sm:$0xff] }
 0x218   : > { %v845_v40 = vadd.f32 %v844_v38, %v7028_v45  ;;  %v3547_v38 = vld [vmem:[%s6988_s3 + $0x60] sm:$0xff]  ;;  %v1968_v45 = vrot.slane %v5070_v19, 2 }
 0x219   : > { %4711 = vmatmul.msk.bf16.gmra.mxu1 %vm515_vm2, %v1967_v36  ;;  %4813 = vmatmul.msk.bf16.gmra.mxu2 %vm515_vm2, %v2374_v35  ;;  %v6055_v24 = vadd.f32 %v1890_v16, %v1527_v33  ;;  %v1490_v35 = vpop.f32.mrf.mxu3  ;;  %v2860_v33 = vor.u32 %v2859_v8, %v2856_v22 }
 0x21a   : > { %4937 = vmatmul.msk.bf16.gmra.mxu0 %vm515_vm2, %v3200_v41  ;;  %3638 = vperm.xlu0 %5053, %v3547_v38   ;;  %v1969_v22 = vsel %vm1954_vm6, %v1966_v5, %v1968_v45  ;;  %v3548_v5 = vld [vmem:[%s6988_s3 + $0x68] sm:$0xff] }
 0x21b   : > { %7027 = vst [vmem:[#allocation14_spill] sm:$0xff] %v6055_v24  ;;  %v2375_v24 = vrot.slane %v5000_v7, 2  ;;  %3643 = vperm.xlu1 %5054, %v3548_v5   ;;  %v5071_v5 = vld [vmem:[%s5151_s28 + $0x48] sm:$0xff] }
 0x21c   : > { %v1071_v28 = vpop.f32.mrf.mxu2 }
 0x21d   : > { %v1121_v29 = vadd.f32 %v1071_v28, %v845_v40  ;;  %v2861_v40 = vsel %vm2772_vm5, %v2851_v10, %v2860_v33  ;;  %v7030_v28 = vld [vmem:[#allocation4_spill] sm:$0xff]  ;;  %v3202_v10 = vsel %vm3187_vm7, %v3199_v23, %v3201_v58 }
 0x21e   : > { %v846_v16 = vpop.f32.mrf.mxu1 }
 0x21f   : > { %v1528_v61 = vadd.f32 %v5980_v18, %v1121_v29  ;;  %v1895_v36 = vpop.f32.mrf.mxu0  ;;  %v847_v13 = vadd.f32 %v846_v16, %v7030_v28  ;;  %v6100_v28 = vld [vmem:[%s5151_s28 + $0x50] sm:$0xff] }
 0x221   : > { %v6072_v41 = vadd.f32 %v1893_v39, %v1528_v61  ;;  %v2376_v39 = vsel %vm1954_vm6, %v2373_v6, %v2375_v24  ;;  %v6094_v6 = vld [vmem:[%s5151_s28 + $0x60] sm:$0xff] }
 0x222   : > { %4918 = vmatmul.msk.bf16.gmra.mxu3 %vm515_vm2, %v2861_v40  ;;  %v2863_v38 = vshrl.u32 %v6094_v6, 16  ;;  %v2866_v19 = vshll.u32 %v6094_v6, 16 }
 0x223   : > { %7029 = vst [vmem:[#allocation15_spill] sm:$0xff] %v6072_v41  ;;  %v6083_v7 = vpop.f32.mrf.mxu3  ;;  %v7039_v41 = vrot.slane %v6094_v6, 3 }
 0x224   : > { %v1073_v18 = vpop.f32.mrf.mxu2 }
 0x225   : > { %v1122_v29 = vadd.f32 %v1073_v18, %v847_v13  ;;  %v2865_v13 = vrot.slane %v2863_v38, 2  ;;  %v2868_v18 = vrot.slane %v2866_v19, 3  ;;  %v7034_v38 = vld [vmem:[#allocation8_spill] sm:$0xff]  ;;  %v3203_v19 = vrot.slane %v6028_v62, 3  ;;  %v3827_v62 = vld [vmem:[%s5859_s17 + $0x8] sm:$0x3] }
 0x226   : > { %v849_v35 = vpop.f32.mrf.mxu1 }
 0x227   : > { %v1529_v8 = vadd.f32 %v6001_v14, %v1122_v29  ;;  %v1898_v61 = vpop.f32.mrf.mxu0  ;;  %v7032_v14 = vld [vmem:[#allocation6_spill] sm:$0xff] }
 0x228   : > { %v850_v16 = vadd.f32 %v849_v35, %v7032_v14  ;;  %v3546_v35 = vld [vmem:[%s6988_s3 + $0x58] sm:$0xff]  ;;  %v1970_v14 = vrot.slane %v5071_v5, 2  ;;  %v3828_v5 = vsel %vm3826_vm10, 0, %v3827_v62 }
 0x229   : > { %4712 = vmatmul.msk.bf16.gmra.mxu1 %vm515_vm2, %v1969_v22  ;;  %4814 = vmatmul.msk.bf16.gmra.mxu2 %vm515_vm2, %v2376_v39  ;;  %v6087_v4 = vadd.f32 %v1895_v36, %v1529_v8  ;;  %v2869_v8 = vor.u32 %v2868_v18, %v2865_v13  ;;  %3829 = vst [vmem:[%s5859_s17 + $0x8] sm:$0x3] %v3828_v5 }
 0x22a   : > { %4938 = vmatmul.msk.bf16.gmra.mxu0 %vm515_vm2, %v3202_v10  ;;  %3633 = vperm.xlu2 %5055, %v3546_v35  }
 0x22b   : > { %7031 = vst [vmem:[#allocation16_spill] sm:$0xff] %v6087_v4  ;;  %v6103_v39 = vpop.f32.mrf.mxu3 }
 0x22c   : > { %v1076_v23 = vpop.f32.mrf.mxu2 }
 0x22d   : > { %v1123_v40 = vadd.f32 %v1076_v23, %v850_v16  ;;  %v2377_v16 = vrot.slane %v6100_v28, 2  ;;  %v2870_v23 = vsel %vm2772_vm5, %v2860_v33, %v2869_v8 }
 0x22e   : > { %v851_v36 = vpop.f32.mrf.mxu1 }
 0x22f   : > { %v1530_v29 = vadd.f32 %v6017_v34, %v1123_v40  ;;  %v1900_v22 = vpop.f32.mrf.mxu0  ;;  %v852_v34 = vadd.f32 %v851_v36, %v7034_v38  ;;  %v3204_v36 = vsel %vm3187_vm7, %v3201_v58, %v3203_v19 }
 0x231   : > { %v6108_v10 = vadd.f32 %v1898_v61, %v1530_v29  ;;  %v1971_v61 = vsel %vm1954_vm6, %v1968_v45, %v1970_v14  ;;  %v2378_v29 = vsel %vm1954_vm6, %v2375_v24, %v2377_v16  ;;  %v7036_v45 = vld [vmem:[#allocation10_spill] sm:$0xff] }
 0x232   : > { %4919 = vmatmul.msk.bf16.gmra.mxu3 %vm515_vm2, %v2870_v23  ;;  %v3550_v23 = vld [vmem:[%s6988_s3 + $0x78] sm:$0xff] }
 0x233   : > { %7033 = vst [vmem:[#allocation2_spill] sm:$0xff] %v6108_v10  ;;  %v6122_v35 = vpop.f32.mrf.mxu3  ;;  %3653 = vperm.xlu0 %5053, %v3550_v23  }
 0x234   : > { %v1078_v40 = vpop.f32.mrf.mxu2 }
 0x235   : > { %v1124_v13 = vadd.f32 %v1078_v40, %v852_v34  ;;  %v3589_v2 = vpop.permute.xlu1 %3588 }
 0x236   : > { %v854_v18 = vpop.f32.mrf.mxu1 }
 0x237   : > { %v1531_v33 = vadd.f32 %v6035_v47, %v1124_v13  ;;  %v1903_v28 = vpop.f32.mrf.mxu0  ;;  %v6131_v47 = vld [vmem:[%s5151_s28 + $0x68] sm:$0xff]  ;;  %v855_v58 = vadd.f32 %v854_v18, %v7036_v45 }
 0x238   : > { %v2872_v34 = vshrl.u32 %v6131_v47, 16  ;;  %v2875_v40 = vshll.u32 %v6131_v47, 16 }
 0x239   : > { %4713 = vmatmul.msk.bf16.gmra.mxu1 %vm515_vm2, %v1971_v61  ;;  %4815 = vmatmul.msk.bf16.gmra.mxu2 %vm515_vm2, %v2378_v29  ;;  %v6127_v24 = vadd.f32 %v1900_v22, %v1531_v33  ;;  %v5002_v61 = vld [vmem:[%s5151_s28 + $0x58] sm:$0xff] }
 0x23a   : > { %4939 = vmatmul.msk.bf16.gmra.mxu0 %vm515_vm2, %v3204_v36  ;;  %v2874_v29 = vrot.slane %v2872_v34, 2  ;;  %v2877_v33 = vrot.slane %v2875_v40, 3  ;;  %v2379_v23 = vrot.slane %v5002_v61, 2 }
 0x23b   : > { %7035 = vst [vmem:[#allocation4_spill] sm:$0xff] %v6127_v24  ;;  %v6141_v18 = vpop.f32.mrf.mxu3  ;;  %v5072_v24 = vld [vmem:[%s5151_s28 + $0x50] sm:$0xff] }
 0x23c   : > { %v1081_v38 = vpop.f32.mrf.mxu2  ;;  %v2878_v5 = vor.u32 %v2877_v33, %v2874_v29  ;;  %v1972_v10 = vrot.slane %v5072_v24, 2  ;;  %v2380_v40 = vsel %vm1954_vm6, %v2377_v16, %v2379_v23  ;;  %v6170_v33 = vld [vmem:[%s5151_s28 + $0x60] sm:$0xff] }
 0x23d   : > { %v1125_v13 = vadd.f32 %v1081_v38, %v855_v58  ;;  %v3205_v58 = vrot.slane %v6062_v51, 3  ;;  %v3551_v38 = vld [vmem:[%s6988_s3 + $0x80] sm:$0xff]  ;;  %v6161_v51 = vld [vmem:[%s5151_s28 + $0x70] sm:$0xff] }
 0x23e   : > { %v856_v22 = vpop.f32.mrf.mxu1  ;;  %v2879_v4 = vsel %vm2772_vm5, %v2869_v8, %v2878_v5  ;;  %3658 = vperm.xlu1 %5054, %v3551_v38  }
 0x23f   : > { %v1532_v36 = vadd.f32 %v6051_v32, %v1125_v13  ;;  %v1905_v62 = vpop.f32.mrf.mxu0  ;;  %v3206_v13 = vsel %vm3187_vm7, %v3203_v19, %v3205_v58  ;;  %v2881_v19 = vshrl.u32 %v6161_v51, 16  ;;  %v2884_v22 = vshll.u32 %v6161_v51, 16 }
 0x241   : > { %v6143_v45 = vadd.f32 %v1903_v28, %v1532_v36  ;;  %v1973_v28 = vsel %vm1954_vm6, %v1970_v14, %v1972_v10  ;;  %v3549_v14 = vld [vmem:[%s6988_s3 + $0x70] sm:$0xff]  ;;  %v2883_v36 = vrot.slane %v2881_v19, 2  ;;  %v2886_v62 = vrot.slane %v2884_v22, 3 }
 0x242   : > { %4920 = vmatmul.msk.bf16.gmra.mxu3 %vm515_vm2, %v2879_v4  ;;  %3648 = vperm.xlu2 %5055, %v3549_v14  }
 0x243   : > { %7037 = vst [vmem:[#allocation6_spill] sm:$0xff] %v6143_v45 }
 0x244   : > { %v1083_v34 = vpop.f32.mrf.mxu2 }
 0x245   : > { %v6155_v8 = vpop.f32.mrf.mxu3  ;;  %v6176_v34 = vld [vmem:[%s6987_s2] ss:$0 sm:$0xff] }
 0x246   : > { %v2071_v32 = vpop.f32.mrf.mxu1 }
 0x247   : > { %v3304_v24 = vpop.f32.mrf.mxu0  ;;  %v2175_v4 = vadd.f32 %v2071_v32, %v5526_v37 }
 0x249   : > { %4714 = vmatmul.msk.bf16.gmra.mxu1 %vm515_vm2, %v1973_v28  ;;  %4816 = vmatmul.msk.bf16.gmra.mxu2 %vm515_vm2, %v2380_v40  ;;  %v6180_v28 = vor.u32 %v2886_v62, %v2883_v36 }
 0x24a   : > { %4940 = vmatmul.msk.bf16.gmra.mxu0 %vm515_vm2, %v3206_v13  ;;  %v3579_v13 = vpop.permute.xlu0 %3578 }
 0x24c   : > { %v2478_v16 = vpop.f32.mrf.mxu2 }
 0x24d   : > { %v2582_v61 = vadd.f32 %v2478_v16, %v2175_v4  ;;  %v6178_v32 = vpop.f32.mrf.mxu3  ;;  %v6183_v4 = vld [vmem:[%s5151_s28 + $0x58] sm:$0xff] }
 0x24e   : > { %v2073_v29 = vpop.f32.mrf.mxu1  ;;  %v6991_v14 = vrot.slane %v6183_v4, 2 }
 0x24f   : > { %v3140_v38 = vadd.f32 %v6083_v7, %v2582_v61  ;;  %v3306_v37 = vpop.f32.mrf.mxu0  ;;  %v2888_v7 = vsel %vm2772_vm5, %v2878_v5, %v6180_v28  ;;  %v2176_v19 = vadd.f32 %v2073_v29, %v5539_v3  ;;  %v7038_v5 = vrot.slane %v6170_v33, 2 }
 0x250   : > { %v1975_v3 = vsel %vm1954_vm6, %v1972_v10, %v6991_v14 }
 0x251   : > { %v3408_v40 = vadd.f32 %v3304_v24, %v3140_v38  ;;  %v3553_v24 = vld [vmem:[%s6988_s3 + $0x90] sm:$0xff]  ;;  %v2382_v29 = vsel %vm1954_vm6, %v2379_v23, %v7038_v5  ;;  %v6212_v23 = vld [vmem:[%s5151_s28 + $0x78] sm:$0xff] }
 0x252   : > { %4921 = vmatmul.msk.bf16.gmra.mxu3 %vm515_vm2, %v2888_v7  ;;  %3668 = vperm.xlu0 %5053, %v3553_v24   ;;  %v3208_v7 = vsel %vm3187_vm7, %v3205_v58, %v7039_v41 }
 0x253   : > { %v3453_v22 = vadd.f32 %v6176_v34, %v3408_v40 }
 0x254   : > { %v2480_v36 = vpop.f32.mrf.mxu2 }
 0x255   : > { %v2583_v62 = vadd.f32 %v2480_v36, %v2176_v19  ;;  %v3494_v38 = vmax.f32 %v3453_v22, 0.0  ;;  %v6206_v19 = vpop.f32.mrf.mxu3  ;;  %v2890_v36 = vshrl.u32 %v6212_v23, 16 }
 0x256   : > { %v2076_v16 = vpop.f32.mrf.mxu1 }
 0x257   : > { %v3141_v40 = vadd.f32 %v6103_v39, %v2583_v62  ;;  %v3781_v61 = vmul.f32 %v3579_v13, %v3494_v38  ;;  %v3309_v45 = vpop.f32.mrf.mxu0  ;;  %v2177_v41 = vadd.f32 %v2076_v16, %v5550_v52  ;;  %v2893_v62 = vshll.u32 %v6212_v23, 16  ;;  %v4334_v16 = vld [vmem:[%s5859_s17 + $0x8] sm:$0xe] }
 0x259   : > { %v3839_v22 = vpack.c.bf16 %v3781_v61, %v3781_v61  ;;  %4715 = vmatmul.msk.bf16.gmra.mxu1 %vm515_vm2, %v1975_v3  ;;  %4817 = vmatmul.msk.bf16.gmra.mxu2 %vm515_vm2, %v2382_v29  ;;  %v3409_v10 = vadd.f32 %v3306_v37, %v3141_v40  ;;  %v3554_v61 = vld [vmem:[%s6988_s3 + $0x98] sm:$0xff]  ;;  %v3584_v37 = vpop.permute.xlu0 %3583 }
 0x25a   : > { %4941 = vmatmul.msk.bf16.gmra.mxu0 %vm515_vm2, %v3208_v7  ;;  %3673 = vperm.xlu1 %5054, %v3554_v61   ;;  %v6229_v7 = vld [vmem:[%s5151_s28 + $0x68] sm:$0xff] }
 0x25b   : > { %v3883_v39 = vshrl.u32 %v3839_v22, 16  ;;  %v3886_v13 = vshll.u32 %v3839_v22, 16  ;;  %v3454_v58 = vadd.f32 %v6176_v34, %v3409_v10  ;;  %v2892_v22 = vrot.slane %v2890_v36, 2 }
 0x25c   : > { %v2483_v24 = vpop.f32.mrf.mxu2  ;;  %v2895_v10 = vrot.slane %v2893_v62, 3  ;;  %v1976_v36 = vrot.slane %v6240_v27, 2 }
 0x25d   : > { %v3885_v38 = vrot.slane %v3883_v39, 6  ;;  %v3888_v3 = vrot.slane %v3886_v13, 7  ;;  %v2584_v5 = vadd.f32 %v2483_v24, %v2177_v41  ;;  %v3495_v29 = vmax.f32 %v3454_v58, 0.0  ;;  %v6232_v58 = vpop.f32.mrf.mxu3 }
 0x25e   : > { %v2078_v40 = vpop.f32.mrf.mxu1  ;;  %v6234_v24 = vor.u32 %v2895_v10, %v2892_v22 }
 0x25f   : > { %v3889_v61 = vor.u32 %v3888_v3, %v3885_v38  ;;  %v3142_v39 = vadd.f32 %v6122_v35, %v2584_v5  ;;  %v3782_v13 = vmul.f32 %v3584_v37, %v3495_v29  ;;  %v3311_v41 = vpop.f32.mrf.mxu0  ;;  %v6993_v35 = vrot.slane %v6229_v7, 2 }
 0x260   : > { %v6992_v37 = vrot.slane %v6131_v47, 3  ;;  %v2897_v62 = vsel %vm2772_vm5, %v6180_v28, %v6234_v24  ;;  %v2178_v5 = vadd.f32 %v2078_v40, %v5564_v30  ;;  %v7045_v40 = vrot.slane %v6170_v33, 2 }
 0x261   : > { %v4335_v14 = vsel %vm6223_vm13, %v3889_v61, %v4334_v16  ;;  %v3410_v21 = vadd.f32 %v3309_v45, %v3142_v39  ;;  %v3840_v63 = vpack.c.bf16 %v3782_v13, %v3782_v13  ;;  %v7046_v13 = vrot.slane %v6094_v6, 3 }
 0x262   : > { %4336 = vst [vmem:[%s5859_s17 + $0x8] sm:$0xe] %v4335_v14  ;;  %v3552_v14 = vld [vmem:[%s6988_s3 + $0x88] sm:$0xff]  ;;  %4922 = vmatmul.msk.bf16.gmra.mxu3 %vm515_vm2, %v2897_v62  ;;  %v2384_v39 = vsel %vm1954_vm6, %v7045_v40, %v6993_v35 }
 0x263   : > { %v3892_v38 = vshrl.u32 %v3840_v63, 16  ;;  %v3895_v3 = vshll.u32 %v3840_v63, 16  ;;  %v3455_v45 = vadd.f32 %v6176_v34, %v3410_v21  ;;  %3663 = vperm.xlu2 %5055, %v3552_v14   ;;  %v7044_v21 = vrot.slane %v6183_v4, 2 }
 0x264   : > { %v2485_v29 = vpop.f32.mrf.mxu2  ;;  %v3210_v62 = vsel %vm3187_vm7, %v7046_v13, %v6992_v37 }
 0x265   : > { %v3894_v52 = vrot.slane %v3892_v38, 6  ;;  %v3897_v16 = vrot.slane %v3895_v3, 7  ;;  %v2585_v22 = vadd.f32 %v2485_v29, %v2178_v5  ;;  %v3496_v10 = vmax.f32 %v3455_v45, 0.0  ;;  %v6276_v14 = vpop.f32.mrf.mxu3 }
 0x266   : > { %v2081_v30 = vpop.f32.mrf.mxu1  ;;  %v1977_v28 = vsel %vm1954_vm6, %v7044_v21, %v1976_v36  ;;  %v3890_v38 = vrot.slane %v3889_v61, 4  ;;  %v3594_v21 = vpop.permute.xlu1 %3593 }
 0x267   : > { %v3898_v3 = vor.u32 %v3897_v16, %v3894_v52  ;;  %v3143_v5 = vadd.f32 %v6141_v18, %v2585_v22  ;;  %v3783_v4 = vmul.f32 %v3589_v2, %v3496_v10  ;;  %v3314_v45 = vpop.f32.mrf.mxu0  ;;  %v3556_v18 = vld [vmem:[%s6988_s3 + $0xa8] sm:$0xff]  ;;  %v6288_v2 = vld [vmem:[%s5151_s28 + $0x80] sm:$0xff]  ;;  %v2179_v16 = vadd.f32 %v2081_v30, %v5577_v15  ;;  %v6298_v30 = vld [vmem:[%s5151_s28 + $0x70] sm:$0xff] }
 0x268   : > { %3683 = vperm.xlu0 %5053, %v3556_v18   ;;  %v2902_v40 = vshll.u32 %v6288_v2, 16 }
 0x269   : > { %v3899_v33 = vsel %vm6256_vm15, %v3890_v38, %v3898_v3  ;;  %v3841_v29 = vpack.c.bf16 %v3783_v4, %v3783_v4  ;;  %4716 = vmatmul.msk.bf16.gmra.mxu1 %vm515_vm2, %v1977_v28  ;;  %4818 = vmatmul.msk.bf16.gmra.mxu2 %vm515_vm2, %v2384_v39  ;;  %v3411_v6 = vadd.f32 %v3311_v41, %v3143_v5  ;;  %v3557_v41 = vld [vmem:[%s6988_s3 + $0xb0] sm:$0xff]  ;;  %v2899_v28 = vshrl.u32 %v6288_v2, 16 }
 0x26a   : > { %4337 = vst [vmem:[%s5859_s17 + $0xc] sm:$0xf] %v3899_v33  ;;  %4942 = vmatmul.msk.bf16.gmra.mxu0 %vm515_vm2, %v3210_v62  ;;  %3688 = vperm.xlu1 %5054, %v3557_v41   ;;  %v2904_v4 = vrot.slane %v2902_v40, 3  ;;  %v3900_v33 = vrot.slane %v3898_v3, 4 }
 0x26b   : > { %v3902_v61 = vshrl.u32 %v3841_v29, 16  ;;  %v3905_v52 = vshll.u32 %v3841_v29, 16  ;;  %v3456_v22 = vadd.f32 %v6176_v34, %v3411_v6  ;;  %v2901_v5 = vrot.slane %v2899_v28, 2 }
 0x26c   : > { %v2488_v10 = vpop.f32.mrf.mxu2  ;;  %v2385_v28 = vrot.slane %v6298_v30, 2 }
 0x26d   : > { %v3904_v39 = vrot.slane %v3902_v61, 6  ;;  %v3907_v13 = vrot.slane %v3905_v52, 7  ;;  %v2586_v62 = vadd.f32 %v2488_v10, %v2179_v16  ;;  %v3497_v38 = vmax.f32 %v3456_v22, 0.0  ;;  %v6301_v37 = vpop.f32.mrf.mxu3  ;;  %v3599_v22 = vpop.permute.xlu2 %3598  ;;  %v6309_v10 = vld [vmem:[%s5151_s28 + $0x68] sm:$0xff] }
 0x26e   : > { %v2083_v15 = vpop.f32.mrf.mxu1  ;;  %v6303_v35 = vor.u32 %v2904_v4, %v2901_v5  ;;  %v1978_v3 = vrot.slane %v6309_v10, 2 }
 0x26f   : > { %v3908_v29 = vor.u32 %v3907_v13, %v3904_v39  ;;  %v3144_v6 = vadd.f32 %v6155_v8, %v2586_v62  ;;  %v3784_v18 = vmul.f32 %v3594_v21, %v3497_v38  ;;  %v3316_v41 = vpop.f32.mrf.mxu0  ;;  %v3211_v8 = vrot.slane %v6161_v51, 3  ;;  %v3559_v21 = vld [vmem:[%s6988_s3 + $0xc0] sm:$0xff]  ;;  %v3560_v38 = vld [vmem:[%s6988_s3 + $0xc8] sm:$0xff] }
 0x270   : > { %v2906_v40 = vsel %vm2772_vm5, %v6234_v24, %v6303_v35  ;;  %v2180_v13 = vadd.f32 %v2083_v15, %v5591_v56  ;;  %3698 = vperm.xlu0 %5053, %v3559_v21   ;;  %v1979_v56 = vsel %vm1954_vm6, %v1976_v36, %v1978_v3  ;;  %v7047_v15 = vrot.slane %v6229_v7, 2 }
 0x271   : > { %v3909_v61 = vsel %vm6256_vm15, %v3900_v33, %v3908_v29  ;;  %v3412_v52 = vadd.f32 %v3314_v45, %v3144_v6  ;;  %v3842_v16 = vpack.c.bf16 %v3784_v18, %v3784_v18  ;;  %v3910_v21 = vrot.slane %v3908_v29, 4  ;;  %v6354_v29 = vld [vmem:[%s5151_s28 + $0x88] sm:$0xff] }
 0x272   : > { %4338 = vst [vmem:[%s5859_s17 + $0x10] sm:$0xf] %v3909_v61  ;;  %4923 = vmatmul.msk.bf16.gmra.mxu3 %vm515_vm2, %v2906_v40  ;;  %3703 = vperm.xlu1 %5054, %v3560_v38   ;;  %v2386_v61 = vsel %vm1954_vm6, %v7047_v15, %v2385_v28 }
 0x273   : > { %v3912_v45 = vshrl.u32 %v3842_v16, 16  ;;  %v3915_v39 = vshll.u32 %v3842_v16, 16  ;;  %v3457_v62 = vadd.f32 %v6176_v34, %v3412_v52  ;;  %v7048_v52 = vrot.slane %v6131_v47, 3 }
 0x274   : > { %v2490_v5 = vpop.f32.mrf.mxu2 }
 0x275   : > { %v3914_v4 = vrot.slane %v3912_v45, 6  ;;  %v3917_v33 = vrot.slane %v3915_v39, 7  ;;  %v2587_v6 = vadd.f32 %v2490_v5, %v2180_v13  ;;  %v3498_v18 = vmax.f32 %v3457_v62, 0.0  ;;  %v6342_v36 = vpop.f32.mrf.mxu3 }
 0x276   : > { %v2086_v24 = vpop.f32.mrf.mxu1  ;;  %v3212_v16 = vsel %vm3187_vm7, %v7048_v52, %v3211_v8 }
 0x277   : > { %v3918_v40 = vor.u32 %v3917_v33, %v3914_v4  ;;  %v3145_v45 = vadd.f32 %v6178_v32, %v2587_v6  ;;  %v3785_v27 = vmul.f32 %v3599_v22, %v3498_v18  ;;  %v3319_v39 = vpop.f32.mrf.mxu0  ;;  %v3562_v32 = vld [vmem:[%s6988_s3 + $0xd8] sm:$0xff]  ;;  %v2181_v38 = vadd.f32 %v2086_v24, %v5604_v26  ;;  %v3563_v4 = vld [vmem:[%s6988_s3 + $0xe0] sm:$0xff]  ;;  %v3604_v6 = vpop.permute.xlu2 %3603 }
 0x278   : > { %3713 = vperm.xlu0 %5053, %v3562_v32   ;;  %v2908_v18 = vshrl.u32 %v6354_v29, 16  ;;  %v2911_v26 = vshll.u32 %v6354_v29, 16 }
 0x279   : > { %v3919_v7 = vsel %vm6256_vm15, %v3910_v21, %v3918_v40  ;;  %v3843_v13 = vpack.c.bf16 %v3785_v27, %v3785_v27  ;;  %4717 = vmatmul.msk.bf16.gmra.mxu1 %vm515_vm2, %v1979_v56  ;;  %4819 = vmatmul.msk.bf16.gmra.mxu2 %vm515_vm2, %v2386_v61  ;;  %v3413_v47 = vadd.f32 %v3316_v41, %v3145_v45  ;;  %v3555_v41 = vld [vmem:[%s6988_s3 + $0xa0] sm:$0xff]  ;;  %v3920_v27 = vrot.slane %v3918_v40, 4 }
 0x27a   : > { %4339 = vst [vmem:[%s5859_s17 + $0x14] sm:$0xf] %v3919_v7  ;;  %4943 = vmatmul.msk.bf16.gmra.mxu0 %vm515_vm2, %v3212_v16  ;;  %3678 = vperm.xlu2 %5055, %v3555_v41   ;;  %v6367_v16 = vld [vmem:[%s5151_s28 + $0x78] sm:$0xff]  ;;  %v2910_v21 = vrot.slane %v2908_v18, 2  ;;  %v2913_v45 = vrot.slane %v2911_v26, 3 }
 0x27b   : > { %v3922_v22 = vshrl.u32 %v3843_v13, 16  ;;  %v3925_v62 = vshll.u32 %v3843_v13, 16  ;;  %v3458_v5 = vadd.f32 %v6176_v34, %v3413_v47  ;;  %3718 = vperm.xlu1 %5054, %v3563_v4   ;;  %v2387_v40 = vrot.slane %v6367_v16, 2 }
 0x27c   : > { %v2493_v33 = vpop.f32.mrf.mxu2  ;;  %v6372_v4 = vor.u32 %v2913_v45, %v2910_v21  ;;  %v3609_v21 = vpop.permute.xlu0 %3608 }
 0x27d   : > { %v3924_v24 = vrot.slane %v3922_v22, 6  ;;  %v3927_v56 = vrot.slane %v3925_v62, 7  ;;  %v2588_v15 = vadd.f32 %v2493_v33, %v2181_v38  ;;  %v3499_v61 = vmax.f32 %v3458_v5, 0.0  ;;  %v6370_v41 = vpop.f32.mrf.mxu3  ;;  %v6378_v5 = vld [vmem:[%s5151_s28 + $0x70] sm:$0xff] }
 0x27e   : > { %v2088_v52 = vpop.f32.mrf.mxu1  ;;  %v1980_v33 = vrot.slane %v6378_v5, 2  ;;  %v2915_v18 = vsel %vm2772_vm5, %v6303_v35, %v6372_v4 }
 0x27f   : > { %v3928_v7 = vor.u32 %v3927_v56, %v3924_v24  ;;  %v3146_v13 = vadd.f32 %v6206_v19, %v2588_v15  ;;  %v3786_v47 = vmul.f32 %v3604_v6, %v3499_v61  ;;  %v3321_v32 = vpop.f32.mrf.mxu0  ;;  %v3213_v19 = vrot.slane %v6212_v23, 3  ;;  %v3565_v6 = vld [vmem:[%s6988_s3 + $0xf0] sm:$0xff]  ;;  %v3566_v15 = vld [vmem:[%s6988_s3 + $0xf8] sm:$0xff] }
 0x280   : > { %v2182_v24 = vadd.f32 %v2088_v52, %v5618_v11  ;;  %3728 = vperm.xlu0 %5053, %v3565_v6   ;;  %v1981_v11 = vsel %vm1954_vm6, %v1978_v3, %v1980_v33  ;;  %v2388_v52 = vsel %vm1954_vm6, %v2385_v28, %v2387_v40  ;;  %v6423_v28 = vld [vmem:[%s5151_s28 + $0x90] sm:$0xff] }
 0x281   : > { %v3929_v22 = vsel %vm6256_vm15, %v3920_v27, %v3928_v7  ;;  %v3414_v62 = vadd.f32 %v3319_v39, %v3146_v13  ;;  %v3844_v38 = vpack.c.bf16 %v3786_v47, %v3786_v47 }
 0x282   : > { %4340 = vst [vmem:[%s5859_s17 + $0x18] sm:$0xf] %v3929_v22  ;;  %4924 = vmatmul.msk.bf16.gmra.mxu3 %vm515_vm2, %v2915_v18  ;;  %v3214_v22 = vsel %vm3187_vm7, %v3211_v8, %v3213_v19 }
 0x283   : > { %v3932_v26 = vshrl.u32 %v3844_v38, 16  ;;  %v3935_v39 = vshll.u32 %v3844_v38, 16  ;;  %v3459_v56 = vadd.f32 %v6176_v34, %v3414_v62  ;;  %3733 = vperm.xlu1 %5054, %v3566_v15   ;;  %v3930_v62 = vrot.slane %v3928_v7, 4  ;;  %v3614_v15 = vpop.permute.xlu1 %3613 }
 0x284   : > { %v2495_v61 = vpop.f32.mrf.mxu2 }
 0x285   : > { %v3934_v45 = vrot.slane %v3932_v26, 6  ;;  %v3937_v27 = vrot.slane %v3935_v39, 7  ;;  %v2589_v13 = vadd.f32 %v2495_v61, %v2182_v24  ;;  %v3500_v35 = vmax.f32 %v3459_v56, 0.0  ;;  %v6411_v3 = vpop.f32.mrf.mxu3 }
 0x286   : > { %v2091_v47 = vpop.f32.mrf.mxu1  ;;  %v2917_v61 = vshrl.u32 %v6423_v28, 16 }
 0x287   : > { %v3938_v38 = vor.u32 %v3937_v27, %v3934_v45  ;;  %v3147_v6 = vadd.f32 %v6232_v58, %v2589_v13  ;;  %v3787_v10 = vmul.f32 %v3609_v21, %v3500_v35  ;;  %v3324_v18 = vpop.f32.mrf.mxu0  ;;  %v3574_v58 = vld [vmem:[%s6988_s3 + $0x138] sm:$0xff]  ;;  %v2183_v39 = vadd.f32 %v2091_v47, %v5631_v59  ;;  %v6433_v47 = vld [vmem:[%s5151_s28 + $0x80] sm:$0xff] }
 0x288   : > { %3773 = vperm.xlu0 %5053, %v3574_v58   ;;  %v2920_v21 = vshll.u32 %v6423_v28, 16 }
 0x289   : > { %v3939_v30 = vsel %vm6256_vm15, %v3930_v62, %v3938_v38  ;;  %v3845_v26 = vpack.c.bf16 %v3787_v10, %v3787_v10  ;;  %4718 = vmatmul.msk.bf16.gmra.mxu1 %vm515_vm2, %v1981_v11  ;;  %4820 = vmatmul.msk.bf16.gmra.mxu2 %vm515_vm2, %v2388_v52  ;;  %v3415_v51 = vadd.f32 %v3321_v32, %v3147_v6  ;;  %v3568_v32 = vld [vmem:[%s6988_s3 + $0x108] sm:$0xff]  ;;  %v2919_v11 = vrot.slane %v2917_v61, 2 }
 0x28a   : > { %4341 = vst [vmem:[%s5859_s17 + $0x1c] sm:$0xf] %v3939_v30  ;;  %4944 = vmatmul.msk.bf16.gmra.mxu0 %vm515_vm2, %v3214_v22  ;;  %v2922_v52 = vrot.slane %v2920_v21, 3  ;;  %v3940_v22 = vrot.slane %v3938_v38, 4  ;;  %v2389_v38 = vrot.slane %v6433_v47, 2 }
 0x28b   : > { %v3942_v8 = vshrl.u32 %v3845_v26, 16  ;;  %v3945_v7 = vshll.u32 %v3845_v26, 16  ;;  %v3460_v24 = vadd.f32 %v6176_v34, %v3415_v51  ;;  %3743 = vperm.xlu1 %5054, %v3568_v32   ;;  %v3558_v32 = vld [vmem:[%s6988_s3 + $0xb8] sm:$0xff] }
 0x28c   : > { %v2498_v56 = vpop.f32.mrf.mxu2  ;;  %v6438_v51 = vor.u32 %v2922_v52, %v2919_v11  ;;  %3693 = vperm.xlu2 %5055, %v3558_v32  }
 0x28d   : > { %v3944_v45 = vrot.slane %v3942_v8, 6  ;;  %v3947_v27 = vrot.slane %v3945_v7, 7  ;;  %v2590_v13 = vadd.f32 %v2498_v56, %v2183_v39  ;;  %v3501_v35 = vmax.f32 %v3460_v24, 0.0  ;;  %v6436_v26 = vpop.f32.mrf.mxu3  ;;  %v6443_v39 = vld [vmem:[%s5151_s28 + $0x78] sm:$0xff] }
 0x28e   : > { %v2093_v59 = vpop.f32.mrf.mxu1  ;;  %v1982_v24 = vrot.slane %v6443_v39, 2  ;;  %v3570_v56 = vld [vmem:[%s6988_s3 + $0x118] sm:$0xff] }
 0x28f   : > { %v3948_v62 = vor.u32 %v3947_v27, %v3944_v45  ;;  %v3148_v6 = vadd.f32 %v6276_v14, %v2590_v13  ;;  %v3788_v10 = vmul.f32 %v3614_v15, %v3501_v35  ;;  %v3326_v30 = vpop.f32.mrf.mxu0  ;;  %v3215_v14 = vrot.slane %v6288_v2, 3  ;;  %v3571_v27 = vld [vmem:[%s6988_s3 + $0x120] sm:$0xff]  ;;  %v3619_v35 = vpop.permute.xlu2 %3618 }
 0x290   : > { %v2184_v21 = vadd.f32 %v2093_v59, %v5645_v43  ;;  %3753 = vperm.xlu0 %5053, %v3570_v56   ;;  %v1983_v43 = vsel %vm1954_vm6, %v1980_v33, %v1982_v24  ;;  %v2390_v59 = vsel %vm1954_vm6, %v2387_v40, %v2389_v38  ;;  %v3573_v40 = vld [vmem:[%s6988_s3 + $0x130] sm:$0xff] }
 0x291   : > { %v3949_v58 = vsel %vm6256_vm15, %v3940_v22, %v3948_v62  ;;  %v3416_v8 = vadd.f32 %v3324_v18, %v3148_v6  ;;  %v3846_v7 = vpack.c.bf16 %v3788_v10, %v3788_v10  ;;  %v2924_v18 = vsel %vm2772_vm5, %v6372_v4, %v6438_v51 }
 0x292   : > { %4342 = vst [vmem:[%s5859_s17 + $0x20] sm:$0xf] %v3949_v58  ;;  %4925 = vmatmul.msk.bf16.gmra.mxu3 %vm515_vm2, %v2924_v18  ;;  %v3216_v10 = vsel %vm3187_vm7, %v3213_v19, %v3215_v14  ;;  %v3950_v58 = vrot.slane %v3948_v62, 4  ;;  %v6495_v19 = vld [vmem:[%s5151_s28 + $0x98] sm:$0xff] }
 0x293   : > { %v3952_v15 = vshrl.u32 %v3846_v7, 16  ;;  %v3955_v61 = vshll.u32 %v3846_v7, 16  ;;  %v3461_v45 = vadd.f32 %v6176_v34, %v3416_v8  ;;  %3758 = vperm.xlu1 %5054, %v3571_v27   ;;  %v2926_v27 = vshrl.u32 %v6495_v19, 16 }
 0x294   : > { %v2500_v13 = vpop.f32.mrf.mxu2 }
 0x295   : > { %v3954_v11 = vrot.slane %v3952_v15, 6  ;;  %v3957_v52 = vrot.slane %v3955_v61, 7  ;;  %v2591_v4 = vadd.f32 %v2500_v13, %v2184_v21  ;;  %v3502_v22 = vmax.f32 %v3461_v45, 0.0  ;;  %v6480_v33 = vpop.f32.mrf.mxu3  ;;  %v3575_v61 = vld [vmem:[%s6988_s3 + $0x140] sm:$0xf]  ;;  %v3624_v45 = vpop.permute.xlu0 %3623 }
 0x296   : > { %v2096_v6 = vpop.f32.mrf.mxu1  ;;  %v2929_v13 = vshll.u32 %v6495_v19, 16 }
 0x297   : > { %v3958_v8 = vor.u32 %v3957_v52, %v3954_v11  ;;  %v3149_v7 = vadd.f32 %v6301_v37, %v2591_v4  ;;  %v3789_v5 = vmul.f32 %v3619_v35, %v3502_v22  ;;  %v3329_v32 = vpop.f32.mrf.mxu0  ;;  %v3561_v37 = vld [vmem:[%s6988_s3 + $0xd0] sm:$0xff]  ;;  %v2185_v15 = vadd.f32 %v2096_v6, %v5658_v60  ;;  %v6505_v22 = vld [vmem:[%s5151_s28 + $0x88] sm:$0xff] }
 0x298   : > { %3708 = vperm.xlu2 %5055, %v3561_v37   ;;  %3768 = vperm.xlu0 %5053, %v3573_v40   ;;  %v2928_v6 = vrot.slane %v2926_v27, 2 }
 0x299   : > { %v3959_v16 = vsel %vm6256_vm15, %v3950_v58, %v3958_v8  ;;  %v3847_v56 = vpack.c.bf16 %v3789_v5, %v3789_v5  ;;  %4719 = vmatmul.msk.bf16.gmra.mxu1 %vm515_vm2, %v1983_v43  ;;  %4821 = vmatmul.msk.bf16.gmra.mxu2 %vm515_vm2, %v2390_v59  ;;  %v3417_v23 = vadd.f32 %v3326_v30, %v3149_v7  ;;  %v2931_v43 = vrot.slane %v2929_v13, 3  ;;  %v3629_v13 = vpop.permute.xlu1 %3628 }
 0x29a   : > { %4343 = vst [vmem:[%s5859_s17 + $0x24] sm:$0xf] %v3959_v16  ;;  %4945 = vmatmul.msk.bf16.gmra.mxu0 %vm515_vm2, %v3216_v10  ;;  %v3960_v59 = vrot.slane %v3958_v8, 4  ;;  %v2391_v8 = vrot.slane %v6505_v22, 2 }
 0x29b   : > { %v3962_v62 = vshrl.u32 %v3847_v56, 16  ;;  %v3965_v18 = vshll.u32 %v3847_v56, 16  ;;  %v3462_v30 = vadd.f32 %v6176_v34, %v3417_v23  ;;  %3778 = vperm.xlu1 %5054, %v3575_v61   ;;  %v6510_v56 = vor.u32 %v2931_v43, %v2928_v6 }
 0x29c   : > { %v2503_v21 = vpop.f32.mrf.mxu2 }
 0x29d   : > { %v3964_v35 = vrot.slane %v3962_v62, 6  ;;  %v3967_v11 = vrot.slane %v3965_v18, 7  ;;  %v2592_v52 = vadd.f32 %v2503_v21, %v2185_v15  ;;  %v3503_v60 = vmax.f32 %v3462_v30, 0.0  ;;  %v6508_v16 = vpop.f32.mrf.mxu3  ;;  %v6516_v62 = vld [vmem:[%s5151_s28 + $0x80] sm:$0xff]  ;;  %v3564_v15 = vld [vmem:[%s6988_s3 + $0xe8] sm:$0xff] }
 0x29e   : > { %v2098_v4 = vpop.f32.mrf.mxu1  ;;  %v1984_v18 = vrot.slane %v6516_v62, 2  ;;  %v2933_v30 = vsel %vm2772_vm5, %v6438_v51, %v6510_v56 }
 0x29f   : > { %v3968_v10 = vor.u32 %v3967_v11, %v3964_v35  ;;  %v3150_v58 = vadd.f32 %v6342_v36, %v2592_v52  ;;  %v3790_v7 = vmul.f32 %v3624_v45, %v3503_v60  ;;  %v3331_v5 = vpop.f32.mrf.mxu0  ;;  %v3217_v36 = vrot.slane %v6354_v29, 3 }
 0x2a0   : > { %v2186_v21 = vadd.f32 %v2098_v4, %v5672_v48  ;;  %3723 = vperm.xlu2 %5055, %v3564_v15   ;;  %v1985_v51 = vsel %vm1954_vm6, %v1982_v24, %v1984_v18  ;;  %v2392_v48 = vsel %vm1954_vm6, %v2389_v38, %v2391_v8  ;;  %v6558_v38 = vld [vmem:[%s5151_s28 + $0xa0] sm:$0xff] }
 0x2a1   : > { %v3969_v23 = vsel %vm6256_vm15, %v3960_v59, %v3968_v10  ;;  %v3418_v37 = vadd.f32 %v3329_v32, %v3150_v58  ;;  %v3848_v40 = vpack.c.bf16 %v3790_v7, %v3790_v7  ;;  %v3218_v4 = vsel %vm3187_vm7, %v3215_v14, %v3217_v36 }
 0x2a2   : > { %4344 = vst [vmem:[%s5859_s17 + $0x28] sm:$0xf] %v3969_v23  ;;  %4926 = vmatmul.msk.bf16.gmra.mxu3 %vm515_vm2, %v2933_v30  ;;  %v3970_v43 = vrot.slane %v3968_v10, 4  ;;  %v3634_v30 = vpop.permute.xlu2 %3633 }
 0x2a3   : > { %v3972_v61 = vshrl.u32 %v3848_v40, 16  ;;  %v3975_v32 = vshll.u32 %v3848_v40, 16  ;;  %v3463_v45 = vadd.f32 %v6176_v34, %v3418_v37 }
 0x2a4   : > { %v2505_v27 = vpop.f32.mrf.mxu2 }
 0x2a5   : > { %v3974_v35 = vrot.slane %v3972_v61, 6  ;;  %v3977_v11 = vrot.slane %v3975_v32, 7  ;;  %v2593_v52 = vadd.f32 %v2505_v27, %v2186_v21  ;;  %v3504_v60 = vmax.f32 %v3463_v45, 0.0  ;;  %v6546_v24 = vpop.f32.mrf.mxu3 }
 0x2a6   : > { %v2101_v6 = vpop.f32.mrf.mxu1  ;;  %v2938_v61 = vshll.u32 %v6558_v38, 16 }
 0x2a7   : > { %v3978_v59 = vor.u32 %v3977_v11, %v3974_v35  ;;  %v3151_v58 = vadd.f32 %v6370_v41, %v2593_v52  ;;  %v3791_v39 = vmul.f32 %v3629_v13, %v3504_v60  ;;  %v3334_v7 = vpop.f32.mrf.mxu0  ;;  %v3567_v41 = vld [vmem:[%s6988_s3 + $0x100] sm:$0xff]  ;;  %v2187_v37 = vadd.f32 %v2101_v6, %v5685_v57  ;;  %v6565_v35 = vld [vmem:[%s5151_s28 + $0x90] sm:$0xff] }
 0x2a8   : > { %3738 = vperm.xlu2 %5055, %v3567_v41   ;;  %v2940_v57 = vrot.slane %v2938_v61, 3  ;;  %v3569_v41 = vld [vmem:[%s6988_s3 + $0x110] sm:$0xff] }
 0x2a9   : > { %v3979_v47 = vsel %vm6256_vm15, %v3970_v43, %v3978_v59  ;;  %v3849_v23 = vpack.c.bf16 %v3791_v39, %v3791_v39  ;;  %4720 = vmatmul.msk.bf16.gmra.mxu1 %vm515_vm2, %v1985_v51  ;;  %4822 = vmatmul.msk.bf16.gmra.mxu2 %vm515_vm2, %v2392_v48  ;;  %v3419_v2 = vadd.f32 %v3331_v5, %v3151_v58  ;;  %v2935_v5 = vshrl.u32 %v6558_v38, 16 }
 0x2aa   : > { %4345 = vst [vmem:[%s5859_s17 + $0x2c] sm:$0xf] %v3979_v47  ;;  %4946 = vmatmul.msk.bf16.gmra.mxu0 %vm515_vm2, %v3218_v4  ;;  %v3980_v52 = vrot.slane %v3978_v59, 4  ;;  %v2393_v59 = vrot.slane %v6565_v35, 2 }
 0x2ab   : > { %v3982_v14 = vshrl.u32 %v3849_v23, 16  ;;  %v3985_v10 = vshll.u32 %v3849_v23, 16  ;;  %v3464_v40 = vadd.f32 %v6176_v34, %v3419_v2  ;;  %v2937_v11 = vrot.slane %v2935_v5, 2  ;;  %v6576_v23 = vld [vmem:[%s5151_s28 + $0x88] sm:$0xff] }
 0x2ac   : > { %v2508_v15 = vpop.f32.mrf.mxu2  ;;  %v1986_v2 = vrot.slane %v6576_v23, 2 }
 0x2ad   : > { %v3984_v32 = vrot.slane %v3982_v14, 6  ;;  %v3987_v21 = vrot.slane %v3985_v10, 7  ;;  %v2594_v45 = vadd.f32 %v2508_v15, %v2187_v37  ;;  %v3505_v27 = vmax.f32 %v3464_v40, 0.0  ;;  %v6568_v4 = vpop.f32.mrf.mxu3 }
 0x2ae   : > { %v2103_v13 = vpop.f32.mrf.mxu1  ;;  %v6570_v43 = vor.u32 %v2940_v57, %v2937_v11 }
 0x2af   : > { %v3988_v60 = vor.u32 %v3987_v21, %v3984_v32  ;;  %v3152_v6 = vadd.f32 %v6411_v3, %v2594_v45  ;;  %v3792_v51 = vmul.f32 %v3634_v30, %v3505_v27  ;;  %v3336_v48 = vpop.f32.mrf.mxu0  ;;  %v3219_v3 = vrot.slane %v6423_v28, 3  ;;  %v3639_v30 = vpop.permute.xlu0 %3638  ;;  %v4908_v28 = vld [vmem:[%s5151_s28 + $0xb0] sm:$0xf] }
 0x2b0   : > { %v2942_v14 = vsel %vm2772_vm5, %v6510_v56, %v6570_v43  ;;  %v2188_v37 = vadd.f32 %v2103_v13, %v5699_v1  ;;  %3748 = vperm.xlu2 %5055, %v3569_v41   ;;  %v1987_v56 = vsel %vm1954_vm6, %v1984_v18, %v1986_v2  ;;  %v2394_v1 = vsel %vm1954_vm6, %v2391_v8, %v2393_v59  ;;  %v6618_v8 = vld [vmem:[%s5151_s28 + $0xa8] sm:$0xff] }
 0x2b1   : > { %v3989_v58 = vsel %vm6256_vm15, %v3980_v52, %v3988_v60  ;;  %v3420_v39 = vadd.f32 %v3334_v7, %v3152_v6  ;;  %v3850_v47 = vpack.c.bf16 %v3792_v51, %v3792_v51  ;;  %v3220_v27 = vsel %vm3187_vm7, %v3217_v36, %v3219_v3 }
 0x2b2   : > { %4346 = vst [vmem:[%s5859_s17 + $0x30] sm:$0xf] %v3989_v58  ;;  %4927 = vmatmul.msk.bf16.gmra.mxu3 %vm515_vm2, %v2942_v14  ;;  %v3990_v13 = vrot.slane %v3988_v60, 4  ;;  %v2947_v41 = vshll.u32 %v6618_v8, 16 }
 0x2b3   : > { %v3992_v10 = vshrl.u32 %v3850_v47, 16  ;;  %v3995_v7 = vshll.u32 %v3850_v47, 16  ;;  %v3465_v40 = vadd.f32 %v6176_v34, %v3420_v39  ;;  %v3644_v47 = vpop.permute.xlu1 %3643 }
 0x2b4   : > { %v2510_v15 = vpop.f32.mrf.mxu2 }
 0x2b5   : > { %v3994_v5 = vrot.slane %v3992_v10, 6  ;;  %v3997_v61 = vrot.slane %v3995_v7, 7  ;;  %v2595_v32 = vadd.f32 %v2510_v15, %v2188_v37  ;;  %v3506_v21 = vmax.f32 %v3465_v40, 0.0  ;;  %v6606_v18 = vpop.f32.mrf.mxu3  ;;  %v6625_v15 = vld [vmem:[%s5151_s28 + $0x98] sm:$0xff] }
 0x2b6   : > { %v2106_v45 = vpop.f32.mrf.mxu1 }
 0x2b7   : > { %v3998_v11 = vor.u32 %v3997_v61, %v3994_v5  ;;  %v3153_v57 = vadd.f32 %v6436_v26, %v2595_v32  ;;  %v3793_v62 = vmul.f32 %v3639_v30, %v3506_v21  ;;  %v3339_v52 = vpop.f32.mrf.mxu0  ;;  %v3572_v26 = vld [vmem:[%s6988_s3 + $0x128] sm:$0xff]  ;;  %v2189_v51 = vadd.f32 %v2106_v45, %v5712_v17 }
 0x2b8   : > { %3763 = vperm.xlu2 %5055, %v3572_v26   ;;  %v2949_v17 = vrot.slane %v2947_v41, 3 }
 0x2b9   : > { %v3999_v22 = vsel %vm6256_vm15, %v3990_v13, %v3998_v11  ;;  %v3851_v6 = vpack.c.bf16 %v3793_v62, %v3793_v62  ;;  %4721 = vmatmul.msk.bf16.gmra.mxu1 %vm515_vm2, %v1987_v56  ;;  %4823 = vmatmul.msk.bf16.gmra.mxu2 %vm515_vm2, %v2394_v1  ;;  %v3421_v29 = vadd.f32 %v3336_v48, %v3153_v57  ;;  %v2944_v48 = vshrl.u32 %v6618_v8, 16  ;;  %v6636_v62 = vld [vmem:[%s5151_s28 + $0x90] sm:$0xff] }
 0x2ba   : > { %4347 = vst [vmem:[%s5859_s17 + $0x34] sm:$0xf] %v3999_v22  ;;  %4947 = vmatmul.msk.bf16.gmra.mxu0 %vm515_vm2, %v3220_v27  ;;  %v4000_v5 = vrot.slane %v3998_v11, 4  ;;  %v1988_v22 = vrot.slane %v6636_v62, 2  ;;  %v2395_v11 = vrot.slane %v6625_v15, 2 }
 0x2bb   : > { %v4002_v36 = vshrl.u32 %v3851_v6, 16  ;;  %v4005_v60 = vshll.u32 %v3851_v6, 16  ;;  %v3466_v58 = vadd.f32 %v6176_v34, %v3421_v29  ;;  %v2946_v30 = vrot.slane %v2944_v48, 2 }
 0x2bc   : > { %v2513_v39 = vpop.f32.mrf.mxu2 }
 0x2bd   : > { %v4004_v14 = vrot.slane %v4002_v36, 6  ;;  %v4007_v10 = vrot.slane %v4005_v60, 7  ;;  %v2596_v7 = vadd.f32 %v2513_v39, %v2189_v51  ;;  %v3507_v37 = vmax.f32 %v3466_v58, 0.0  ;;  %v6628_v56 = vpop.f32.mrf.mxu3  ;;  %v3649_v51 = vpop.permute.xlu2 %3648 }
 0x2be   : > { %v2108_v40 = vpop.f32.mrf.mxu1  ;;  %v6630_v1 = vor.u32 %v2949_v17, %v2946_v30  ;;  %v5032_v17 = vld [vmem:[%s5151_s28 + $0xb0] sm:$0x10] }
 0x2bf   : > { %v4008_v61 = vor.u32 %v4007_v10, %v4004_v14  ;;  %v3154_v32 = vadd.f32 %v6480_v33, %v2596_v7  ;;  %v3794_v21 = vmul.f32 %v3644_v47, %v3507_v37  ;;  %v3341_v45 = vpop.f32.mrf.mxu0  ;;  %v3221_v33 = vrot.slane %v6495_v19, 3 }
 0x2c0   : > { %v2951_v6 = vsel %vm2772_vm5, %v6570_v43, %v6630_v1  ;;  %v2190_v36 = vadd.f32 %v2108_v40, %v5726_v25  ;;  %v1989_v43 = vsel %vm1954_vm6, %v1986_v2, %v1988_v22  ;;  %v2396_v25 = vsel %vm1954_vm6, %v2393_v59, %v2395_v11 }
 0x2c1   : > { %v4009_v27 = vsel %vm6256_vm15, %v4000_v5, %v4008_v61  ;;  %v3422_v13 = vadd.f32 %v3339_v52, %v3154_v32  ;;  %v3852_v57 = vpack.c.bf16 %v3794_v21, %v3794_v21  ;;  %v3222_v14 = vsel %vm3187_vm7, %v3219_v3, %v3221_v33 }
 0x2c2   : > { %4348 = vst [vmem:[%s5859_s17 + $0x38] sm:$0xf] %v4009_v27  ;;  %4928 = vmatmul.msk.bf16.gmra.mxu3 %vm515_vm2, %v2951_v6  ;;  %v4010_v10 = vrot.slane %v4008_v61, 4  ;;  %v3654_v27 = vpop.permute.xlu0 %3653 }
 0x2c3   : > { %v4012_v29 = vshrl.u32 %v3852_v57, 16  ;;  %v4015_v26 = vshll.u32 %v3852_v57, 16  ;;  %v3467_v52 = vadd.f32 %v6176_v34, %v3422_v13 }
 0x2c4   : > { %v2515_v60 = vpop.f32.mrf.mxu2 }
 0x2c5   : > { %v4014_v58 = vrot.slane %v4012_v29, 6  ;;  %v4017_v39 = vrot.slane %v4015_v26, 7  ;;  %v2597_v47 = vadd.f32 %v2515_v60, %v2190_v36  ;;  %v3508_v48 = vmax.f32 %v3467_v52, 0.0  ;;  %v6663_v2 = vpop.f32.mrf.mxu3  ;;  %v6680_v52 = vld [vmem:[%s5151_s28 + $0xa0] sm:$0xff] }
 0x2c6   : > { %v2111_v41 = vpop.f32.mrf.mxu1 }
 0x2c7   : > { %v4018_v7 = vor.u32 %v4017_v39, %v4014_v58  ;;  %v3155_v23 = vadd.f32 %v6508_v16, %v2597_v47  ;;  %v3795_v37 = vmul.f32 %v3649_v51, %v3508_v48  ;;  %v3344_v40 = vpop.f32.mrf.mxu0  ;;  %v6673_v16 = vor.u32 %v5032_v17, %v4908_v28 }
 0x2c8   : > { %v2191_v61 = vadd.f32 %v2111_v41, %v5736_v12 }
 0x2c9   : > { %v4019_v35 = vsel %vm6256_vm15, %v4010_v10, %v4018_v7  ;;  %v3853_v30 = vpack.c.bf16 %v3795_v37, %v3795_v37  ;;  %4722 = vmatmul.msk.bf16.gmra.mxu1 %vm515_vm2, %v1989_v43  ;;  %4824 = vmatmul.msk.bf16.gmra.mxu2 %vm515_vm2, %v2396_v25  ;;  %v3423_v59 = vadd.f32 %v3341_v45, %v3155_v23  ;;  %v2953_v13 = vshrl.u32 %v6673_v16, 16  ;;  %v6691_v10 = vld [vmem:[%s5151_s28 + $0x98] sm:$0xff] }
 0x2ca   : > { %4349 = vst [vmem:[%s5859_s17 + $0x3c] sm:$0xf] %v4019_v35  ;;  %4948 = vmatmul.msk.bf16.gmra.mxu0 %vm515_vm2, %v3222_v14  ;;  %v2956_v45 = vshll.u32 %v6673_v16, 16  ;;  %v4020_v12 = vrot.slane %v4018_v7, 4  ;;  %v1990_v23 = vrot.slane %v6691_v10, 2  ;;  %v2397_v7 = vrot.slane %v6680_v52, 2 }
 0x2cb   : > { %v4022_v3 = vshrl.u32 %v3853_v30, 16  ;;  %v4025_v5 = vshll.u32 %v3853_v30, 16  ;;  %v3468_v32 = vadd.f32 %v6176_v34, %v3423_v59  ;;  %v2955_v60 = vrot.slane %v2953_v13, 2 }
 0x2cc   : > { %v2518_v21 = vpop.f32.mrf.mxu2  ;;  %v2958_v51 = vrot.slane %v2956_v45, 3 }
 0x2cd   : > { %v4024_v57 = vrot.slane %v4022_v3, 6  ;;  %v4027_v6 = vrot.slane %v4025_v5, 7  ;;  %v2598_v29 = vadd.f32 %v2518_v21, %v2191_v61  ;;  %v3509_v26 = vmax.f32 %v3468_v32, 0.0  ;;  %v6683_v48 = vpop.f32.mrf.mxu3  ;;  %v3659_v3 = vpop.permute.xlu1 %3658 }
 0x2ce   : > { %v2113_v36 = vpop.f32.mrf.mxu1  ;;  %v6685_v41 = vor.u32 %v2958_v51, %v2955_v60  ;;  %v3664_v51 = vpop.permute.xlu2 %3663 }
 0x2cf   : > { %v4028_v58 = vor.u32 %v4027_v6, %v4024_v57  ;;  %v3156_v34 = vadd.f32 %v6546_v24, %v2598_v29  ;;  %v3796_v39 = vmul.f32 %v3654_v27, %v3509_v26  ;;  %v3346_v47 = vpop.f32.mrf.mxu0  ;;  %v3223_v24 = vrot.slane %v6558_v38, 3 }
 0x2d0   : > { %v2960_v37 = vsel %vm2772_vm5, %v6630_v1, %v6685_v41  ;;  %v2192_v59 = vadd.f32 %v2113_v36, %v5750_v54  ;;  %v1991_v54 = vsel %vm1954_vm6, %v1988_v22, %v1990_v23  ;;  %v2398_v27 = vsel %vm1954_vm6, %v2395_v11, %v2397_v7  ;;  %vm4378_vm5 = vmand %vm579_vm0, %vm4377_vm4 }
 0x2d1   : > { %v4029_v43 = vsel %vm6256_vm15, %v4020_v12, %v4028_v58  ;;  %v3424_v25 = vadd.f32 %v3344_v40, %v3156_v34  ;;  %v3854_v14 = vpack.c.bf16 %v3796_v39, %v3796_v39  ;;  %v6703_v40 = vld [vmem:[%s6987_s2] ss:$0 sm:$0xff]  ;;  %v3224_v13 = vsel %vm3187_vm7, %v3221_v33, %v3223_v24 }
 0x2d2   : > { %4350 = vst [vmem:[%s5859_s17 + $0x40] sm:$0xf] %v4029_v43  ;;  %4929 = vmatmul.msk.bf16.gmra.mxu3 %vm515_vm2, %v2960_v37  ;;  %v4030_v45 = vrot.slane %v4028_v58, 4 }
 0x2d3   : > { %v4032_v35 = vshrl.u32 %v3854_v14, 16  ;;  %v4035_v30 = vshll.u32 %v3854_v14, 16  ;;  %v3469_v28 = vadd.f32 %v6703_v40, %v3424_v25  ;;  %v6734_v25 = vld [vmem:[%s5151_s28 + $0xa8] sm:$0xff] }
 0x2d4   : > { %v2520_v17 = vpop.f32.mrf.mxu2 }
 0x2d5   : > { %v4034_v5 = vrot.slane %v4032_v35, 6  ;;  %v4037_v61 = vrot.slane %v4035_v30, 7  ;;  %v2599_v32 = vadd.f32 %v2520_v17, %v2192_v59  ;;  %v3510_v21 = vmax.f32 %v3469_v28, 0.0  ;;  %v6723_v26 = vpop.f32.mrf.mxu3 }
 0x2d6   : > { %v2116_v1 = vpop.f32.mrf.mxu1 }
 0x2d7   : > { %v4038_v57 = vor.u32 %v4037_v61, %v4034_v5  ;;  %v3157_v6 = vadd.f32 %v6568_v4, %v2599_v32  ;;  %v3797_v29 = vmul.f32 %v3659_v3, %v3510_v21  ;;  %v3349_v62 = vpop.f32.mrf.mxu0  ;;  %v2193_v4 = vadd.f32 %v2116_v1, %v5760_v0  ;;  %v6743_v3 = vld [vmem:[%s5151_s28 + $0xa0] sm:$0xff] }
 0x2d8   : > { %v1992_v5 = vrot.slane %v6743_v3, 2  ;;  %v2399_v61 = vrot.slane %v6734_v25, 2  ;;  %v3225_v32 = vrot.slane %v6618_v8, 3 }
 0x2d9   : > { %v4039_v22 = vsel %vm6256_vm15, %v4030_v45, %v4038_v57  ;;  %v3855_v15 = vpack.c.bf16 %v3797_v29, %v3797_v29  ;;  %4723 = vmatmul.msk.bf16.gmra.mxu1 %vm515_vm2, %v1991_v54  ;;  %4825 = vmatmul.msk.bf16.gmra.mxu2 %vm515_vm2, %v2398_v27  ;;  %v3425_v19 = vadd.f32 %v3346_v47, %v3157_v6  ;;  %v4040_v47 = vrot.slane %v4038_v57, 4 }
 0x2da   : > { %4351 = vst [vmem:[%s5859_s17 + $0x44] sm:$0xf] %v4039_v22  ;;  %4949 = vmatmul.msk.bf16.gmra.mxu0 %vm515_vm2, %v3224_v13  ;;  %v3669_v13 = vpop.permute.xlu0 %3668  ;;  %v2400_v22 = vsel %vm1954_vm6, %v2397_v7, %v2399_v61 }
 0x2db   : > { %v4042_v11 = vshrl.u32 %v3855_v15, 16  ;;  %v4045_v33 = vshll.u32 %v3855_v15, 16  ;;  %v3470_v36 = vadd.f32 %v6703_v40, %v3425_v19 }
 0x2dc   : > { %v2523_v60 = vpop.f32.mrf.mxu2 }
 0x2dd   : > { %v4044_v12 = vrot.slane %v4042_v11, 6  ;;  %v4047_v58 = vrot.slane %v4045_v33, 7  ;;  %v2600_v34 = vadd.f32 %v2523_v60, %v2193_v4  ;;  %v3511_v39 = vmax.f32 %v3470_v36, 0.0  ;;  %v6737_v0 = vpop.f32.mrf.mxu3  ;;  %v2256_v4 = vld [vmem:[%s5151_s28 + $0xb0] sm:$0xf] }
 0x2de   : > { %v2118_v43 = vpop.f32.mrf.mxu1  ;;  %v2340_v38 = vunpack.c.l.b16 %v2256_v4 }
 0x2df   : > { %v4048_v14 = vor.u32 %v4047_v58, %v4044_v12  ;;  %v3158_v37 = vadd.f32 %v6606_v18, %v2600_v34  ;;  %v3798_v35 = vmul.f32 %v3664_v51, %v3511_v39  ;;  %v3351_v30 = vpop.f32.mrf.mxu0  ;;  %v2194_v1 = vadd.f32 %v2118_v43, %v5779_v46  ;;  %v3674_v58 = vpop.permute.xlu1 %3673 }
 0x2e0   : > { %v1993_v46 = vsel %vm1954_vm6, %v1990_v23, %v1992_v5 }
 0x2e1   : > { %v4049_v59 = vsel %vm6256_vm15, %v4040_v47, %v4048_v14  ;;  %v3426_v28 = vadd.f32 %v3349_v62, %v3158_v37  ;;  %v3856_v17 = vpack.c.bf16 %v3798_v35, %v3798_v35  ;;  %v4050_v15 = vrot.slane %v4048_v14, 4 }
 0x2e2   : > { %4352 = vst [vmem:[%s5859_s17 + $0x48] sm:$0xf] %v4049_v59  ;;  %4930 = vmatmul.msk.bf16.gmra.mxu3 %vm515_vm2, %v6685_v41  ;;  %v3226_v41 = vsel %vm3187_vm7, %v3223_v24, %v3225_v32  ;;  %v6779_v37 = vpack.c.b16 %v2340_v38, %v2340_v38 }
 0x2e3   : > { %v4052_v21 = vshrl.u32 %v3856_v17, 16  ;;  %v4055_v18 = vshll.u32 %v3856_v17, 16  ;;  %v3471_v54 = vadd.f32 %v6703_v40, %v3426_v28 }
 0x2e4   : > { %v2525_v27 = vpop.f32.mrf.mxu2 }
 0x2e5   : > { %v4054_v45 = vrot.slane %v4052_v21, 6  ;;  %v4057_v57 = vrot.slane %v4055_v18, 7  ;;  %v2601_v6 = vadd.f32 %v2525_v27, %v2194_v1  ;;  %v3512_v29 = vmax.f32 %v3471_v54, 0.0  ;;  %v6769_v23 = vpop.f32.mrf.mxu3 }
 0x2e6   : > { %v2121_v62 = vpop.f32.mrf.mxu1  ;;  %v1994_v54 = vrot.slane %v5768_v9, 2  ;;  %v2401_v27 = vrot.slane %v6779_v37, 2 }
 0x2e7   : > { %v4058_v19 = vor.u32 %v4057_v57, %v4054_v45  ;;  %v3159_v11 = vadd.f32 %v6628_v56, %v2601_v6  ;;  %v3799_v10 = vmul.f32 %v3669_v13, %v3512_v29  ;;  %v3354_v33 = vpop.f32.mrf.mxu0  ;;  %v2195_v60 = vadd.f32 %v2121_v62, %v5795_v31  ;;  %v3679_v62 = vpop.permute.xlu2 %3678 }
 0x2e8   : > { %v3227_v13 = vrot.slane %v6673_v16, 3 }
 0x2e9   : > { %v4059_v52 = vsel %vm6256_vm15, %v4050_v15, %v4058_v19  ;;  %v3427_v36 = vadd.f32 %v3351_v30, %v3159_v11  ;;  %v3857_v7 = vpack.c.bf16 %v3799_v10, %v3799_v10  ;;  %4724 = vmatmul.msk.bf16.gmra.mxu1 %vm515_vm2, %v1993_v46  ;;  %4826 = vmatmul.msk.bf16.gmra.mxu2 %vm515_vm2, %v2400_v22  ;;  %v4060_v35 = vrot.slane %v4058_v19, 4 }
 0x2ea   : > { %4353 = vst [vmem:[%s5859_s17 + $0x4c] sm:$0xf] %v4059_v52  ;;  %4950 = vmatmul.msk.bf16.gmra.mxu0 %vm515_vm2, %v3226_v41  ;;  %v1995_v11 = vsel %vm1954_vm6, %v1992_v5, %v1994_v54  ;;  %v3228_v10 = vsel %vm3187_vm7, %v3225_v32, %v3227_v13 }
 0x2eb   : > { %v4062_v24 = vshrl.u32 %v3857_v7, 16  ;;  %v4065_v56 = vshll.u32 %v3857_v7, 16  ;;  %v3472_v51 = vadd.f32 %v6703_v40, %v3427_v36 }
 0x2ec   : > { %v2528_v12 = vpop.f32.mrf.mxu2 }
 0x2ed   : > { %v4064_v34 = vrot.slane %v4062_v24, 6  ;;  %v4067_v39 = vrot.slane %v4065_v56, 7  ;;  %v2602_v43 = vadd.f32 %v2528_v12, %v2195_v60  ;;  %v3513_v47 = vmax.f32 %v3472_v51, 0.0  ;;  %v6782_v21 = vpop.f32.mrf.mxu3  ;;  %v3684_v56 = vpop.permute.xlu0 %3683 }
 0x2ee   : > { %v2123_v14 = vpop.f32.mrf.mxu1 }
 0x2ef   : > { %v4068_v30 = vor.u32 %v4067_v39, %v4064_v34  ;;  %v3160_v59 = vadd.f32 %v6663_v2, %v2602_v43  ;;  %v3800_v28 = vmul.f32 %v3674_v58, %v3513_v47  ;;  %v3356_v17 = vpop.f32.mrf.mxu0  ;;  %v2196_v2 = vadd.f32 %v2123_v14, %v5808_v20  ;;  %v3694_v9 = vpop.permute.xlu2 %3693 }
 0x2f0   : > { %v2402_v20 = vsel %vm1954_vm6, %v2399_v61, %v2401_v27 }
 0x2f1   : > { %v4069_v31 = vsel %vm6256_vm15, %v4060_v35, %v4068_v30  ;;  %v3428_v18 = vadd.f32 %v3354_v33, %v3160_v59  ;;  %v3858_v1 = vpack.c.bf16 %v3800_v28, %v3800_v28  ;;  %v4070_v33 = vrot.slane %v4068_v30, 4 }
 0x2f2   : > { %4354 = vst [vmem:[%s5859_s17 + $0x50] sm:$0xf] %v4069_v31 }
 0x2f3   : > { %v4072_v45 = vshrl.u32 %v3858_v1, 16  ;;  %v4075_v57 = vshll.u32 %v3858_v1, 16  ;;  %v3473_v6 = vadd.f32 %v6703_v40, %v3428_v18 }
 0x2f4   : > { %v2530_v29 = vpop.f32.mrf.mxu2 }
 0x2f5   : > { %v4074_v46 = vrot.slane %v4072_v45, 6  ;;  %v4077_v22 = vrot.slane %v4075_v57, 7  ;;  %v2603_v41 = vadd.f32 %v2530_v29, %v2196_v2  ;;  %v3514_v15 = vmax.f32 %v3473_v6, 0.0  ;;  %v6808_v7 = vpop.f32.mrf.mxu3  ;;  %v3689_v29 = vpop.permute.xlu1 %3688 }
 0x2f6   : > { %v2126_v19 = vpop.f32.mrf.mxu1 }
 0x2f7   : > { %v4078_v4 = vor.u32 %v4077_v22, %v4074_v46  ;;  %v3161_v52 = vadd.f32 %v6683_v48, %v2603_v41  ;;  %v3801_v36 = vmul.f32 %v3679_v62, %v3514_v15  ;;  %v3359_v3 = vpop.f32.mrf.mxu0  ;;  %v2197_v48 = vadd.f32 %v2126_v19, %v5821_v55 }
 0x2f9   : > { %v4079_v5 = vsel %vm6256_vm15, %v4070_v33, %v4078_v4  ;;  %v3429_v25 = vadd.f32 %v3356_v17, %v3161_v52  ;;  %v3859_v38 = vpack.c.bf16 %v3801_v36, %v3801_v36  ;;  %4725 = vmatmul.msk.bf16.gmra.mxu1 %vm515_vm2, %v1995_v11  ;;  %4827 = vmatmul.msk.bf16.gmra.mxu2 %vm515_vm2, %v2402_v20  ;;  %v4080_v39 = vrot.slane %v4078_v4, 4 }
 0x2fa   : > { %4355 = vst [vmem:[%s5859_s17 + $0x54] sm:$0xf] %v4079_v5  ;;  %4951 = vmatmul.msk.bf16.gmra.mxu0 %vm515_vm2, %v3228_v10 }
 0x2fb   : > { %v4082_v8 = vshrl.u32 %v3859_v38, 16  ;;  %v4085_v61 = vshll.u32 %v3859_v38, 16  ;;  %v3474_v32 = vadd.f32 %v6703_v40, %v3429_v25 }
 0x2fc   : > { %v2533_v24 = vpop.f32.mrf.mxu2 }
 0x2fd   : > { %v4084_v60 = vrot.slane %v4082_v8, 6  ;;  %v4087_v51 = vrot.slane %v4085_v61, 7  ;;  %v2604_v12 = vadd.f32 %v2533_v24, %v2197_v48  ;;  %v3515_v58 = vmax.f32 %v3474_v32, 0.0  ;;  %v6819_v30 = vpop.f32.mrf.mxu3 }
 0x2fe   : > { %v2128_v34 = vpop.f32.mrf.mxu1 }
 0x2ff   : > { %v4088_v43 = vor.u32 %v4087_v51, %v4084_v60  ;;  %v3162_v47 = vadd.f32 %v6723_v26, %v2604_v12  ;;  %v3802_v14 = vmul.f32 %v3684_v56, %v3515_v58  ;;  %v3361_v35 = vpop.f32.mrf.mxu0  ;;  %v2198_v1 = vadd.f32 %v2128_v34, %v5833_v49 }
 0x301   : > { %v4089_v55 = vsel %vm6256_vm15, %v4080_v39, %v4088_v43  ;;  %v3430_v59 = vadd.f32 %v3359_v3, %v3162_v47  ;;  %v3860_v28 = vpack.c.bf16 %v3802_v14, %v3802_v14  ;;  %v4090_v46 = vrot.slane %v4088_v43, 4  ;;  %v3699_v43 = vpop.permute.xlu0 %3698 }
 0x302   : > { %4356 = vst [vmem:[%s5859_s17 + $0x58] sm:$0xf] %v4089_v55 }
 0x303   : > { %v4092_v17 = vshrl.u32 %v3860_v28, 16  ;;  %v4095_v31 = vshll.u32 %v3860_v28, 16  ;;  %v3475_v18 = vadd.f32 %v6703_v40, %v3430_v59 }
 0x304   : > { %v2535_v45 = vpop.f32.mrf.mxu2 }
 0x305   : > { %v4094_v57 = vrot.slane %v4092_v17, 6  ;;  %v4097_v2 = vrot.slane %v4095_v31, 7  ;;  %v3516_v26 = vmax.f32 %v3475_v18, 0.0  ;;  %v2605_v6 = vadd.f32 %v2535_v45, %v2198_v1  ;;  %v6827_v11 = vpop.f32.mrf.mxu3 }
 0x306   : > { %v2131_v62 = vpop.f32.mrf.mxu1 }
 0x307   : > { %v4098_v22 = vor.u32 %v4097_v2, %v4094_v57  ;;  %v3803_v41 = vmul.f32 %v3689_v29, %v3516_v26  ;;  %v3163_v15 = vadd.f32 %v6737_v0, %v2605_v6  ;;  %v3364_v19 = vpop.f32.mrf.mxu0  ;;  %v2199_v4 = vadd.f32 %v2131_v62, %v5866_v44 }
 0x309   : > { %v4099_v20 = vsel %vm6256_vm15, %v4090_v46, %v4098_v22  ;;  %v3861_v49 = vpack.c.bf16 %v3803_v41, %v3803_v41  ;;  %v3431_v10 = vadd.f32 %v3361_v35, %v3163_v15  ;;  %4726 = vmatmul.msk.bf16.gmra.mxu1 %vm515_vm2, %v1994_v54  ;;  %4828 = vmatmul.msk.bf16.gmra.mxu2 %vm515_vm2, %v2401_v27  ;;  %v4100_v27 = vrot.slane %v4098_v22, 4  ;;  %v3704_v46 = vpop.permute.xlu1 %3703 }
 0x30a   : > { %4357 = vst [vmem:[%s5859_s17 + $0x5c] sm:$0xf] %v4099_v20  ;;  %4952 = vmatmul.msk.bf16.gmra.mxu0 %vm515_vm2, %v3227_v13  ;;  %vm3831_vm2 = vsmask.f32 7950 }
 0x30b   : > { %v4102_v0 = vshrl.u32 %v3861_v49, 16  ;;  %v4105_v33 = vshll.u32 %v3861_v49, 16  ;;  %v3476_v52 = vadd.f32 %v6703_v40, %v3431_v10  ;;  %vm3832_vm3 = vmand %vm3830_vm1, %vm3831_vm2 }
 0x30c   : > { %v2538_v36 = vpop.f32.mrf.mxu2 }
 0x30d   : > { %v4104_v3 = vrot.slane %v4102_v0, 6  ;;  %v4107_v54 = vrot.slane %v4105_v33, 7  ;;  %v2606_v5 = vadd.f32 %v2538_v36, %v2199_v4  ;;  %v3517_v37 = vmax.f32 %v3476_v52, 0.0  ;;  %v6844_v61 = vpop.f32.mrf.mxu3 }
 0x30e   : > { %v2133_v25 = vpop.f32.mrf.mxu1 }
 0x30f   : > { %v4108_v38 = vor.u32 %v4107_v54, %v4104_v3  ;;  %v3164_v16 = vadd.f32 %v6769_v23, %v2606_v5  ;;  %v3804_v8 = vmul.f32 %v3694_v9, %v3517_v37  ;;  %v3366_v13 = vpop.f32.mrf.mxu0  ;;  %v2200_v51 = vadd.f32 %v2133_v25, %v5885_v50  ;;  %v3709_v25 = vpop.permute.xlu2 %3708 }
 0x311   : > { %v4109_v44 = vsel %vm6256_vm15, %v4100_v27, %v4108_v38  ;;  %v3432_v48 = vadd.f32 %v3364_v19, %v3164_v16  ;;  %v3862_v32 = vpack.c.bf16 %v3804_v8, %v3804_v8  ;;  %v4110_v14 = vrot.slane %v4108_v38, 4 }
 0x312   : > { %4358 = vst [vmem:[%s5859_s17 + $0x60] sm:$0xf] %v4109_v44 }
 0x313   : > { %v3477_v24 = vadd.f32 %v6703_v40, %v3432_v48  ;;  %v4112_v56 = vshrl.u32 %v3862_v32, 16  ;;  %v4115_v60 = vshll.u32 %v3862_v32, 16 }
 0x314   : > { %v2540_v12 = vpop.f32.mrf.mxu2 }
 0x315   : > { %v3518_v58 = vmax.f32 %v3477_v24, 0.0  ;;  %v4114_v23 = vrot.slane %v4112_v56, 6  ;;  %v4117_v34 = vrot.slane %v4115_v60, 7  ;;  %v2607_v39 = vadd.f32 %v2540_v12, %v2200_v51  ;;  %v6852_v17 = vpop.f32.mrf.mxu3  ;;  %v7049_v12 = vld [vmem:[#allocation3_spill] sm:$0xff] }
 0x316   : > { %v2136_v47 = vpop.f32.mrf.mxu1 }
 0x317   : > { %v3805_v35 = vmul.f32 %v3699_v43, %v3518_v58  ;;  %v4118_v55 = vor.u32 %v4117_v34, %v4114_v23  ;;  %v3165_v59 = vadd.f32 %v6782_v21, %v2607_v39  ;;  %v3369_v28 = vpop.f32.mrf.mxu0  ;;  %v2201_v2 = vadd.f32 %v2136_v47, %v5904_v42  ;;  %v3714_v47 = vpop.permute.xlu0 %3713 }
 0x319   : > { %v3863_v31 = vpack.c.bf16 %v3805_v35, %v3805_v35  ;;  %v4119_v50 = vsel %vm6256_vm15, %v4110_v14, %v4118_v55  ;;  %v3433_v18 = vadd.f32 %v3366_v13, %v3165_v59  ;;  %v4120_v15 = vrot.slane %v4118_v55, 4 }
 0x31a   : > { %4359 = vst [vmem:[%s5859_s17 + $0x64] sm:$0xf] %v4119_v50 }
 0x31b   : > { %v4122_v1 = vshrl.u32 %v3863_v31, 16  ;;  %v4125_v45 = vshll.u32 %v3863_v31, 16  ;;  %v3478_v57 = vadd.f32 %v6703_v40, %v3433_v18 }
 0x31c   : > { %v2543_v26 = vpop.f32.mrf.mxu2 }
 0x31d   : > { %v4124_v6 = vrot.slane %v4122_v1, 6  ;;  %v4127_v29 = vrot.slane %v4125_v45, 7  ;;  %v3519_v21 = vmax.f32 %v3478_v57, 0.0  ;;  %v2608_v62 = vadd.f32 %v2543_v26, %v2201_v2  ;;  %v6860_v10 = vpop.f32.mrf.mxu3 }
 0x31e   : > { %v2138_v22 = vpop.f32.mrf.mxu1 }
 0x31f   : > { %v4128_v41 = vor.u32 %v4127_v29, %v4124_v6  ;;  %v3806_v19 = vmul.f32 %v3704_v46, %v3519_v21  ;;  %v3166_v20 = vadd.f32 %v6808_v7, %v2608_v62  ;;  %v3371_v49 = vpop.f32.mrf.mxu0  ;;  %v2202_v9 = vadd.f32 %v2138_v22, %v5919_v53  ;;  %v7050_v6 = vld [vmem:[#allocation5_spill] sm:$0xff] }
 0x321   : > { %v4129_v0 = vsel %vm6256_vm15, %v4120_v15, %v4128_v41  ;;  %v3864_v42 = vpack.c.bf16 %v3806_v19, %v3806_v19  ;;  %v3434_v33 = vadd.f32 %v3369_v28, %v3166_v20  ;;  %v4130_v38 = vrot.slane %v4128_v41, 4  ;;  %v3719_v41 = vpop.permute.xlu1 %3718 }
 0x322   : > { %4360 = vst [vmem:[%s5859_s17 + $0x68] sm:$0xf] %v4129_v0 }
 0x323   : > { %v4132_v4 = vshrl.u32 %v3864_v42, 16  ;;  %v4135_v52 = vshll.u32 %v3864_v42, 16  ;;  %v3479_v36 = vadd.f32 %v6703_v40, %v3434_v33 }
 0x324   : > { %v2545_v3 = vpop.f32.mrf.mxu2 }
 0x325   : > { %v4134_v54 = vrot.slane %v4132_v4, 6  ;;  %v4137_v5 = vrot.slane %v4135_v52, 7  ;;  %v3520_v7 = vmax.f32 %v3479_v36, 0.0  ;;  %v2609_v37 = vadd.f32 %v2545_v3, %v2202_v9  ;;  %v6868_v48 = vpop.f32.mrf.mxu3 }
 0x326   : > { %v2141_v27 = vpop.f32.mrf.mxu1 }
 0x327   : > { %v4138_v16 = vor.u32 %v4137_v5, %v4134_v54  ;;  %v3807_v8 = vmul.f32 %v3709_v25, %v3520_v7  ;;  %v3167_v13 = vadd.f32 %v6819_v30, %v2609_v37  ;;  %v3374_v44 = vpop.f32.mrf.mxu0  ;;  %v2203_v58 = vadd.f32 %v2141_v27, %v7049_v12  ;;  %v7051_v5 = vld [vmem:[#allocation7_spill] sm:$0xff] }
 0x329   : > { %v4139_v32 = vsel %vm6256_vm15, %v4130_v38, %v4138_v16  ;;  %v3865_v53 = vpack.c.bf16 %v3807_v8, %v3807_v8  ;;  %v3435_v24 = vadd.f32 %v3371_v49, %v3167_v13  ;;  %v4140_v35 = vrot.slane %v4138_v16, 4  ;;  %v3724_v16 = vpop.permute.xlu2 %3723 }
 0x32a   : > { %4361 = vst [vmem:[%s5859_s17 + $0x6c] sm:$0xf] %v4139_v32 }
 0x32b   : > { %v4142_v56 = vshrl.u32 %v3865_v53, 16  ;;  %v4145_v60 = vshll.u32 %v3865_v53, 16  ;;  %v3480_v51 = vadd.f32 %v6703_v40, %v3435_v24 }
 0x32c   : > { %v2548_v23 = vpop.f32.mrf.mxu2 }
 0x32d   : > { %v4144_v34 = vrot.slane %v4142_v56, 6  ;;  %v4147_v39 = vrot.slane %v4145_v60, 7  ;;  %v3521_v30 = vmax.f32 %v3480_v51, 0.0  ;;  %v2610_v43 = vadd.f32 %v2548_v23, %v2203_v58  ;;  %v6876_v50 = vpop.f32.mrf.mxu3 }
 0x32e   : > { %v2143_v14 = vpop.f32.mrf.mxu1 }
 0x32f   : > { %v4148_v55 = vor.u32 %v4147_v39, %v4144_v34  ;;  %v3808_v59 = vmul.f32 %v3714_v47, %v3521_v30  ;;  %v3168_v28 = vadd.f32 %v6827_v11, %v2610_v43  ;;  %v3376_v31 = vpop.f32.mrf.mxu0  ;;  %v2204_v29 = vadd.f32 %v2143_v14, %v7050_v6  ;;  %v7052_v39 = vld [vmem:[#allocation9_spill] sm:$0xff] }
 0x331   : > { %v4149_v18 = vsel %vm6256_vm15, %v4140_v35, %v4148_v55  ;;  %v3866_v1 = vpack.c.bf16 %v3808_v59, %v3808_v59  ;;  %v3436_v45 = vadd.f32 %v3374_v44, %v3168_v28  ;;  %v4150_v19 = vrot.slane %v4148_v55, 4  ;;  %v3729_v55 = vpop.permute.xlu0 %3728 }
 0x332   : > { %4362 = vst [vmem:[%s5859_s17 + $0x70] sm:$0xf] %v4149_v18 }
 0x333   : > { %v4152_v57 = vshrl.u32 %v3866_v1, 16  ;;  %v4155_v2 = vshll.u32 %v3866_v1, 16  ;;  %v3481_v26 = vadd.f32 %v6703_v40, %v3436_v45 }
 0x334   : > { %v2550_v21 = vpop.f32.mrf.mxu2 }
 0x335   : > { %v4154_v62 = vrot.slane %v4152_v57, 6  ;;  %v4157_v46 = vrot.slane %v4155_v2, 7  ;;  %v3522_v11 = vmax.f32 %v3481_v26, 0.0  ;;  %v2611_v22 = vadd.f32 %v2550_v21, %v2204_v29  ;;  %v6884_v33 = vpop.f32.mrf.mxu3 }
 0x336   : > { %v2146_v15 = vpop.f32.mrf.mxu1 }
 0x337   : > { %v4158_v20 = vor.u32 %v4157_v46, %v4154_v62  ;;  %v3809_v49 = vmul.f32 %v3719_v41, %v3522_v11  ;;  %v3169_v0 = vadd.f32 %v6844_v61, %v2611_v22  ;;  %v3379_v42 = vpop.f32.mrf.mxu0  ;;  %v2205_v7 = vadd.f32 %v2146_v15, %v7051_v5  ;;  %v7053_v46 = vld [vmem:[#allocation11_spill] sm:$0xff] }
 0x339   : > { %v4159_v4 = vsel %vm6256_vm15, %v4150_v19, %v4158_v20  ;;  %v3867_v52 = vpack.c.bf16 %v3809_v49, %v3809_v49  ;;  %v3437_v36 = vadd.f32 %v3376_v31, %v3169_v0  ;;  %v4160_v13 = vrot.slane %v4158_v20, 4  ;;  %v3734_v20 = vpop.permute.xlu1 %3733 }
 0x33a   : > { %4363 = vst [vmem:[%s5859_s17 + $0x74] sm:$0xf] %v4159_v4 }
 0x33b   : > { %v4162_v9 = vshrl.u32 %v3867_v52, 16  ;;  %v4165_v3 = vshll.u32 %v3867_v52, 16  ;;  %v3482_v54 = vadd.f32 %v6703_v40, %v3437_v36 }
 0x33c   : > { %v2553_v37 = vpop.f32.mrf.mxu2 }
 0x33d   : > { %v4164_v25 = vrot.slane %v4162_v9, 6  ;;  %v4167_v27 = vrot.slane %v4165_v3, 7  ;;  %v3523_v61 = vmax.f32 %v3482_v54, 0.0  ;;  %v2612_v38 = vadd.f32 %v2553_v37, %v2205_v7  ;;  %v6892_v56 = vpop.f32.mrf.mxu3 }
 0x33e   : > { %v2148_v8 = vpop.f32.mrf.mxu1 }
 0x33f   : > { %v4168_v44 = vor.u32 %v4167_v27, %v4164_v25  ;;  %v3810_v32 = vmul.f32 %v3724_v16, %v3523_v61  ;;  %v3170_v53 = vadd.f32 %v6852_v17, %v2612_v38  ;;  %v3381_v24 = vpop.f32.mrf.mxu0  ;;  %v2206_v30 = vadd.f32 %v2148_v8, %v7052_v39  ;;  %v7054_v27 = vld [vmem:[#allocation12_spill] sm:$0xff] }
 0x341   : > { %v4169_v60 = vsel %vm6256_vm15, %v4160_v13, %v4168_v44  ;;  %v3868_v51 = vpack.c.bf16 %v3810_v32, %v3810_v32  ;;  %v3438_v12 = vadd.f32 %v3379_v42, %v3170_v53  ;;  %v4170_v28 = vrot.slane %v4168_v44, 4  ;;  %v3739_v44 = vpop.permute.xlu2 %3738 }
 0x342   : > { %4364 = vst [vmem:[%s5859_s17 + $0x78] sm:$0xf] %v4169_v60 }
 0x343   : > { %v4172_v58 = vshrl.u32 %v3868_v51, 16  ;;  %v4175_v23 = vshll.u32 %v3868_v51, 16  ;;  %v3483_v34 = vadd.f32 %v6703_v40, %v3438_v12 }
 0x344   : > { %v2555_v43 = vpop.f32.mrf.mxu2 }
 0x345   : > { %v4174_v47 = vrot.slane %v4172_v58, 6  ;;  %v4177_v14 = vrot.slane %v4175_v23, 7  ;;  %v3524_v17 = vmax.f32 %v3483_v34, 0.0  ;;  %v2613_v35 = vadd.f32 %v2555_v43, %v2206_v30  ;;  %v6900_v57 = vpop.f32.mrf.mxu3 }
 0x346   : > { %v2151_v59 = vpop.f32.mrf.mxu1 }
 0x347   : > { %v4178_v31 = vor.u32 %v4177_v14, %v4174_v47  ;;  %v3811_v18 = vmul.f32 %v3729_v55, %v3524_v17  ;;  %v3171_v1 = vadd.f32 %v6860_v10, %v2613_v35  ;;  %v3384_v45 = vpop.f32.mrf.mxu0  ;;  %v2207_v11 = vadd.f32 %v2151_v59, %v7053_v46  ;;  %v7055_v14 = vld [vmem:[#allocation13_spill] sm:$0xff] }
 0x349   : > { %v4179_v2 = vsel %vm6256_vm15, %v4170_v28, %v4178_v31  ;;  %v3869_v26 = vpack.c.bf16 %v3811_v18, %v3811_v18  ;;  %v3439_v6 = vadd.f32 %v3381_v24, %v3171_v1  ;;  %v4180_v0 = vrot.slane %v4178_v31, 4  ;;  %v3744_v31 = vpop.permute.xlu1 %3743 }
 0x34a   : > { %4365 = vst [vmem:[%s5859_s17 + $0x7c] sm:$0xf] %v4179_v2 }
 0x34b   : > { %v4182_v29 = vshrl.u32 %v3869_v26, 16  ;;  %v4185_v21 = vshll.u32 %v3869_v26, 16  ;;  %v3484_v62 = vadd.f32 %v6703_v40, %v3439_v6 }
 0x34c   : > { %v2558_v22 = vpop.f32.mrf.mxu2 }
 0x34d   : > { %v4184_v41 = vrot.slane %v4182_v29, 6  ;;  %v4187_v15 = vrot.slane %v4185_v21, 7  ;;  %v3525_v10 = vmax.f32 %v3484_v62, 0.0  ;;  %v2614_v19 = vadd.f32 %v2558_v22, %v2207_v11  ;;  %v6908_v9 = vpop.f32.mrf.mxu3 }
 0x34e   : > { %v2153_v49 = vpop.f32.mrf.mxu1 }
 0x34f   : > { %v4188_v42 = vor.u32 %v4187_v15, %v4184_v41  ;;  %v3812_v4 = vmul.f32 %v3734_v20, %v3525_v10  ;;  %v3172_v52 = vadd.f32 %v6868_v48, %v2614_v19  ;;  %v3386_v36 = vpop.f32.mrf.mxu0  ;;  %v2208_v61 = vadd.f32 %v2153_v49, %v7054_v27  ;;  %v7056_v15 = vld [vmem:[#allocation14_spill] sm:$0xff]  ;;  %v6931_v19 = vpop.permute.xlu0 %3773 }
 0x351   : > { %v4189_v3 = vsel %vm6256_vm15, %v4180_v0, %v4188_v42  ;;  %v3870_v54 = vpack.c.bf16 %v3812_v4, %v3812_v4  ;;  %v3440_v5 = vadd.f32 %v3384_v45, %v3172_v52  ;;  %v4190_v53 = vrot.slane %v4188_v42, 4  ;;  %v3749_v4 = vpop.permute.xlu2 %3748 }
 0x352   : > { %4366 = vst [vmem:[%s5859_s17 + $0x80] sm:$0xf] %v4189_v3 }
 0x353   : > { %v4192_v7 = vshrl.u32 %v3870_v54, 16  ;;  %v4195_v37 = vshll.u32 %v3870_v54, 16  ;;  %v3485_v25 = vadd.f32 %v6703_v40, %v3440_v5 }
 0x354   : > { %v2560_v38 = vpop.f32.mrf.mxu2 }
 0x355   : > { %v4194_v16 = vrot.slane %v4192_v7, 6  ;;  %v4197_v8 = vrot.slane %v4195_v37, 7  ;;  %v3526_v48 = vmax.f32 %v3485_v25, 0.0  ;;  %v2615_v13 = vadd.f32 %v2560_v38, %v2208_v61  ;;  %v6916_v58 = vpop.f32.mrf.mxu3 }
 0x356   : > { %v2156_v32 = vpop.f32.mrf.mxu1 }
 0x357   : > { %v4198_v24 = vor.u32 %v4197_v8, %v4194_v16  ;;  %v3813_v60 = vmul.f32 %v3739_v44, %v3526_v48  ;;  %v3173_v51 = vadd.f32 %v6876_v50, %v2615_v13  ;;  %v3389_v12 = vpop.f32.mrf.mxu0  ;;  %v2209_v17 = vadd.f32 %v2156_v32, %v7055_v14  ;;  %v7057_v48 = vld [vmem:[#allocation15_spill] sm:$0xff] }
 0x359   : > { %v4199_v23 = vsel %vm6256_vm15, %v4190_v53, %v4198_v24  ;;  %v3871_v34 = vpack.c.bf16 %v3813_v60, %v3813_v60  ;;  %v3441_v39 = vadd.f32 %v3386_v36, %v3173_v51  ;;  %v4200_v1 = vrot.slane %v4198_v24, 4  ;;  %v3754_v60 = vpop.permute.xlu0 %3753 }
 0x35a   : > { %4367 = vst [vmem:[%s5859_s17 + $0x84] sm:$0xf] %v4199_v23 }
 0x35b   : > { %v4202_v30 = vshrl.u32 %v3871_v34, 16  ;;  %v4205_v43 = vshll.u32 %v3871_v34, 16  ;;  %v3486_v47 = vadd.f32 %v6703_v40, %v3441_v39 }
 0x35c   : > { %v2563_v35 = vpop.f32.mrf.mxu2 }
 0x35d   : > { %v4204_v55 = vrot.slane %v4202_v30, 6  ;;  %v4207_v59 = vrot.slane %v4205_v43, 7  ;;  %v3527_v50 = vmax.f32 %v3486_v47, 0.0  ;;  %v2616_v28 = vadd.f32 %v2563_v35, %v2209_v17  ;;  %v6924_v29 = vpop.f32.mrf.mxu3 }
 0x35e   : > { %v2158_v18 = vpop.f32.mrf.mxu1 }
 0x35f   : > { %v4208_v45 = vor.u32 %v4207_v59, %v4204_v55  ;;  %v3814_v2 = vmul.f32 %v3744_v31, %v3527_v50  ;;  %v3174_v26 = vadd.f32 %v6884_v33, %v2616_v28  ;;  %v3391_v6 = vpop.f32.mrf.mxu0  ;;  %v2210_v10 = vadd.f32 %v2158_v18, %v7056_v15  ;;  %v7058_v50 = vld [vmem:[#allocation16_spill] sm:$0xff] }
 0x361   : > { %v4209_v21 = vsel %vm6256_vm15, %v4200_v1, %v4208_v45  ;;  %v3872_v62 = vpack.c.bf16 %v3814_v2, %v3814_v2  ;;  %v3442_v46 = vadd.f32 %v3389_v12, %v3174_v26  ;;  %v4210_v36 = vrot.slane %v4208_v45, 4  ;;  %v3759_v2 = vpop.permute.xlu1 %3758 }
 0x362   : > { %4368 = vst [vmem:[%s5859_s17 + $0x88] sm:$0xf] %v4209_v21 }
 0x363   : > { %v4212_v11 = vshrl.u32 %v3872_v62, 16  ;;  %v4215_v22 = vshll.u32 %v3872_v62, 16  ;;  %v3487_v41 = vadd.f32 %v6703_v40, %v3442_v46 }
 0x364   : > { %v2565_v20 = vpop.f32.mrf.mxu2 }
 0x365   : > { %v4214_v33 = vrot.slane %v4212_v11, 6  ;;  %v4217_v49 = vrot.slane %v4215_v22, 7  ;;  %v3528_v0 = vmax.f32 %v3487_v41, 0.0  ;;  %v2617_v42 = vadd.f32 %v2565_v20, %v2210_v10  ;;  %v6934_v37 = vpop.f32.mrf.mxu3  ;;  %v3833_v22 = vld [vmem:[%s5859_s17 + $0xa8] sm:$0x8] }
 0x366   : > { %v2161_v52 = vpop.f32.mrf.mxu1  ;;  %v3834_v20 = vsel %vm3832_vm3, 0, %v3833_v22 }
 0x367   : > { %v4218_v3 = vor.u32 %v4217_v49, %v4214_v33  ;;  %v3815_v54 = vmul.f32 %v3749_v4, %v3528_v0  ;;  %v3175_v5 = vadd.f32 %v6892_v56, %v2617_v42  ;;  %v3394_v7 = vpop.f32.mrf.mxu0  ;;  %v2211_v13 = vadd.f32 %v2161_v52, %v7057_v48  ;;  %v7059_v42 = vld [vmem:[#allocation2_spill] sm:$0xff]  ;;  %3835 = vst [vmem:[%s5859_s17 + $0xa8] sm:$0x8] %v3834_v20 }
 0x369   : > { %v4219_v25 = vsel %vm6256_vm15, %v4210_v36, %v4218_v3  ;;  %v3873_v27 = vpack.c.bf16 %v3815_v54, %v3815_v54  ;;  %v3443_v61 = vadd.f32 %v3391_v6, %v3175_v5  ;;  %v4220_v12 = vrot.slane %v4218_v3, 4  ;;  %v3764_v5 = vpop.permute.xlu2 %3763 }
 0x36a   : > { %4369 = vst [vmem:[%s5859_s17 + $0x8c] sm:$0xf] %v4219_v25 }
 0x36b   : > { %v4222_v38 = vshrl.u32 %v3873_v27, 16  ;;  %v4225_v16 = vshll.u32 %v3873_v27, 16  ;;  %v3488_v8 = vadd.f32 %v6703_v40, %v3443_v61 }
 0x36c   : > { %v2568_v44 = vpop.f32.mrf.mxu2 }
 0x36d   : > { %v4224_v32 = vrot.slane %v4222_v38, 6  ;;  %v4227_v53 = vrot.slane %v4225_v16, 7  ;;  %v3529_v56 = vmax.f32 %v3488_v8, 0.0  ;;  %v2618_v24 = vadd.f32 %v2568_v44, %v2211_v13  ;;  %v3138_v43 = vpop.f32.mrf.mxu3 }
 0x36e   : > { %v2163_v51 = vpop.f32.mrf.mxu1 }
 0x36f   : > { %v4228_v23 = vor.u32 %v4227_v53, %v4224_v32  ;;  %v3816_v34 = vmul.f32 %v3754_v60, %v3529_v56  ;;  %v3176_v39 = vadd.f32 %v6900_v57, %v2618_v24  ;;  %v3396_v30 = vpop.f32.mrf.mxu0  ;;  %v2212_v28 = vadd.f32 %v2163_v51, %v7058_v50  ;;  %v7060_v56 = vld [vmem:[#allocation4_spill] sm:$0xff] }
 0x371   : > { %v4229_v47 = vsel %vm6256_vm15, %v4220_v12, %v4228_v23  ;;  %v3874_v14 = vpack.c.bf16 %v3816_v34, %v3816_v34  ;;  %v3444_v17 = vadd.f32 %v3394_v7, %v3176_v39  ;;  %v4230_v6 = vrot.slane %v4228_v23, 4 }
 0x372   : > { %4370 = vst [vmem:[%s5859_s17 + $0x90] sm:$0xf] %v4229_v47 }
 0x373   : > { %v4232_v35 = vshrl.u32 %v3874_v14, 16  ;;  %v4235_v55 = vshll.u32 %v3874_v14, 16  ;;  %v3489_v59 = vadd.f32 %v6703_v40, %v3444_v17 }
 0x374   : > { %v2570_v31 = vpop.f32.mrf.mxu2 }
 0x375   : > { %v4234_v18 = vrot.slane %v4232_v35, 6  ;;  %v4237_v1 = vrot.slane %v4235_v55, 7  ;;  %v3530_v45 = vmax.f32 %v3489_v59, 0.0  ;;  %v2619_v57 = vadd.f32 %v2570_v31, %v2212_v28  ;;  %v5084_v28 = vld [vmem:[%s6987_s2] ss:$0 sm:$0xff] }
 0x376   : > { %v2166_v26 = vpop.f32.mrf.mxu1 }
 0x377   : > { %v4238_v21 = vor.u32 %v4237_v1, %v4234_v18  ;;  %v3817_v62 = vmul.f32 %v3759_v2, %v3530_v45  ;;  %v3177_v46 = vadd.f32 %v6908_v9, %v2619_v57  ;;  %v3399_v11 = vpop.f32.mrf.mxu0  ;;  %v2213_v4 = vadd.f32 %v2166_v26, %v7059_v42  ;;  %v7061_v18 = vld [vmem:[#allocation6_spill] sm:$0xff] }
 0x379   : > { %v4239_v41 = vsel %vm6256_vm15, %v4230_v6, %v4238_v21  ;;  %v3875_v15 = vpack.c.bf16 %v3817_v62, %v3817_v62  ;;  %v3445_v10 = vadd.f32 %v3396_v30, %v3177_v46  ;;  %v4240_v25 = vrot.slane %v4238_v21, 4 }
 0x37a   : > { %4371 = vst [vmem:[%s5859_s17 + $0x94] sm:$0xf] %v4239_v41 }
 0x37b   : > { %v4242_v33 = vshrl.u32 %v3875_v15, 16  ;;  %v4245_v49 = vshll.u32 %v3875_v15, 16  ;;  %v3490_v0 = vadd.f32 %v6703_v40, %v3445_v10 }
 0x37c   : > { %v2573_v9 = vpop.f32.mrf.mxu2 }
 0x37d   : > { %v4244_v52 = vrot.slane %v4242_v33, 6  ;;  %v4247_v36 = vrot.slane %v4245_v49, 7  ;;  %v3531_v3 = vmax.f32 %v3490_v0, 0.0  ;;  %v2620_v54 = vadd.f32 %v2573_v9, %v2213_v4 }
 0x37e   : > { %v2168_v7 = vpop.f32.mrf.mxu1 }
 0x37f   : > { %v4248_v27 = vor.u32 %v4247_v36, %v4244_v52  ;;  %v3818_v61 = vmul.f32 %v3764_v5, %v3531_v3  ;;  %v3178_v38 = vadd.f32 %v6916_v58, %v2620_v54  ;;  %v3401_v16 = vpop.f32.mrf.mxu0  ;;  %v2214_v24 = vadd.f32 %v2168_v7, %v7060_v56  ;;  %v3769_v58 = vpop.permute.xlu0 %3768 }
 0x380   : > { %v3779_v52 = vpop.permute.xlu1 %3778 }
 0x381   : > { %v4249_v8 = vsel %vm6256_vm15, %v4240_v25, %v4248_v27  ;;  %v3876_v48 = vpack.c.bf16 %v3818_v61, %v3818_v61  ;;  %v3446_v13 = vadd.f32 %v3399_v11, %v3178_v38  ;;  %v4250_v30 = vrot.slane %v4248_v27, 4 }
 0x382   : > { %4372 = vst [vmem:[%s5859_s17 + $0x98] sm:$0xf] %v4249_v8 }
 0x383   : > { %v4252_v44 = vshrl.u32 %v3876_v48, 16  ;;  %v4255_v32 = vshll.u32 %v3876_v48, 16  ;;  %v3491_v53 = vadd.f32 %v6703_v40, %v3446_v13 }
 0x384   : > { %v2575_v60 = vpop.f32.mrf.mxu2 }
 0x385   : > { %v4254_v51 = vrot.slane %v4252_v44, 6  ;;  %v4257_v12 = vrot.slane %v4255_v32, 7  ;;  %v3532_v23 = vmax.f32 %v3491_v53, 0.0  ;;  %v2621_v34 = vadd.f32 %v2575_v60, %v2214_v24 }
 0x386   : > { %v2171_v39 = vpop.f32.mrf.mxu1 }
 0x387   : > { %v4258_v43 = vor.u32 %v4257_v12, %v4254_v51  ;;  %v3819_v47 = vmul.f32 %v3769_v58, %v3532_v23  ;;  %v3179_v14 = vadd.f32 %v6924_v29, %v2621_v34  ;;  %v3404_v17 = vpop.f32.mrf.mxu0  ;;  %v2215_v1 = vadd.f32 %v2171_v39, %v7061_v18 }
 0x389   : > { %v4259_v35 = vsel %vm6256_vm15, %v4250_v30, %v4258_v43  ;;  %v3877_v40 = vpack.c.bf16 %v3819_v47, %v3819_v47  ;;  %v3447_v55 = vadd.f32 %v3401_v16, %v3179_v14  ;;  %v4260_v21 = vrot.slane %v4258_v43, 4  ;;  %v4379_v16 = vld [vmem:[%s5859_s17 + $0xa8] sm:$0xf] }
 0x38a   : > { %4373 = vst [vmem:[%s5859_s17 + $0x9c] sm:$0xf] %v4259_v35 }
 0x38b   : > { %v4262_v59 = vshrl.u32 %v3877_v40, 16  ;;  %v4265_v50 = vshll.u32 %v3877_v40, 16  ;;  %v3492_v31 = vadd.f32 %v5084_v28, %v3447_v55 }
 0x38c   : > { %v2578_v45 = vpop.f32.mrf.mxu2 }
 0x38d   : > { %v4264_v57 = vrot.slane %v4262_v59, 6  ;;  %v4267_v29 = vrot.slane %v4265_v50, 7  ;;  %v3533_v2 = vmax.f32 %v3492_v31, 0.0  ;;  %v2622_v26 = vadd.f32 %v2578_v45, %v2215_v1 }
 0x38e   : > { %v2173_v6 = vpop.f32.mrf.mxu1 }
 0x38f   : > { %v4268_v62 = vor.u32 %v4267_v29, %v4264_v57  ;;  %v3820_v46 = vmul.f32 %v6931_v19, %v3533_v2  ;;  %v3180_v11 = vadd.f32 %v6934_v37, %v2622_v26  ;;  %v3406_v22 = vpop.f32.mrf.mxu0 }
 0x391   : > { %v4269_v41 = vsel %vm6256_vm15, %v4260_v21, %v4268_v62  ;;  %v3878_v15 = vpack.c.bf16 %v3820_v46, %v3820_v46  ;;  %v3448_v10 = vadd.f32 %v3404_v17, %v3180_v11  ;;  %v4270_v19 = vrot.slane %v4268_v62, 4 }
 0x392   : > { %4374 = vst [vmem:[%s5859_s17 + $0xa0] sm:$0xf] %v4269_v41 }
 0x393   : > { %v4272_v20 = vshrl.u32 %v3878_v15, 16  ;;  %v4275_v33 = vshll.u32 %v3878_v15, 16  ;;  %v3493_v49 = vadd.f32 %v5084_v28, %v3448_v10 }
 0x394   : > { %v2580_v0 = vpop.f32.mrf.mxu2 }
 0x395   : > { %v4274_v42 = vrot.slane %v4272_v20, 6  ;;  %v4277_v4 = vrot.slane %v4275_v33, 7  ;;  %v3534_v9 = vmax.f32 %v3493_v49, 0.0 }
 0x397   : > { %v4278_v36 = vor.u32 %v4277_v4, %v4274_v42  ;;  %v3821_v37 = vmul.f32 %v3779_v52, %v3534_v9 }
 0x399   : > { %v4279_v3 = vsel %vm6256_vm15, %v4270_v19, %v4278_v36  ;;  %v3879_v54 = vpack.c.bf16 %v3821_v37, %v3821_v37  ;;  %v4280_v61 = vrot.slane %v4278_v36, 4 }
 0x39a   : > { %4375 = vst [vmem:[%s5859_s17 + $0xa4] sm:$0xf] %v4279_v3 }
 0x39b   : > { %v4282_v5 = vshrl.u32 %v3879_v54, 16  ;;  %v4285_v7 = vshll.u32 %v3879_v54, 16 }
 0x39d   : > { %v4284_v25 = vrot.slane %v4282_v5, 6  ;;  %v4287_v27 = vrot.slane %v4285_v7, 7 }
 0x39f   : > { %v4288_v38 = vor.u32 %v4287_v27, %v4284_v25 }
 0x3a1   : > { %v4289_v8 = vsel %vm6256_vm15, %v4280_v61, %v4288_v38 }
 0x3a2   : > { %v4380_v48 = vsel %vm4378_vm5, %v4289_v8, %v4379_v16 }
 0x3a3   : > { %4381 = vst [vmem:[%s5859_s17 + $0xa8] sm:$0xf] %v4380_v48 }
 0x3a4 PF: > { %s14_s15 = sadd.s32 1, %s5091_s15  }
 0x3a5   : > { %p11_p4 = scmp.ge.s32.totalorder %s14_s15, 4  }
 0x3a7   :  { %13 = sbr.rel (!%p11_p4) target bundleno = 1 (0x1), region = 74 }

</bundles_post_ra>
